<compile_context>
chip_gen: v7x
topology: tpu7x:2x2x1
jax: 0.10.0
libtpu: 0.0.40
codegen_flags: <defaults>
</compile_context>

<pallas_src>
import math
import functools

import numpy as np
import jax
import jax.numpy as jnp
from jax.experimental import pallas as pl
from jax.experimental.pallas import tpu as pltpu


# ----------------------------------------------------------------------------
# helpers
# ----------------------------------------------------------------------------

def _row_tile(M, target=512):
    """Largest row tile (multiple of 8) dividing M, capped at `target` rows."""
    if M <= target:
        return M
    start = target - (target % 8)
    for t in range(start, 7, -8):
        if M % t == 0:
            return t
    return M


def _window_tile(nW, N, target_rows=512):
    """Smallest divisor of nW giving >= target_rows rows of work per grid step."""
    for d in range(1, nW + 1):
        if nW % d == 0 and d * N >= target_rows:
            return d
    return nW


_PARALLEL1 = pltpu.CompilerParams(dimension_semantics=("parallel",))
_PARALLEL2 = pltpu.CompilerParams(dimension_semantics=("parallel", "parallel"))

# TODO(synk): constant-index weight BlockSpecs are still double-buffered by default
# (pipeline_mode=pl.Buffered(1) would halve their VMEM); irrelevant at these tiny sizes.


# ----------------------------------------------------------------------------
# Kernel: fused Linear(+bias) + LayerNorm   (patch embedding, patch-merging reduction)
# ----------------------------------------------------------------------------

def _linear_ln_kernel(x_ref, w_ref, b_ref, g_ref, bb_ref, o_ref, *, eps):
    y = jnp.dot(x_ref[...], w_ref[...], preferred_element_type=jnp.float32) + b_ref[...]
    mu = jnp.mean(y, axis=-1, keepdims=True)
    var = jnp.mean(jnp.square(y - mu), axis=-1, keepdims=True)
    o_ref[...] = ((y - mu) * jax.lax.rsqrt(var + eps) * g_ref[...]
                  + bb_ref[...]).astype(o_ref.dtype)


def linear_layernorm(x, w, b, gamma, beta, eps=1e-5, out_dtype=jnp.bfloat16):
    orig = x.shape
    K = orig[-1]
    M = int(np.prod(orig[:-1]))
    N = w.shape[1]
    x2 = x.reshape(M, K).astype(jnp.bfloat16)
    b2 = (jnp.zeros((1, N), jnp.float32) if b is None
          else b.reshape(1, N).astype(jnp.float32))
    tm = _row_tile(M)
    out = pl.pallas_call(
        functools.partial(_linear_ln_kernel, eps=eps),
        out_shape=jax.ShapeDtypeStruct((M, N), out_dtype),
        grid=(M // tm,),
        in_specs=[
            pl.BlockSpec((tm, K), lambda i: (i, 0)),
            pl.BlockSpec((K, N), lambda i: (0, 0)),
            pl.BlockSpec((1, N), lambda i: (0, 0)),
            pl.BlockSpec((1, N), lambda i: (0, 0)),
            pl.BlockSpec((1, N), lambda i: (0, 0)),
        ],
        out_specs=pl.BlockSpec((tm, N), lambda i: (i, 0)),
        compiler_params=_PARALLEL1,
    )(x2, w.astype(jnp.bfloat16), b2,
      gamma.reshape(1, N).astype(jnp.float32),
      beta.reshape(1, N).astype(jnp.float32))
    return out.reshape(orig[:-1] + (N,))


# ----------------------------------------------------------------------------
# Kernel: plain LayerNorm (final model.norm) -- f32 output
# ----------------------------------------------------------------------------

def _ln_kernel(x_ref, g_ref, b_ref, o_ref, *, eps):
    x = x_ref[...].astype(jnp.float32)
    mu = jnp.mean(x, axis=-1, keepdims=True)
    var = jnp.mean(jnp.square(x - mu), axis=-1, keepdims=True)
    o_ref[...] = (x - mu) * jax.lax.rsqrt(var + eps) * g_ref[...] + b_ref[...]


def layernorm(x, gamma, beta, eps=1e-5):
    orig = x.shape
    C = orig[-1]
    M = int(np.prod(orig[:-1]))
    tm = _row_tile(M)
    out = pl.pallas_call(
        functools.partial(_ln_kernel, eps=eps),
        out_shape=jax.ShapeDtypeStruct((M, C), jnp.float32),
        grid=(M // tm,),
        in_specs=[pl.BlockSpec((tm, C), lambda i: (i, 0)),
                  pl.BlockSpec((1, C), lambda i: (0, 0)),
                  pl.BlockSpec((1, C), lambda i: (0, 0))],
        out_specs=pl.BlockSpec((tm, C), lambda i: (i, 0)),
        compiler_params=_PARALLEL1,
    )(x.reshape(M, C).astype(jnp.bfloat16),
      gamma.reshape(1, C).astype(jnp.float32),
      beta.reshape(1, C).astype(jnp.float32))
    return out.reshape(orig)


# ----------------------------------------------------------------------------
# Kernel: fused MLP half-block  ( x + LN( Linear2( GELU( Linear1(x) ) ) ) )
# ----------------------------------------------------------------------------

def _mlp_block_kernel(x_ref, w1_ref, b1_ref, w2_ref, b2_ref, g_ref, bb_ref, o_ref, *, eps):
    xb = x_ref[...]                                                    # (TM, C) bf16
    x = xb.astype(jnp.float32)
    h = jnp.dot(xb, w1_ref[...], preferred_element_type=jnp.float32) + b1_ref[...]
    # TODO(synk): tanh-approximate GELU in-kernel (torch.nn.GELU default is exact erf);
    # rel. error ~1e-3, accepted so the 4x-wide hidden activation never leaves VMEM.
    h = 0.5 * h * (1.0 + jnp.tanh(0.7978845608028654 * (h + 0.044715 * h * h * h)))
    y = jnp.dot(h.astype(jnp.bfloat16), w2_ref[...],
                preferred_element_type=jnp.float32) + b2_ref[...]
    mu = jnp.mean(y, axis=-1, keepdims=True)
    var = jnp.mean(jnp.square(y - mu), axis=-1, keepdims=True)
    ln = (y - mu) * jax.lax.rsqrt(var + eps) * g_ref[...] + bb_ref[...]
    o_ref[...] = (x + ln).astype(o_ref.dtype)


def mlp_block(x, w1, b1, w2, b2, gamma, beta, eps=1e-5):
    orig = x.shape
    C = orig[-1]
    Hd = w1.shape[1]
    M = int(np.prod(orig[:-1]))
    tm = _row_tile(M)
    out = pl.pallas_call(
        functools.partial(_mlp_block_kernel, eps=eps),
        out_shape=jax.ShapeDtypeStruct((M, C), jnp.bfloat16),
        grid=(M // tm,),
        in_specs=[
            pl.BlockSpec((tm, C), lambda i: (i, 0)),
            pl.BlockSpec((C, Hd), lambda i: (0, 0)),
            pl.BlockSpec((1, Hd), lambda i: (0, 0)),
            pl.BlockSpec((Hd, C), lambda i: (0, 0)),
            pl.BlockSpec((1, C), lambda i: (0, 0)),
            pl.BlockSpec((1, C), lambda i: (0, 0)),
            pl.BlockSpec((1, C), lambda i: (0, 0)),
        ],
        out_specs=pl.BlockSpec((tm, C), lambda i: (i, 0)),
        compiler_params=_PARALLEL1,
    )(x.reshape(M, C).astype(jnp.bfloat16),
      w1.astype(jnp.bfloat16), b1.reshape(1, Hd).astype(jnp.float32),
      w2.astype(jnp.bfloat16), b2.reshape(1, C).astype(jnp.float32),
      gamma.reshape(1, C).astype(jnp.float32),
      beta.reshape(1, C).astype(jnp.float32))
    return out.reshape(orig)


# ----------------------------------------------------------------------------
# Kernel: fused shifted-window-attention half-block
#   per grid step (one image x one window tile): wide qkv proj -> cosine attention
#   (clamped learned logit scale + rel-pos bias + shift mask) -> batched softmax ->
#   single out proj -> post-norm LN -> residual
# ----------------------------------------------------------------------------

def _win_attn_kernel(x_ref, wqkv_ref, bqkv_ref, wproj_ref, bproj_ref,
                     bias_ref, mask_ref, g_ref, bb_ref, scale_ref, o_ref,
                     *, num_heads, eps):
    WT, N, C = x_ref.shape[1], x_ref.shape[2], x_ref.shape[3]
    Dh = C // num_heads
    M = WT * N

    xb = x_ref[0].reshape(M, C)                       # bf16, leading-dim merge only
    xf = xb.astype(jnp.float32)

    # one wide QKV projection on the MXU (output width 3C), bf16 operands / f32 accumulate
    qkv = jnp.dot(xb, wqkv_ref[...], preferred_element_type=jnp.float32) + bqkv_ref[...]

    # head split: static lane slices stacked on the leading axis -> (nH*WT, N, Dh)
    def split_heads(base):
        parts = [qkv[:, base + h * Dh: base + (h + 1) * Dh] for h in range(num_heads)]
        return jnp.concatenate(parts, axis=0).reshape(num_heads * WT, N, Dh)

    q = split_heads(0)
    k = split_heads(C)
    v = split_heads(2 * C)

    # F.normalize(dim=-1) via rsqrt (EUP): x / max(||x||, 1e-12)
    qn = q * jax.lax.rsqrt(jnp.maximum(jnp.sum(q * q, axis=-1, keepdims=True), 1e-24))
    kn = k * jax.lax.rsqrt(jnp.maximum(jnp.sum(k * k, axis=-1, keepdims=True), 1e-24))

    # cosine-similarity scores for ALL heads & windows in one batched matmul; kept f32 because
    # the learned logit scale can reach 100x and bf16 rounding here shifts the softmax.
    attn = jnp.einsum("bnd,bmd->bnm", qn, kn, preferred_element_type=jnp.float32)
    attn = attn.reshape(num_heads, WT, N, N)
    attn = attn * scale_ref[...][:, None, :, :]                    # per-head logit scale
    attn = attn + bias_ref[...][:, None, :, :] + mask_ref[...][None, :, :, :]

    # softmax over keys, batched across heads x windows (one max/exp/sum/reciprocal pass)
    attn = attn - jnp.max(attn, axis=-1, keepdims=True)
    pexp = jnp.exp(attn)
    pexp = pexp * pl.reciprocal(jnp.sum(pexp, axis=-1, keepdims=True), approx=True)

    out = jnp.einsum("bnm,bmd->bnd",
                     pexp.reshape(num_heads * WT, N, N).astype(jnp.bfloat16),
                     v.astype(jnp.bfloat16),
                     preferred_element_type=jnp.float32)           # (nH*WT, N, Dh)

    # re-concatenate heads along the lane dim (head-major, matching torchvision) and run a
    # single (M, C) @ (C, C) output projection.
    heads = [out[h * WT:(h + 1) * WT].reshape(M, Dh) for h in range(num_heads)]
    cat = jnp.concatenate(heads, axis=-1)                          # (M, C)
    y = jnp.dot(cat.astype(jnp.bfloat16), wproj_ref[...],
                preferred_element_type=jnp.float32) + bproj_ref[...]

    # post-norm (norm1) + residual, fused
    mu = jnp.mean(y, axis=-1, keepdims=True)
    var = jnp.mean(jnp.square(y - mu), axis=-1, keepdims=True)
    ln = (y - mu) * jax.lax.rsqrt(var + eps) * g_ref[...] + bb_ref[...]
    o_ref[0] = (xf + ln).reshape(WT, N, C).astype(o_ref.dtype)


def make_rel_tables(ws):
    # log-spaced continuous relative coords table + relative position index (torchvision V2)
    rc = np.arange(-(ws - 1), ws, dtype=np.float32)
    table = np.stack(np.meshgrid(rc, rc, indexing="ij")).transpose(1, 2, 0)  # (2w-1, 2w-1, 2)
    table[:, :, 0] /= (ws - 1)
    table[:, :, 1] /= (ws - 1)
    table *= 8.0
    table = np.sign(table) * np.log2(np.abs(table) + 1.0) / 3.0
    table = table.reshape(-1, 2)

    coords = np.stack(np.meshgrid(np.arange(ws), np.arange(ws), indexing="ij")).reshape(2, -1)
    rel = (coords[:, :, None] - coords[:, None, :]).transpose(1, 2, 0)
    rel[:, :, 0] += ws - 1
    rel[:, :, 1] += ws - 1
    rel[:, :, 0] *= 2 * ws - 1
    idx = rel.sum(-1).reshape(-1)
    return jnp.asarray(table, jnp.float32), jnp.asarray(idx, jnp.int32)


def make_attn_mask(pH, pW, ws, sh, sw):
    m = np.zeros((pH, pW), dtype=np.float32)
    h_slices = ((0, pH - ws), (pH - ws, pH - sh), (pH - sh, pH))
    w_slices = ((0, pW - ws), (pW - ws, pW - sw), (pW - sw, pW))
    cnt = 0
    for hs in h_slices:
        for wsl in w_slices:
            m[hs[0]:hs[1], wsl[0]:wsl[1]] = cnt
            cnt += 1
    nW = (pH // ws) * (pW // ws)
    m = m.reshape(pH // ws, ws, pW // ws, ws).transpose(0, 2, 1, 3).reshape(nW, ws * ws)
    diff = m[:, None, :] - m[:, :, None]
    return np.where(diff != 0, -100.0, 0.0).astype(np.float32)


def shifted_window_attention_block(x, p, ws, shift, num_heads, eps=1e-5):
    """x + norm1(shifted_window_attention_v2(x)) with attention fully fused in one pallas_call."""
    B, H, W, C = x.shape
    pad_b = (-H) % ws
    pad_r = (-W) % ws
    xp = jnp.pad(x, ((0, 0), (0, pad_b), (0, pad_r), (0, 0)))
    _, pH, pW, _ = xp.shape
    sh = 0 if ws >= pH else shift
    sw = 0 if ws >= pW else shift
    if sh or sw:
        xp = jnp.roll(xp, shift=(-sh, -sw), axis=(1, 2))
    nWh, nWw = pH // ws, pW // ws
    nW = nWh * nWw
    N = ws * ws
    # TODO(synk): the roll + window (un)partition stay as XLA reshapes; expressing the shifted
    # windowing directly in the BlockSpec index_map would require wrap-around gathers.
    xw = xp.reshape(B, nWh, ws, nWw, ws, C).transpose(0, 1, 3, 2, 4, 5)
    xw = xw.reshape(B, nW, N, C).astype(jnp.bfloat16)

    # --- input-independent prologue (plain XLA, once per block, outside the token hot path) ---
    th = jnp.maximum(p["rel_coords_table"] @ p["cpb_w1"] + p["cpb_b1"], 0.0)
    tbl = 16.0 * jax.nn.sigmoid(th @ p["cpb_w2"])                             # (T, nH)
    bias = tbl[p["rel_pos_index"]].reshape(N, N, num_heads).transpose(2, 0, 1)  # (nH, N, N)
    if sh or sw:
        mask = jnp.asarray(make_attn_mask(pH, pW, ws, sh, sw))                # (nW, N, N)
    else:
        mask = jnp.zeros((nW, N, N), jnp.float32)
    scale = jnp.exp(jnp.minimum(p["logit_scale"].reshape(num_heads), math.log(100.0)))
    scale = scale.reshape(num_heads, 1, 1).astype(jnp.float32)

    wt = _window_tile(nW, N)
    grid = (B, nW // wt)

    out = pl.pallas_call(
        functools.partial(_win_attn_kernel, num_heads=num_heads, eps=eps),
        out_shape=jax.ShapeDtypeStruct((B, nW, N, C), jnp.bfloat16),
        grid=grid,
        in_specs=[
            pl.BlockSpec((1, wt, N, C), lambda b, w: (b, w, 0, 0)),
            pl.BlockSpec((C, 3 * C), lambda b, w: (0, 0)),
            pl.BlockSpec((1, 3 * C), lambda b, w: (0, 0)),
            pl.BlockSpec((C, C), lambda b, w: (0, 0)),
            pl.BlockSpec((1, C), lambda b, w: (0, 0)),
            pl.BlockSpec((num_heads, N, N), lambda b, w: (0, 0, 0)),
            pl.BlockSpec((wt, N, N), lambda b, w: (w, 0, 0)),
            pl.BlockSpec((1, C), lambda b, w: (0, 0)),
            pl.BlockSpec((1, C), lambda b, w: (0, 0)),
            pl.BlockSpec((num_heads, 1, 1), lambda b, w: (0, 0, 0)),
        ],
        out_specs=pl.BlockSpec((1, wt, N, C), lambda b, w: (b, w, 0, 0)),
        compiler_params=_PARALLEL2,
    )(xw,
      p["qkv_w"].astype(jnp.bfloat16),
      p["qkv_b"].reshape(1, 3 * C).astype(jnp.float32),
      p["proj_w"].astype(jnp.bfloat16),
      p["proj_b"].reshape(1, C).astype(jnp.float32),
      bias.astype(jnp.float32),
      mask.astype(jnp.float32),
      p["norm1_g"].reshape(1, C).astype(jnp.float32),
      p["norm1_b"].reshape(1, C).astype(jnp.float32),
      scale)

    # un-window, un-roll, crop padding (token permutation; residual/LN already applied in-kernel)
    out = out.reshape(B, nWh, nWw, ws, ws, C).transpose(0, 1, 3, 2, 4, 5).reshape(B, pH, pW, C)
    if sh or sw:
        out = jnp.roll(out, shift=(sh, sw), axis=(1, 2))
    return out[:, :H, :W, :]


# ----------------------------------------------------------------------------
# SwinV2 building blocks
# ----------------------------------------------------------------------------

def swin_block_v2(x, p, ws, shift, num_heads):
    # post-norm block; dropout / stochastic-depth are identity at inference
    x = shifted_window_attention_block(x, p, ws, shift, num_heads)
    x = mlp_block(x, p["mlp_w1"], p["mlp_b1"], p["mlp_w2"], p["mlp_b2"],
                  p["norm2_g"], p["norm2_b"])
    return x


def patch_merging_v2(x, p):
    B, H, W, C = x.shape
    x = jnp.pad(x, ((0, 0), (0, H % 2), (0, W % 2), (0, 0)))
    x0 = x[:, 0::2, 0::2, :]
    x1 = x[:, 1::2, 0::2, :]
    x2 = x[:, 0::2, 1::2, :]
    x3 = x[:, 1::2, 1::2, :]
    x = jnp.concatenate([x0, x1, x2, x3], axis=-1)          # (B, H/2, W/2, 4C)
    # Linear(4C -> 2C, no bias) + LayerNorm fused in one kernel
    return linear_layernorm(x, p["red_w"], None, p["norm_g"], p["norm_b"])


def swinv2_forward(x_nchw, params, cfg):
    P = cfg["patch_size"]
    ws = cfg["window_size"]
    ed = cfg["embed_dim"]
    B, Cin, H, W = x_nchw.shape
    # --- features[0]: Conv(k=P, s=P) as matmul + Permute + LayerNorm (single fused kernel) ---
    Hp, Wp = H // P, W // P
    x = x_nchw.reshape(B, Cin, Hp, P, Wp, P).transpose(0, 2, 4, 1, 3, 5)
    x = x.reshape(B, Hp, Wp, Cin * P * P)
    w = params["patch"]["conv_w"].reshape(ed, Cin * P * P).T
    x = linear_layernorm(x, w, params["patch"]["conv_b"],
                         params["patch"]["norm_g"], params["patch"]["norm_b"])
    # --- stages ---
    for si, stage in enumerate(params["stages"]):
        nH = cfg["num_heads"][si]
        for bi, blk in enumerate(stage["blocks"]):
            shift = 0 if bi % 2 == 0 else ws // 2
            x = swin_block_v2(x, blk, ws, shift, nH)
        if stage["downsample"] is not None:
            x = patch_merging_v2(x, stage["downsample"])
    # --- model.norm + model.permute ---
    x = layernorm(x, params["norm_g"], params["norm_b"])
    return jnp.transpose(x, (0, 3, 1, 2))


# ----------------------------------------------------------------------------
# Deterministic synthetic parameter init
# ----------------------------------------------------------------------------

CFG = dict(patch_size=4, embed_dim=32, depths=(2, 2), num_heads=(2, 4),
           window_size=4, mlp_ratio=4.0, in_chans=3, cpb_hidden=512)


def init_params(key, cfg):
    keys = iter(jax.random.split(key, 512))

    def nrm(shape, std=0.02):
        return jax.random.normal(next(keys), shape, jnp.float32) * std

    ws = cfg["window_size"]
    table, idx = make_rel_tables(ws)

    def init_block(dim, nH):
        hid = int(dim * cfg["mlp_ratio"])
        return dict(
            qkv_w=nrm((dim, 3 * dim)),
            # V2 zeros the k-bias third of the qkv bias
            qkv_b=jnp.concatenate([nrm((dim,)), jnp.zeros((dim,), jnp.float32), nrm((dim,))]),
            proj_w=nrm((dim, dim)),
            proj_b=jnp.zeros((dim,), jnp.float32),
            logit_scale=jnp.full((nH, 1, 1), math.log(10.0), jnp.float32),
            cpb_w1=nrm((2, cfg["cpb_hidden"])),
            cpb_b1=jnp.zeros((cfg["cpb_hidden"],), jnp.float32),
            cpb_w2=nrm((cfg["cpb_hidden"], nH)),
            norm1_g=jnp.ones((dim,), jnp.float32), norm1_b=jnp.zeros((dim,), jnp.float32),
            mlp_w1=nrm((dim, hid)), mlp_b1=jnp.zeros((hid,), jnp.float32),
            mlp_w2=nrm((hid, dim)), mlp_b2=jnp.zeros((dim,), jnp.float32),
            norm2_g=jnp.ones((dim,), jnp.float32), norm2_b=jnp.zeros((dim,), jnp.float32),
            rel_coords_table=table, rel_pos_index=idx,
        )

    ed, Cin, P = cfg["embed_dim"], cfg["in_chans"], cfg["patch_size"]
    params = dict(
        patch=dict(conv_w=nrm((ed, Cin, P, P)), conv_b=jnp.zeros((ed,), jnp.float32),
                   norm_g=jnp.ones((ed,), jnp.float32), norm_b=jnp.zeros((ed,), jnp.float32)),
        stages=[],
    )
    n_stages = len(cfg["depths"])
    for si, depth in enumerate(cfg["depths"]):
        dim = ed * (2 ** si)
        nH = cfg["num_heads"][si]
        blocks = [init_block(dim, nH) for _ in range(depth)]
        if si < n_stages - 1:
            downsample = dict(red_w=nrm((4 * dim, 2 * dim)),
                              norm_g=jnp.ones((2 * dim,), jnp.float32),
                              norm_b=jnp.zeros((2 * dim,), jnp.float32))
        else:
            downsample = None
        params["stages"].append(dict(blocks=blocks, downsample=downsample))
    c_final = ed * (2 ** (n_stages - 1))
    params["norm_g"] = jnp.ones((c_final,), jnp.float32)
    params["norm_b"] = jnp.zeros((c_final,), jnp.float32)
    return params


# ----------------------------------------------------------------------------
# Main
# ----------------------------------------------------------------------------

if __name__ == "__main__":
    key = jax.random.PRNGKey(0)
    pkey, xkey = jax.random.split(key)
    params = init_params(pkey, CFG)
    x = jax.random.normal(xkey, (2, 3, 32, 32), jnp.float32)   # NCHW, like the PyTorch module

    fwd = jax.jit(lambda xx, pp: swinv2_forward(xx, pp, CFG))
    out = fwd(x, params)
    jax.block_until_ready(out)

    expected = (2, CFG["embed_dim"] * 2 ** (len(CFG["depths"]) - 1), 32 // 8, 32 // 8)
    assert out.shape == expected, (out.shape, expected)
    assert out.dtype == jnp.float32
    assert bool(jnp.all(jnp.isfinite(out)))
    print("KERNEL_OK")
</pallas_src>

<mosaic_0001>
module attributes {stable_mosaic.version = 11 : i64} {
  func.func @_linear_ln_kernel(%arg0: i32, %arg1: memref<128x48xbf16, #tpu.memory_space<vmem>>, %arg2: memref<48x32xbf16, #tpu.memory_space<vmem>>, %arg3: memref<1x32xf32, #tpu.memory_space<vmem>>, %arg4: memref<1x32xf32, #tpu.memory_space<vmem>>, %arg5: memref<1x32xf32, #tpu.memory_space<vmem>>, %arg6: memref<128x32xbf16, #tpu.memory_space<vmem>>) attributes {dimension_semantics = [#tpu.dimension_semantics<parallel>], iteration_bounds = array<i64: 1>, scalar_prefetch = 0 : i64, scratch_operands = 0 : i64, tpu.core_type = #tpu.core_type<tc>, window_params = [{transform_indices = @transform_0, window_bounds = array<i64: 128, 48>}, {pipeline_mode = #tpu.pipeline_mode<synchronous>, transform_indices = @transform_1, window_bounds = array<i64: 48, 32>}, {pipeline_mode = #tpu.pipeline_mode<synchronous>, transform_indices = @transform_2, window_bounds = array<i64: 1, 32>}, {pipeline_mode = #tpu.pipeline_mode<synchronous>, transform_indices = @transform_3, window_bounds = array<i64: 1, 32>}, {pipeline_mode = #tpu.pipeline_mode<synchronous>, transform_indices = @transform_4, window_bounds = array<i64: 1, 32>}, {transform_indices = @transform_5, window_bounds = array<i64: 128, 32>}]} {
    %c0 = arith.constant 0 : index
    %c0_0 = arith.constant 0 : index
    %0 = vector.load %arg1[%c0, %c0_0] : memref<128x48xbf16, #tpu.memory_space<vmem>>, vector<128x48xbf16>
    %c0_1 = arith.constant 0 : index
    %c0_2 = arith.constant 0 : index
    %1 = vector.load %arg2[%c0_1, %c0_2] : memref<48x32xbf16, #tpu.memory_space<vmem>>, vector<48x32xbf16>
    %cst = arith.constant dense<0.000000e+00> : vector<128x32xf32>
    %2 = tpu.matmul %0, %1, %cst {dimension_numbers = #tpu.dot_dimension_numbers<[1], [0], [0], [1], [0, 0, 1, 1], [], []>} : vector<128x48xbf16>, vector<48x32xbf16>, vector<128x32xf32> -> vector<128x32xf32>
    %c0_3 = arith.constant 0 : index
    %c0_4 = arith.constant 0 : index
    %3 = vector.load %arg3[%c0_3, %c0_4] : memref<1x32xf32, #tpu.memory_space<vmem>>, vector<1x32xf32>
    %4 = vector.broadcast %3 : vector<1x32xf32> to vector<128x32xf32>
    %5 = arith.addf %2, %4 : vector<128x32xf32>
    %cst_5 = arith.constant dense<0.000000e+00> : vector<128xf32>
    %6 = vector.multi_reduction <add>, %5, %cst_5 [1] : vector<128x32xf32> to vector<128xf32>
    %7 = vector.shape_cast %6 : vector<128xf32> to vector<128x1xf32>
    %cst_6 = arith.constant 3.200000e+01 : f32
    %8 = vector.broadcast %cst_6 : f32 to vector<128x1xf32>
    %9 = arith.divf %7, %8 : vector<128x1xf32>
    %10 = vector.broadcast %9 : vector<128x1xf32> to vector<128x32xf32>
    %11 = arith.subf %5, %10 : vector<128x32xf32>
    %12 = arith.mulf %11, %11 : vector<128x32xf32>
    %cst_7 = arith.constant dense<0.000000e+00> : vector<128xf32>
    %13 = vector.multi_reduction <add>, %12, %cst_7 [1] : vector<128x32xf32> to vector<128xf32>
    %14 = vector.shape_cast %13 : vector<128xf32> to vector<128x1xf32>
    %cst_8 = arith.constant 3.200000e+01 : f32
    %15 = vector.broadcast %cst_8 : f32 to vector<128x1xf32>
    %16 = arith.divf %14, %15 : vector<128x1xf32>
    %17 = vector.broadcast %9 : vector<128x1xf32> to vector<128x32xf32>
    %18 = arith.subf %5, %17 : vector<128x32xf32>
    %cst_9 = arith.constant 9.99999974E-6 : f32
    %19 = vector.broadcast %cst_9 : f32 to vector<128x1xf32>
    %20 = arith.addf %16, %19 : vector<128x1xf32>
    %21 = math.rsqrt %20 : vector<128x1xf32>
    %22 = vector.broadcast %21 : vector<128x1xf32> to vector<128x32xf32>
    %23 = arith.mulf %18, %22 : vector<128x32xf32>
    %c0_10 = arith.constant 0 : index
    %c0_11 = arith.constant 0 : index
    %24 = vector.load %arg4[%c0_10, %c0_11] : memref<1x32xf32, #tpu.memory_space<vmem>>, vector<1x32xf32>
    %25 = vector.broadcast %24 : vector<1x32xf32> to vector<128x32xf32>
    %26 = arith.mulf %23, %25 : vector<128x32xf32>
    %c0_12 = arith.constant 0 : index
    %c0_13 = arith.constant 0 : index
    %27 = vector.load %arg5[%c0_12, %c0_13] : memref<1x32xf32, #tpu.memory_space<vmem>>, vector<1x32xf32>
    %28 = vector.broadcast %27 : vector<1x32xf32> to vector<128x32xf32>
    %29 = arith.addf %26, %28 : vector<128x32xf32>
    %30 = arith.truncf %29 : vector<128x32xf32> to vector<128x32xbf16>
    %c0_14 = arith.constant 0 : index
    %c0_15 = arith.constant 0 : index
    %31 = vector.load %arg6[%c0_14, %c0_15] : memref<128x32xbf16, #tpu.memory_space<vmem>>, vector<128x32xbf16>
    tpu.vector_store %arg6[%c0_14, %c0_15], %30 {strides = array<i32>} : memref<128x32xbf16, #tpu.memory_space<vmem>>, vector<128x32xbf16>,
    return
  }
  func.func @transform_0(%arg0: i32) -> (i32, i32) {
    %c0_i32 = arith.constant 0 : i32
    %c0_i32_0 = arith.constant 0 : i32
    return %arg0, %c0_i32 : i32, i32
  }
  func.func @transform_1(%arg0: i32) -> (i32, i32) {
    %c0_i32 = arith.constant 0 : i32
    %c0_i32_0 = arith.constant 0 : i32
    %c0_i32_1 = arith.constant 0 : i32
    return %c0_i32, %c0_i32_0 : i32, i32
  }
  func.func @transform_2(%arg0: i32) -> (i32, i32) {
    %c0_i32 = arith.constant 0 : i32
    %c0_i32_0 = arith.constant 0 : i32
    %c0_i32_1 = arith.constant 0 : i32
    return %c0_i32, %c0_i32_0 : i32, i32
  }
  func.func @transform_3(%arg0: i32) -> (i32, i32) {
    %c0_i32 = arith.constant 0 : i32
    %c0_i32_0 = arith.constant 0 : i32
    %c0_i32_1 = arith.constant 0 : i32
    return %c0_i32, %c0_i32_0 : i32, i32
  }
  func.func @transform_4(%arg0: i32) -> (i32, i32) {
    %c0_i32 = arith.constant 0 : i32
    %c0_i32_0 = arith.constant 0 : i32
    %c0_i32_1 = arith.constant 0 : i32
    return %c0_i32, %c0_i32_0 : i32, i32
  }
  func.func @transform_5(%arg0: i32) -> (i32, i32) {
    %c0_i32 = arith.constant 0 : i32
    %c0_i32_0 = arith.constant 0 : i32
    return %arg0, %c0_i32 : i32, i32
  }
}

module attributes {stable_mosaic.version = 11 : i64} {
  func.func @_win_attn_kernel(%arg0: i32, %arg1: i32, %arg2: memref<1x4x16x32xbf16, #tpu.memory_space<vmem>>, %arg3: memref<32x96xbf16, #tpu.memory_space<vmem>>, %arg4: memref<1x96xf32, #tpu.memory_space<vmem>>, %arg5: memref<32x32xbf16, #tpu.memory_space<vmem>>, %arg6: memref<1x32xf32, #tpu.memory_space<vmem>>, %arg7: memref<2x16x16xf32, #tpu.memory_space<vmem>>, %arg8: memref<4x16x16xf32, #tpu.memory_space<vmem>>, %arg9: memref<1x32xf32, #tpu.memory_space<vmem>>, %arg10: memref<1x32xf32, #tpu.memory_space<vmem>>, %arg11: memref<2x1x1xf32, #tpu.memory_space<vmem>>, %arg12: memref<1x4x16x32xbf16, #tpu.memory_space<vmem>>) attributes {dimension_semantics = [#tpu.dimension_semantics<parallel>, #tpu.dimension_semantics<parallel>], iteration_bounds = array<i64: 2, 1>, scalar_prefetch = 0 : i64, scratch_operands = 0 : i64, tpu.core_type = #tpu.core_type<tc>, window_params = [{transform_indices = @transform_0, window_bounds = array<i64: 1, 4, 16, 32>}, {pipeline_mode = #tpu.pipeline_mode<synchronous>, transform_indices = @transform_1, window_bounds = array<i64: 32, 96>}, {pipeline_mode = #tpu.pipeline_mode<synchronous>, transform_indices = @transform_2, window_bounds = array<i64: 1, 96>}, {pipeline_mode = #tpu.pipeline_mode<synchronous>, transform_indices = @transform_3, window_bounds = array<i64: 32, 32>}, {pipeline_mode = #tpu.pipeline_mode<synchronous>, transform_indices = @transform_4, window_bounds = array<i64: 1, 32>}, {pipeline_mode = #tpu.pipeline_mode<synchronous>, transform_indices = @transform_5, window_bounds = array<i64: 2, 16, 16>}, {transform_indices = @transform_6, window_bounds = array<i64: 4, 16, 16>}, {pipeline_mode = #tpu.pipeline_mode<synchronous>, transform_indices = @transform_7, window_bounds = array<i64: 1, 32>}, {pipeline_mode = #tpu.pipeline_mode<synchronous>, transform_indices = @transform_8, window_bounds = array<i64: 1, 32>}, {pipeline_mode = #tpu.pipeline_mode<synchronous>, transform_indices = @transform_9, window_bounds = array<i64: 2, 1, 1>}, {transform_indices = @transform_10, window_bounds = array<i64: 1, 4, 16, 32>}]} {
    %c0 = arith.constant 0 : index
    %c0_0 = arith.constant 0 : index
    %c0_1 = arith.constant 0 : index
    %c0_2 = arith.constant 0 : index
    %0 = vector.load %arg2[%c0, %c0_0, %c0_1, %c0_2] : memref<1x4x16x32xbf16, #tpu.memory_space<vmem>>, vector<1x4x16x32xbf16>
    %1 = vector.shape_cast %0 : vector<1x4x16x32xbf16> to vector<4x16x32xbf16>
    %2 = vector.shape_cast %1 : vector<4x16x32xbf16> to vector<64x32xbf16>
    %3 = arith.extf %2 : vector<64x32xbf16> to vector<64x32xf32>
    %c0_3 = arith.constant 0 : index
    %c0_4 = arith.constant 0 : index
    %4 = vector.load %arg3[%c0_3, %c0_4] : memref<32x96xbf16, #tpu.memory_space<vmem>>, vector<32x96xbf16>
    %cst = arith.constant dense<0.000000e+00> : vector<64x96xf32>
    %5 = tpu.matmul %2, %4, %cst {dimension_numbers = #tpu.dot_dimension_numbers<[1], [0], [0], [1], [0, 0, 1, 1], [], []>} : vector<64x32xbf16>, vector<32x96xbf16>, vector<64x96xf32> -> vector<64x96xf32>
    %c0_5 = arith.constant 0 : index
    %c0_6 = arith.constant 0 : index
    %6 = vector.load %arg4[%c0_5, %c0_6] : memref<1x96xf32, #tpu.memory_space<vmem>>, vector<1x96xf32>
    %7 = vector.broadcast %6 : vector<1x96xf32> to vector<64x96xf32>
    %8 = arith.addf %5, %7 : vector<64x96xf32>
    %9 = vector.extract_strided_slice %8 {offsets = [0, 0], sizes = [64, 16], strides = [1, 1]} : vector<64x96xf32> to vector<64x16xf32>
    %10 = vector.extract_strided_slice %8 {offsets = [0, 16], sizes = [64, 16], strides = [1, 1]} : vector<64x96xf32> to vector<64x16xf32>
    %11 = tpu.concatenate %9, %10 in 0 : vector<64x16xf32>, vector<64x16xf32> -> vector<128x16xf32>
    %12 = vector.shape_cast %11 : vector<128x16xf32> to vector<8x16x16xf32>
    %13 = vector.extract_strided_slice %8 {offsets = [0, 32], sizes = [64, 16], strides = [1, 1]} : vector<64x96xf32> to vector<64x16xf32>
    %14 = vector.extract_strided_slice %8 {offsets = [0, 48], sizes = [64, 16], strides = [1, 1]} : vector<64x96xf32> to vector<64x16xf32>
    %15 = tpu.concatenate %13, %14 in 0 : vector<64x16xf32>, vector<64x16xf32> -> vector<128x16xf32>
    %16 = vector.shape_cast %15 : vector<128x16xf32> to vector<8x16x16xf32>
    %17 = vector.extract_strided_slice %8 {offsets = [0, 64], sizes = [64, 16], strides = [1, 1]} : vector<64x96xf32> to vector<64x16xf32>
    %18 = vector.extract_strided_slice %8 {offsets = [0, 80], sizes = [64, 16], strides = [1, 1]} : vector<64x96xf32> to vector<64x16xf32>
    %19 = tpu.concatenate %17, %18 in 0 : vector<64x16xf32>, vector<64x16xf32> -> vector<128x16xf32>
    %20 = vector.shape_cast %19 : vector<128x16xf32> to vector<8x16x16xf32>
    %21 = arith.mulf %12, %12 : vector<8x16x16xf32>
    %cst_7 = arith.constant dense<0.000000e+00> : vector<8x16xf32>
    %22 = vector.multi_reduction <add>, %21, %cst_7 [2] : vector<8x16x16xf32> to vector<8x16xf32>
    %23 = vector.shape_cast %22 : vector<8x16xf32> to vector<8x16x1xf32>
    %cst_8 = arith.constant 1.000000e-24 : f32
    %24 = vector.broadcast %cst_8 : f32 to vector<8x16x1xf32>
    %25 = arith.maximumf %23, %24 : vector<8x16x1xf32>
    %26 = math.rsqrt %25 : vector<8x16x1xf32>
    %27 = vector.broadcast %26 : vector<8x16x1xf32> to vector<8x16x16xf32>
    %28 = arith.mulf %12, %27 : vector<8x16x16xf32>
    %29 = arith.mulf %16, %16 : vector<8x16x16xf32>
    %cst_9 = arith.constant dense<0.000000e+00> : vector<8x16xf32>
    %30 = vector.multi_reduction <add>, %29, %cst_9 [2] : vector<8x16x16xf32> to vector<8x16xf32>
    %31 = vector.shape_cast %30 : vector<8x16xf32> to vector<8x16x1xf32>
    %cst_10 = arith.constant 1.000000e-24 : f32
    %32 = vector.broadcast %cst_10 : f32 to vector<8x16x1xf32>
    %33 = arith.maximumf %31, %32 : vector<8x16x1xf32>
    %34 = math.rsqrt %33 : vector<8x16x1xf32>
    %35 = vector.broadcast %34 : vector<8x16x1xf32> to vector<8x16x16xf32>
    %36 = arith.mulf %16, %35 : vector<8x16x16xf32>
    "tpu.trace_start"() <{level = 10 : i32, message = "bnd,bmd->bnm"}> : () -> ()
    %cst_11 = arith.constant dense<0.000000e+00> : vector<8x16x16xf32>
    %37 = tpu.matmul %28, %36, %cst_11 {dimension_numbers = #tpu.dot_dimension_numbers<[2], [2], [1], [1], [0, 0, 0, 1, 1, 1], [0], [0]>} : vector<8x16x16xf32>, vector<8x16x16xf32>, vector<8x16x16xf32> -> vector<8x16x16xf32>
    "tpu.trace_stop"() : () -> ()
    %38 = vector.shape_cast %37 : vector<8x16x16xf32> to vector<2x4x16x16xf32>
    %c0_12 = arith.constant 0 : index
    %c0_13 = arith.constant 0 : index
    %c0_14 = arith.constant 0 : index
    %39 = vector.load %arg11[%c0_12, %c0_13, %c0_14] : memref<2x1x1xf32, #tpu.memory_space<vmem>>, vector<2x1x1xf32>
    %40 = vector.shape_cast %39 : vector<2x1x1xf32> to vector<2x1x1x1xf32>
    %41 = vector.broadcast %40 : vector<2x1x1x1xf32> to vector<2x4x16x16xf32>
    %42 = arith.mulf %38, %41 : vector<2x4x16x16xf32>
    %c0_15 = arith.constant 0 : index
    %c0_16 = arith.constant 0 : index
    %c0_17 = arith.constant 0 : index
    %43 = vector.load %arg7[%c0_15, %c0_16, %c0_17] : memref<2x16x16xf32, #tpu.memory_space<vmem>>, vector<2x16x16xf32>
    %44 = vector.shape_cast %43 : vector<2x16x16xf32> to vector<2x1x16x16xf32>
    %45 = vector.broadcast %44 : vector<2x1x16x16xf32> to vector<2x4x16x16xf32>
    %46 = arith.addf %42, %45 : vector<2x4x16x16xf32>
    %c0_18 = arith.constant 0 : index
    %c0_19 = arith.constant 0 : index
    %c0_20 = arith.constant 0 : index
    %47 = vector.load %arg8[%c0_18, %c0_19, %c0_20] : memref<4x16x16xf32, #tpu.memory_space<vmem>>, vector<4x16x16xf32>
    %48 = vector.shape_cast %47 : vector<4x16x16xf32> to vector<1x4x16x16xf32>
    %49 = vector.broadcast %48 : vector<1x4x16x16xf32> to vector<2x4x16x16xf32>
    %50 = arith.addf %46, %49 : vector<2x4x16x16xf32>
    %cst_21 = arith.constant dense<0xFF800000> : vector<2x4x16xf32>
    %51 = vector.multi_reduction <maximumf>, %50, %cst_21 [3] : vector<2x4x16x16xf32> to vector<2x4x16xf32>
    %52 = vector.shape_cast %51 : vector<2x4x16xf32> to vector<2x4x16x1xf32>
    %53 = vector.broadcast %52 : vector<2x4x16x1xf32> to vector<2x4x16x16xf32>
    %54 = arith.subf %50, %53 : vector<2x4x16x16xf32>
    %55 = math.exp %54 : vector<2x4x16x16xf32>
    %cst_22 = arith.constant dense<0.000000e+00> : vector<2x4x16xf32>
    %56 = vector.multi_reduction <add>, %55, %cst_22 [3] : vector<2x4x16x16xf32> to vector<2x4x16xf32>
    %57 = vector.shape_cast %56 : vector<2x4x16xf32> to vector<2x4x16x1xf32>
    %58 = tpu.reciprocal %57 {approx = true} : vector<2x4x16x1xf32> -> vector<2x4x16x1xf32>
    %59 = vector.broadcast %58 : vector<2x4x16x1xf32> to vector<2x4x16x16xf32>
    %60 = arith.mulf %55, %59 : vector<2x4x16x16xf32>
    %61 = vector.shape_cast %60 : vector<2x4x16x16xf32> to vector<8x16x16xf32>
    %62 = arith.truncf %61 : vector<8x16x16xf32> to vector<8x16x16xbf16>
    %63 = arith.truncf %20 : vector<8x16x16xf32> to vector<8x16x16xbf16>
    "tpu.trace_start"() <{level = 10 : i32, message = "bnm,bmd->bnd"}> : () -> ()
    %cst_23 = arith.constant dense<0.000000e+00> : vector<8x16x16xf32>
    %64 = tpu.matmul %62, %63, %cst_23 {dimension_numbers = #tpu.dot_dimension_numbers<[2], [1], [1], [2], [0, 0, 0, 1, 1, 2], [0], [0]>} : vector<8x16x16xbf16>, vector<8x16x16xbf16>, vector<8x16x16xf32> -> vector<8x16x16xf32>
    "tpu.trace_stop"() : () -> ()
    %65 = vector.extract_strided_slice %64 {offsets = [0, 0, 0], sizes = [4, 16, 16], strides = [1, 1, 1]} : vector<8x16x16xf32> to vector<4x16x16xf32>
    %66 = vector.shape_cast %65 : vector<4x16x16xf32> to vector<64x16xf32>
    %67 = vector.extract_strided_slice %64 {offsets = [4, 0, 0], sizes = [4, 16, 16], strides = [1, 1, 1]} : vector<8x16x16xf32> to vector<4x16x16xf32>
    %68 = vector.shape_cast %67 : vector<4x16x16xf32> to vector<64x16xf32>
    %69 = tpu.concatenate %66, %68 in 1 : vector<64x16xf32>, vector<64x16xf32> -> vector<64x32xf32>
    %70 = arith.truncf %69 : vector<64x32xf32> to vector<64x32xbf16>
    %c0_24 = arith.constant 0 : index
    %c0_25 = arith.constant 0 : index
    %71 = vector.load %arg5[%c0_24, %c0_25] : memref<32x32xbf16, #tpu.memory_space<vmem>>, vector<32x32xbf16>
    %cst_26 = arith.constant dense<0.000000e+00> : vector<64x32xf32>
    %72 = tpu.matmul %70, %71, %cst_26 {dimension_numbers = #tpu.dot_dimension_numbers<[1], [0], [0], [1], [0, 0, 1, 1], [], []>} : vector<64x32xbf16>, vector<32x32xbf16>, vector<64x32xf32> -> vector<64x32xf32>
    %c0_27 = arith.constant 0 : index
    %c0_28 = arith.constant 0 : index
    %73 = vector.load %arg6[%c0_27, %c0_28] : memref<1x32xf32, #tpu.memory_space<vmem>>, vector<1x32xf32>
    %74 = vector.broadcast %73 : vector<1x32xf32> to vector<64x32xf32>
    %75 = arith.addf %72, %74 : vector<64x32xf32>
    %cst_29 = arith.constant dense<0.000000e+00> : vector<64xf32>
    %76 = vector.multi_reduction <add>, %75, %cst_29 [1] : vector<64x32xf32> to vector<64xf32>
    %77 = vector.shape_cast %76 : vector<64xf32> to vector<64x1xf32>
    %cst_30 = arith.constant 3.200000e+01 : f32
    %78 = vector.broadcast %cst_30 : f32 to vector<64x1xf32>
    %79 = arith.divf %77, %78 : vector<64x1xf32>
    %80 = vector.broadcast %79 : vector<64x1xf32> to vector<64x32xf32>
    %81 = arith.subf %75, %80 : vector<64x32xf32>
    %82 = arith.mulf %81, %81 : vector<64x32xf32>
    %cst_31 = arith.constant dense<0.000000e+00> : vector<64xf32>
    %83 = vector.multi_reduction <add>, %82, %cst_31 [1] : vector<64x32xf32> to vector<64xf32>
    %84 = vector.shape_cast %83 : vector<64xf32> to vector<64x1xf32>
    %cst_32 = arith.constant 3.200000e+01 : f32
    %85 = vector.broadcast %cst_32 : f32 to vector<64x1xf32>
    %86 = arith.divf %84, %85 : vector<64x1xf32>
    %87 = vector.broadcast %79 : vector<64x1xf32> to vector<64x32xf32>
    %88 = arith.subf %75, %87 : vector<64x32xf32>
    %cst_33 = arith.constant 9.99999974E-6 : f32
    %89 = vector.broadcast %cst_33 : f32 to vector<64x1xf32>
    %90 = arith.addf %86, %89 : vector<64x1xf32>
    %91 = math.rsqrt %90 : vector<64x1xf32>
    %92 = vector.broadcast %91 : vector<64x1xf32> to vector<64x32xf32>
    %93 = arith.mulf %88, %92 : vector<64x32xf32>
    %c0_34 = arith.constant 0 : index
    %c0_35 = arith.constant 0 : index
    %94 = vector.load %arg9[%c0_34, %c0_35] : memref<1x32xf32, #tpu.memory_space<vmem>>, vector<1x32xf32>
    %95 = vector.broadcast %94 : vector<1x32xf32> to vector<64x32xf32>
    %96 = arith.mulf %93, %95 : vector<64x32xf32>
    %c0_36 = arith.constant 0 : index
    %c0_37 = arith.constant 0 : index
    %97 = vector.load %arg10[%c0_36, %c0_37] : memref<1x32xf32, #tpu.memory_space<vmem>>, vector<1x32xf32>
    %98 = vector.broadcast %97 : vector<1x32xf32> to vector<64x32xf32>
    %99 = arith.addf %96, %98 : vector<64x32xf32>
    %100 = arith.addf %3, %99 : vector<64x32xf32>
    %101 = vector.shape_cast %100 : vector<64x32xf32> to vector<4x16x32xf32>
    %102 = arith.truncf %101 : vector<4x16x32xf32> to vector<4x16x32xbf16>
    %c0_38 = arith.constant 0 : index
    %c0_39 = arith.constant 0 : index
    %c0_40 = arith.constant 0 : index
    %c0_41 = arith.constant 0 : index
    %103 = vector.load %arg12[%c0_38, %c0_39, %c0_40, %c0_41] : memref<1x4x16x32xbf16, #tpu.memory_space<vmem>>, vector<1x4x16x32xbf16>
    %104 = vector.shape_cast %103 : vector<1x4x16x32xbf16> to vector<4x16x32xbf16>
    %105 = vector.shape_cast %102 : vector<4x16x32xbf16> to vector<1x4x16x32xbf16>
    tpu.vector_store %arg12[%c0_38, %c0_39, %c0_40, %c0_41], %105 {strides = array<i32>} : memref<1x4x16x32xbf16, #tpu.memory_space<vmem>>, vector<1x4x16x32xbf16>,
    return
  }
  func.func @transform_0(%arg0: i32, %arg1: i32) -> (i32, i32, i32, i32) {
    %c0_i32 = arith.constant 0 : i32
    %c0_i32_0 = arith.constant 0 : i32
    %c0_i32_1 = arith.constant 0 : i32
    return %arg0, %arg1, %c0_i32, %c0_i32_0 : i32, i32, i32, i32
  }
  func.func @transform_1(%arg0: i32, %arg1: i32) -> (i32, i32) {
    %c0_i32 = arith.constant 0 : i32
    %c0_i32_0 = arith.constant 0 : i32
    %c0_i32_1 = arith.constant 0 : i32
    return %c0_i32, %c0_i32_0 : i32, i32
  }
  func.func @transform_2(%arg0: i32, %arg1: i32) -> (i32, i32) {
    %c0_i32 = arith.constant 0 : i32
    %c0_i32_0 = arith.constant 0 : i32
    %c0_i32_1 = arith.constant 0 : i32
    return %c0_i32, %c0_i32_0 : i32, i32
  }
  func.func @transform_3(%arg0: i32, %arg1: i32) -> (i32, i32) {
    %c0_i32 = arith.constant 0 : i32
    %c0_i32_0 = arith.constant 0 : i32
    %c0_i32_1 = arith.constant 0 : i32
    return %c0_i32, %c0_i32_0 : i32, i32
  }
  func.func @transform_4(%arg0: i32, %arg1: i32) -> (i32, i32) {
    %c0_i32 = arith.constant 0 : i32
    %c0_i32_0 = arith.constant 0 : i32
    %c0_i32_1 = arith.constant 0 : i32
    return %c0_i32, %c0_i32_0 : i32, i32
  }
  func.func @transform_5(%arg0: i32, %arg1: i32) -> (i32, i32, i32) {
    %c0_i32 = arith.constant 0 : i32
    %c0_i32_0 = arith.constant 0 : i32
    %c0_i32_1 = arith.constant 0 : i32
    %c0_i32_2 = arith.constant 0 : i32
    return %c0_i32, %c0_i32_0, %c0_i32_1 : i32, i32, i32
  }
  func.func @transform_6(%arg0: i32, %arg1: i32) -> (i32, i32, i32) {
    %c0_i32 = arith.constant 0 : i32
    %c0_i32_0 = arith.constant 0 : i32
    %c0_i32_1 = arith.constant 0 : i32
    return %arg1, %c0_i32, %c0_i32_0 : i32, i32, i32
  }
  func.func @transform_7(%arg0: i32, %arg1: i32) -> (i32, i32) {
    %c0_i32 = arith.constant 0 : i32
    %c0_i32_0 = arith.constant 0 : i32
    %c0_i32_1 = arith.constant 0 : i32
    return %c0_i32, %c0_i32_0 : i32, i32
  }
  func.func @transform_8(%arg0: i32, %arg1: i32) -> (i32, i32) {
    %c0_i32 = arith.constant 0 : i32
    %c0_i32_0 = arith.constant 0 : i32
    %c0_i32_1 = arith.constant 0 : i32
    return %c0_i32, %c0_i32_0 : i32, i32
  }
  func.func @transform_9(%arg0: i32, %arg1: i32) -> (i32, i32, i32) {
    %c0_i32 = arith.constant 0 : i32
    %c0_i32_0 = arith.constant 0 : i32
    %c0_i32_1 = arith.constant 0 : i32
    %c0_i32_2 = arith.constant 0 : i32
    return %c0_i32, %c0_i32_0, %c0_i32_1 : i32, i32, i32
  }
  func.func @transform_10(%arg0: i32, %arg1: i32) -> (i32, i32, i32, i32) {
    %c0_i32 = arith.constant 0 : i32
    %c0_i32_0 = arith.constant 0 : i32
    %c0_i32_1 = arith.constant 0 : i32
    return %arg0, %arg1, %c0_i32, %c0_i32_0 : i32, i32, i32, i32
  }
}

module attributes {stable_mosaic.version = 11 : i64} {
  func.func @_mlp_block_kernel(%arg0: i32, %arg1: memref<128x32xbf16, #tpu.memory_space<vmem>>, %arg2: memref<32x128xbf16, #tpu.memory_space<vmem>>, %arg3: memref<1x128xf32, #tpu.memory_space<vmem>>, %arg4: memref<128x32xbf16, #tpu.memory_space<vmem>>, %arg5: memref<1x32xf32, #tpu.memory_space<vmem>>, %arg6: memref<1x32xf32, #tpu.memory_space<vmem>>, %arg7: memref<1x32xf32, #tpu.memory_space<vmem>>, %arg8: memref<128x32xbf16, #tpu.memory_space<vmem>>) attributes {dimension_semantics = [#tpu.dimension_semantics<parallel>], iteration_bounds = array<i64: 1>, scalar_prefetch = 0 : i64, scratch_operands = 0 : i64, tpu.core_type = #tpu.core_type<tc>, window_params = [{transform_indices = @transform_0, window_bounds = array<i64: 128, 32>}, {pipeline_mode = #tpu.pipeline_mode<synchronous>, transform_indices = @transform_1, window_bounds = array<i64: 32, 128>}, {pipeline_mode = #tpu.pipeline_mode<synchronous>, transform_indices = @transform_2, window_bounds = array<i64: 1, 128>}, {pipeline_mode = #tpu.pipeline_mode<synchronous>, transform_indices = @transform_3, window_bounds = array<i64: 128, 32>}, {pipeline_mode = #tpu.pipeline_mode<synchronous>, transform_indices = @transform_4, window_bounds = array<i64: 1, 32>}, {pipeline_mode = #tpu.pipeline_mode<synchronous>, transform_indices = @transform_5, window_bounds = array<i64: 1, 32>}, {pipeline_mode = #tpu.pipeline_mode<synchronous>, transform_indices = @transform_6, window_bounds = array<i64: 1, 32>}, {transform_indices = @transform_7, window_bounds = array<i64: 128, 32>}]} {
    %c0 = arith.constant 0 : index
    %c0_0 = arith.constant 0 : index
    %0 = vector.load %arg1[%c0, %c0_0] : memref<128x32xbf16, #tpu.memory_space<vmem>>, vector<128x32xbf16>
    %1 = arith.extf %0 : vector<128x32xbf16> to vector<128x32xf32>
    %c0_1 = arith.constant 0 : index
    %c0_2 = arith.constant 0 : index
    %2 = vector.load %arg2[%c0_1, %c0_2] : memref<32x128xbf16, #tpu.memory_space<vmem>>, vector<32x128xbf16>
    %cst = arith.constant dense<0.000000e+00> : vector<128x128xf32>
    %3 = tpu.matmul %0, %2, %cst {dimension_numbers = #tpu.dot_dimension_numbers<[1], [0], [0], [1], [0, 0, 1, 1], [], []>} : vector<128x32xbf16>, vector<32x128xbf16>, vector<128x128xf32> -> vector<128x128xf32>
    %c0_3 = arith.constant 0 : index
    %c0_4 = arith.constant 0 : index
    %4 = vector.load %arg3[%c0_3, %c0_4] : memref<1x128xf32, #tpu.memory_space<vmem>>, vector<1x128xf32>
    %5 = vector.broadcast %4 : vector<1x128xf32> to vector<128x128xf32>
    %6 = arith.addf %3, %5 : vector<128x128xf32>
    %cst_5 = arith.constant 5.000000e-01 : f32
    %7 = vector.broadcast %cst_5 : f32 to vector<128x128xf32>
    %8 = arith.mulf %7, %6 : vector<128x128xf32>
    %cst_6 = arith.constant 4.471500e-02 : f32
    %9 = vector.broadcast %cst_6 : f32 to vector<128x128xf32>
    %10 = arith.mulf %9, %6 : vector<128x128xf32>
    %11 = arith.mulf %10, %6 : vector<128x128xf32>
    %12 = arith.mulf %11, %6 : vector<128x128xf32>
    %13 = arith.addf %6, %12 : vector<128x128xf32>
    %cst_7 = arith.constant 0.797884583 : f32
    %14 = vector.broadcast %cst_7 : f32 to vector<128x128xf32>
    %15 = arith.mulf %14, %13 : vector<128x128xf32>
    %16 = math.tanh %15 : vector<128x128xf32>
    %cst_8 = arith.constant 1.000000e+00 : f32
    %17 = vector.broadcast %cst_8 : f32 to vector<128x128xf32>
    %18 = arith.addf %17, %16 : vector<128x128xf32>
    %19 = arith.mulf %8, %18 : vector<128x128xf32>
    %20 = arith.truncf %19 : vector<128x128xf32> to vector<128x128xbf16>
    %c0_9 = arith.constant 0 : index
    %c0_10 = arith.constant 0 : index
    %21 = vector.load %arg4[%c0_9, %c0_10] : memref<128x32xbf16, #tpu.memory_space<vmem>>, vector<128x32xbf16>
    %cst_11 = arith.constant dense<0.000000e+00> : vector<128x32xf32>
    %22 = tpu.matmul %20, %21, %cst_11 {dimension_numbers = #tpu.dot_dimension_numbers<[1], [0], [0], [1], [0, 0, 1, 1], [], []>} : vector<128x128xbf16>, vector<128x32xbf16>, vector<128x32xf32> -> vector<128x32xf32>
    %c0_12 = arith.constant 0 : index
    %c0_13 = arith.constant 0 : index
    %23 = vector.load %arg5[%c0_12, %c0_13] : memref<1x32xf32, #tpu.memory_space<vmem>>, vector<1x32xf32>
    %24 = vector.broadcast %23 : vector<1x32xf32> to vector<128x32xf32>
    %25 = arith.addf %22, %24 : vector<128x32xf32>
    %cst_14 = arith.constant dense<0.000000e+00> : vector<128xf32>
    %26 = vector.multi_reduction <add>, %25, %cst_14 [1] : vector<128x32xf32> to vector<128xf32>
    %27 = vector.shape_cast %26 : vector<128xf32> to vector<128x1xf32>
    %cst_15 = arith.constant 3.200000e+01 : f32
    %28 = vector.broadcast %cst_15 : f32 to vector<128x1xf32>
    %29 = arith.divf %27, %28 : vector<128x1xf32>
    %30 = vector.broadcast %29 : vector<128x1xf32> to vector<128x32xf32>
    %31 = arith.subf %25, %30 : vector<128x32xf32>
    %32 = arith.mulf %31, %31 : vector<128x32xf32>
    %cst_16 = arith.constant dense<0.000000e+00> : vector<128xf32>
    %33 = vector.multi_reduction <add>, %32, %cst_16 [1] : vector<128x32xf32> to vector<128xf32>
    %34 = vector.shape_cast %33 : vector<128xf32> to vector<128x1xf32>
    %cst_17 = arith.constant 3.200000e+01 : f32
    %35 = vector.broadcast %cst_17 : f32 to vector<128x1xf32>
    %36 = arith.divf %34, %35 : vector<128x1xf32>
    %37 = vector.broadcast %29 : vector<128x1xf32> to vector<128x32xf32>
    %38 = arith.subf %25, %37 : vector<128x32xf32>
    %cst_18 = arith.constant 9.99999974E-6 : f32
    %39 = vector.broadcast %cst_18 : f32 to vector<128x1xf32>
    %40 = arith.addf %36, %39 : vector<128x1xf32>
    %41 = math.rsqrt %40 : vector<128x1xf32>
    %42 = vector.broadcast %41 : vector<128x1xf32> to vector<128x32xf32>
    %43 = arith.mulf %38, %42 : vector<128x32xf32>
    %c0_19 = arith.constant 0 : index
    %c0_20 = arith.constant 0 : index
    %44 = vector.load %arg6[%c0_19, %c0_20] : memref<1x32xf32, #tpu.memory_space<vmem>>, vector<1x32xf32>
    %45 = vector.broadcast %44 : vector<1x32xf32> to vector<128x32xf32>
    %46 = arith.mulf %43, %45 : vector<128x32xf32>
    %c0_21 = arith.constant 0 : index
    %c0_22 = arith.constant 0 : index
    %47 = vector.load %arg7[%c0_21, %c0_22] : memref<1x32xf32, #tpu.memory_space<vmem>>, vector<1x32xf32>
    %48 = vector.broadcast %47 : vector<1x32xf32> to vector<128x32xf32>
    %49 = arith.addf %46, %48 : vector<128x32xf32>
    %50 = arith.addf %1, %49 : vector<128x32xf32>
    %51 = arith.truncf %50 : vector<128x32xf32> to vector<128x32xbf16>
    %c0_23 = arith.constant 0 : index
    %c0_24 = arith.constant 0 : index
    %52 = vector.load %arg8[%c0_23, %c0_24] : memref<128x32xbf16, #tpu.memory_space<vmem>>, vector<128x32xbf16>
    tpu.vector_store %arg8[%c0_23, %c0_24], %51 {strides = array<i32>} : memref<128x32xbf16, #tpu.memory_space<vmem>>, vector<128x32xbf16>,
    return
  }
  func.func @transform_0(%arg0: i32) -> (i32, i32) {
    %c0_i32 = arith.constant 0 : i32
    %c0_i32_0 = arith.constant 0 : i32
    return %arg0, %c0_i32 : i32, i32
  }
  func.func @transform_1(%arg0: i32) -> (i32, i32) {
    %c0_i32 = arith.constant 0 : i32
    %c0_i32_0 = arith.constant 0 : i32
    %c0_i32_1 = arith.constant 0 : i32
    return %c0_i32, %c0_i32_0 : i32, i32
  }
  func.func @transform_2(%arg0: i32) -> (i32, i32) {
    %c0_i32 = arith.constant 0 : i32
    %c0_i32_0 = arith.constant 0 : i32
    %c0_i32_1 = arith.constant 0 : i32
    return %c0_i32, %c0_i32_0 : i32, i32
  }
  func.func @transform_3(%arg0: i32) -> (i32, i32) {
    %c0_i32 = arith.constant 0 : i32
    %c0_i32_0 = arith.constant 0 : i32
    %c0_i32_1 = arith.constant 0 : i32
    return %c0_i32, %c0_i32_0 : i32, i32
  }
  func.func @transform_4(%arg0: i32) -> (i32, i32) {
    %c0_i32 = arith.constant 0 : i32
    %c0_i32_0 = arith.constant 0 : i32
    %c0_i32_1 = arith.constant 0 : i32
    return %c0_i32, %c0_i32_0 : i32, i32
  }
  func.func @transform_5(%arg0: i32) -> (i32, i32) {
    %c0_i32 = arith.constant 0 : i32
    %c0_i32_0 = arith.constant 0 : i32
    %c0_i32_1 = arith.constant 0 : i32
    return %c0_i32, %c0_i32_0 : i32, i32
  }
  func.func @transform_6(%arg0: i32) -> (i32, i32) {
    %c0_i32 = arith.constant 0 : i32
    %c0_i32_0 = arith.constant 0 : i32
    %c0_i32_1 = arith.constant 0 : i32
    return %c0_i32, %c0_i32_0 : i32, i32
  }
  func.func @transform_7(%arg0: i32) -> (i32, i32) {
    %c0_i32 = arith.constant 0 : i32
    %c0_i32_0 = arith.constant 0 : i32
    return %arg0, %c0_i32 : i32, i32
  }
}

module attributes {stable_mosaic.version = 11 : i64} {
  func.func @_linear_ln_kernel(%arg0: i32, %arg1: memref<32x128xbf16, #tpu.memory_space<vmem>>, %arg2: memref<128x64xbf16, #tpu.memory_space<vmem>>, %arg3: memref<1x64xf32, #tpu.memory_space<vmem>>, %arg4: memref<1x64xf32, #tpu.memory_space<vmem>>, %arg5: memref<1x64xf32, #tpu.memory_space<vmem>>, %arg6: memref<32x64xbf16, #tpu.memory_space<vmem>>) attributes {dimension_semantics = [#tpu.dimension_semantics<parallel>], iteration_bounds = array<i64: 1>, scalar_prefetch = 0 : i64, scratch_operands = 0 : i64, tpu.core_type = #tpu.core_type<tc>, window_params = [{transform_indices = @transform_0, window_bounds = array<i64: 32, 128>}, {pipeline_mode = #tpu.pipeline_mode<synchronous>, transform_indices = @transform_1, window_bounds = array<i64: 128, 64>}, {pipeline_mode = #tpu.pipeline_mode<synchronous>, transform_indices = @transform_2, window_bounds = array<i64: 1, 64>}, {pipeline_mode = #tpu.pipeline_mode<synchronous>, transform_indices = @transform_3, window_bounds = array<i64: 1, 64>}, {pipeline_mode = #tpu.pipeline_mode<synchronous>, transform_indices = @transform_4, window_bounds = array<i64: 1, 64>}, {transform_indices = @transform_5, window_bounds = array<i64: 32, 64>}]} {
    %c0 = arith.constant 0 : index
    %c0_0 = arith.constant 0 : index
    %0 = vector.load %arg1[%c0, %c0_0] : memref<32x128xbf16, #tpu.memory_space<vmem>>, vector<32x128xbf16>
    %c0_1 = arith.constant 0 : index
    %c0_2 = arith.constant 0 : index
    %1 = vector.load %arg2[%c0_1, %c0_2] : memref<128x64xbf16, #tpu.memory_space<vmem>>, vector<128x64xbf16>
    %cst = arith.constant dense<0.000000e+00> : vector<32x64xf32>
    %2 = tpu.matmul %0, %1, %cst {dimension_numbers = #tpu.dot_dimension_numbers<[1], [0], [0], [1], [0, 0, 1, 1], [], []>} : vector<32x128xbf16>, vector<128x64xbf16>, vector<32x64xf32> -> vector<32x64xf32>
    %c0_3 = arith.constant 0 : index
    %c0_4 = arith.constant 0 : index
    %3 = vector.load %arg3[%c0_3, %c0_4] : memref<1x64xf32, #tpu.memory_space<vmem>>, vector<1x64xf32>
    %4 = vector.broadcast %3 : vector<1x64xf32> to vector<32x64xf32>
    %5 = arith.addf %2, %4 : vector<32x64xf32>
    %cst_5 = arith.constant dense<0.000000e+00> : vector<32xf32>
    %6 = vector.multi_reduction <add>, %5, %cst_5 [1] : vector<32x64xf32> to vector<32xf32>
    %7 = vector.shape_cast %6 : vector<32xf32> to vector<32x1xf32>
    %cst_6 = arith.constant 6.400000e+01 : f32
    %8 = vector.broadcast %cst_6 : f32 to vector<32x1xf32>
    %9 = arith.divf %7, %8 : vector<32x1xf32>
    %10 = vector.broadcast %9 : vector<32x1xf32> to vector<32x64xf32>
    %11 = arith.subf %5, %10 : vector<32x64xf32>
    %12 = arith.mulf %11, %11 : vector<32x64xf32>
    %cst_7 = arith.constant dense<0.000000e+00> : vector<32xf32>
    %13 = vector.multi_reduction <add>, %12, %cst_7 [1] : vector<32x64xf32> to vector<32xf32>
    %14 = vector.shape_cast %13 : vector<32xf32> to vector<32x1xf32>
    %cst_8 = arith.constant 6.400000e+01 : f32
    %15 = vector.broadcast %cst_8 : f32 to vector<32x1xf32>
    %16 = arith.divf %14, %15 : vector<32x1xf32>
    %17 = vector.broadcast %9 : vector<32x1xf32> to vector<32x64xf32>
    %18 = arith.subf %5, %17 : vector<32x64xf32>
    %cst_9 = arith.constant 9.99999974E-6 : f32
    %19 = vector.broadcast %cst_9 : f32 to vector<32x1xf32>
    %20 = arith.addf %16, %19 : vector<32x1xf32>
    %21 = math.rsqrt %20 : vector<32x1xf32>
    %22 = vector.broadcast %21 : vector<32x1xf32> to vector<32x64xf32>
    %23 = arith.mulf %18, %22 : vector<32x64xf32>
    %c0_10 = arith.constant 0 : index
    %c0_11 = arith.constant 0 : index
    %24 = vector.load %arg4[%c0_10, %c0_11] : memref<1x64xf32, #tpu.memory_space<vmem>>, vector<1x64xf32>
    %25 = vector.broadcast %24 : vector<1x64xf32> to vector<32x64xf32>
    %26 = arith.mulf %23, %25 : vector<32x64xf32>
    %c0_12 = arith.constant 0 : index
    %c0_13 = arith.constant 0 : index
    %27 = vector.load %arg5[%c0_12, %c0_13] : memref<1x64xf32, #tpu.memory_space<vmem>>, vector<1x64xf32>
    %28 = vector.broadcast %27 : vector<1x64xf32> to vector<32x64xf32>
    %29 = arith.addf %26, %28 : vector<32x64xf32>
    %30 = arith.truncf %29 : vector<32x64xf32> to vector<32x64xbf16>
    %c0_14 = arith.constant 0 : index
    %c0_15 = arith.constant 0 : index
    %31 = vector.load %arg6[%c0_14, %c0_15] : memref<32x64xbf16, #tpu.memory_space<vmem>>, vector<32x64xbf16>
    tpu.vector_store %arg6[%c0_14, %c0_15], %30 {strides = array<i32>} : memref<32x64xbf16, #tpu.memory_space<vmem>>, vector<32x64xbf16>,
    return
  }
  func.func @transform_0(%arg0: i32) -> (i32, i32) {
    %c0_i32 = arith.constant 0 : i32
    %c0_i32_0 = arith.constant 0 : i32
    return %arg0, %c0_i32 : i32, i32
  }
  func.func @transform_1(%arg0: i32) -> (i32, i32) {
    %c0_i32 = arith.constant 0 : i32
    %c0_i32_0 = arith.constant 0 : i32
    %c0_i32_1 = arith.constant 0 : i32
    return %c0_i32, %c0_i32_0 : i32, i32
  }
  func.func @transform_2(%arg0: i32) -> (i32, i32) {
    %c0_i32 = arith.constant 0 : i32
    %c0_i32_0 = arith.constant 0 : i32
    %c0_i32_1 = arith.constant 0 : i32
    return %c0_i32, %c0_i32_0 : i32, i32
  }
  func.func @transform_3(%arg0: i32) -> (i32, i32) {
    %c0_i32 = arith.constant 0 : i32
    %c0_i32_0 = arith.constant 0 : i32
    %c0_i32_1 = arith.constant 0 : i32
    return %c0_i32, %c0_i32_0 : i32, i32
  }
  func.func @transform_4(%arg0: i32) -> (i32, i32) {
    %c0_i32 = arith.constant 0 : i32
    %c0_i32_0 = arith.constant 0 : i32
    %c0_i32_1 = arith.constant 0 : i32
    return %c0_i32, %c0_i32_0 : i32, i32
  }
  func.func @transform_5(%arg0: i32) -> (i32, i32) {
    %c0_i32 = arith.constant 0 : i32
    %c0_i32_0 = arith.constant 0 : i32
    return %arg0, %c0_i32 : i32, i32
  }
}

module attributes {stable_mosaic.version = 11 : i64} {
  func.func @_win_attn_kernel(%arg0: i32, %arg1: i32, %arg2: memref<1x1x16x64xbf16, #tpu.memory_space<vmem>>, %arg3: memref<64x192xbf16, #tpu.memory_space<vmem>>, %arg4: memref<1x192xf32, #tpu.memory_space<vmem>>, %arg5: memref<64x64xbf16, #tpu.memory_space<vmem>>, %arg6: memref<1x64xf32, #tpu.memory_space<vmem>>, %arg7: memref<4x16x16xf32, #tpu.memory_space<vmem>>, %arg8: memref<1x16x16xf32, #tpu.memory_space<vmem>>, %arg9: memref<1x64xf32, #tpu.memory_space<vmem>>, %arg10: memref<1x64xf32, #tpu.memory_space<vmem>>, %arg11: memref<4x1x1xf32, #tpu.memory_space<vmem>>, %arg12: memref<1x1x16x64xbf16, #tpu.memory_space<vmem>>) attributes {dimension_semantics = [#tpu.dimension_semantics<parallel>, #tpu.dimension_semantics<parallel>], iteration_bounds = array<i64: 2, 1>, scalar_prefetch = 0 : i64, scratch_operands = 0 : i64, tpu.core_type = #tpu.core_type<tc>, window_params = [{transform_indices = @transform_0, window_bounds = array<i64: 1, 1, 16, 64>}, {pipeline_mode = #tpu.pipeline_mode<synchronous>, transform_indices = @transform_1, window_bounds = array<i64: 64, 192>}, {pipeline_mode = #tpu.pipeline_mode<synchronous>, transform_indices = @transform_2, window_bounds = array<i64: 1, 192>}, {pipeline_mode = #tpu.pipeline_mode<synchronous>, transform_indices = @transform_3, window_bounds = array<i64: 64, 64>}, {pipeline_mode = #tpu.pipeline_mode<synchronous>, transform_indices = @transform_4, window_bounds = array<i64: 1, 64>}, {pipeline_mode = #tpu.pipeline_mode<synchronous>, transform_indices = @transform_5, window_bounds = array<i64: 4, 16, 16>}, {transform_indices = @transform_6, window_bounds = array<i64: 1, 16, 16>}, {pipeline_mode = #tpu.pipeline_mode<synchronous>, transform_indices = @transform_7, window_bounds = array<i64: 1, 64>}, {pipeline_mode = #tpu.pipeline_mode<synchronous>, transform_indices = @transform_8, window_bounds = array<i64: 1, 64>}, {pipeline_mode = #tpu.pipeline_mode<synchronous>, transform_indices = @transform_9, window_bounds = array<i64: 4, 1, 1>}, {transform_indices = @transform_10, window_bounds = array<i64: 1, 1, 16, 64>}]} {
    %c0 = arith.constant 0 : index
    %c0_0 = arith.constant 0 : index
    %c0_1 = arith.constant 0 : index
    %c0_2 = arith.constant 0 : index
    %0 = vector.load %arg2[%c0, %c0_0, %c0_1, %c0_2] : memref<1x1x16x64xbf16, #tpu.memory_space<vmem>>, vector<1x1x16x64xbf16>
    %1 = vector.shape_cast %0 : vector<1x1x16x64xbf16> to vector<1x16x64xbf16>
    %2 = vector.shape_cast %1 : vector<1x16x64xbf16> to vector<16x64xbf16>
    %3 = arith.extf %2 : vector<16x64xbf16> to vector<16x64xf32>
    %c0_3 = arith.constant 0 : index
    %c0_4 = arith.constant 0 : index
    %4 = vector.load %arg3[%c0_3, %c0_4] : memref<64x192xbf16, #tpu.memory_space<vmem>>, vector<64x192xbf16>
    %cst = arith.constant dense<0.000000e+00> : vector<16x192xf32>
    %5 = tpu.matmul %2, %4, %cst {dimension_numbers = #tpu.dot_dimension_numbers<[1], [0], [0], [1], [0, 0, 1, 1], [], []>} : vector<16x64xbf16>, vector<64x192xbf16>, vector<16x192xf32> -> vector<16x192xf32>
    %c0_5 = arith.constant 0 : index
    %c0_6 = arith.constant 0 : index
    %6 = vector.load %arg4[%c0_5, %c0_6] : memref<1x192xf32, #tpu.memory_space<vmem>>, vector<1x192xf32>
    %7 = vector.broadcast %6 : vector<1x192xf32> to vector<16x192xf32>
    %8 = arith.addf %5, %7 : vector<16x192xf32>
    %9 = vector.extract_strided_slice %8 {offsets = [0, 0], sizes = [16, 16], strides = [1, 1]} : vector<16x192xf32> to vector<16x16xf32>
    %10 = vector.extract_strided_slice %8 {offsets = [0, 16], sizes = [16, 16], strides = [1, 1]} : vector<16x192xf32> to vector<16x16xf32>
    %11 = vector.extract_strided_slice %8 {offsets = [0, 32], sizes = [16, 16], strides = [1, 1]} : vector<16x192xf32> to vector<16x16xf32>
    %12 = vector.extract_strided_slice %8 {offsets = [0, 48], sizes = [16, 16], strides = [1, 1]} : vector<16x192xf32> to vector<16x16xf32>
    %13 = tpu.concatenate %9, %10, %11, %12 in 0 : vector<16x16xf32>, vector<16x16xf32>, vector<16x16xf32>, vector<16x16xf32> -> vector<64x16xf32>
    %14 = vector.shape_cast %13 : vector<64x16xf32> to vector<4x16x16xf32>
    %15 = vector.extract_strided_slice %8 {offsets = [0, 64], sizes = [16, 16], strides = [1, 1]} : vector<16x192xf32> to vector<16x16xf32>
    %16 = vector.extract_strided_slice %8 {offsets = [0, 80], sizes = [16, 16], strides = [1, 1]} : vector<16x192xf32> to vector<16x16xf32>
    %17 = vector.extract_strided_slice %8 {offsets = [0, 96], sizes = [16, 16], strides = [1, 1]} : vector<16x192xf32> to vector<16x16xf32>
    %18 = vector.extract_strided_slice %8 {offsets = [0, 112], sizes = [16, 16], strides = [1, 1]} : vector<16x192xf32> to vector<16x16xf32>
    %19 = tpu.concatenate %15, %16, %17, %18 in 0 : vector<16x16xf32>, vector<16x16xf32>, vector<16x16xf32>, vector<16x16xf32> -> vector<64x16xf32>
    %20 = vector.shape_cast %19 : vector<64x16xf32> to vector<4x16x16xf32>
    %21 = vector.extract_strided_slice %8 {offsets = [0, 128], sizes = [16, 16], strides = [1, 1]} : vector<16x192xf32> to vector<16x16xf32>
    %22 = vector.extract_strided_slice %8 {offsets = [0, 144], sizes = [16, 16], strides = [1, 1]} : vector<16x192xf32> to vector<16x16xf32>
    %23 = vector.extract_strided_slice %8 {offsets = [0, 160], sizes = [16, 16], strides = [1, 1]} : vector<16x192xf32> to vector<16x16xf32>
    %24 = vector.extract_strided_slice %8 {offsets = [0, 176], sizes = [16, 16], strides = [1, 1]} : vector<16x192xf32> to vector<16x16xf32>
    %25 = tpu.concatenate %21, %22, %23, %24 in 0 : vector<16x16xf32>, vector<16x16xf32>, vector<16x16xf32>, vector<16x16xf32> -> vector<64x16xf32>
    %26 = vector.shape_cast %25 : vector<64x16xf32> to vector<4x16x16xf32>
    %27 = arith.mulf %14, %14 : vector<4x16x16xf32>
    %cst_7 = arith.constant dense<0.000000e+00> : vector<4x16xf32>
    %28 = vector.multi_reduction <add>, %27, %cst_7 [2] : vector<4x16x16xf32> to vector<4x16xf32>
    %29 = vector.shape_cast %28 : vector<4x16xf32> to vector<4x16x1xf32>
    %cst_8 = arith.constant 1.000000e-24 : f32
    %30 = vector.broadcast %cst_8 : f32 to vector<4x16x1xf32>
    %31 = arith.maximumf %29, %30 : vector<4x16x1xf32>
    %32 = math.rsqrt %31 : vector<4x16x1xf32>
    %33 = vector.broadcast %32 : vector<4x16x1xf32> to vector<4x16x16xf32>
    %34 = arith.mulf %14, %33 : vector<4x16x16xf32>
    %35 = arith.mulf %20, %20 : vector<4x16x16xf32>
    %cst_9 = arith.constant dense<0.000000e+00> : vector<4x16xf32>
    %36 = vector.multi_reduction <add>, %35, %cst_9 [2] : vector<4x16x16xf32> to vector<4x16xf32>
    %37 = vector.shape_cast %36 : vector<4x16xf32> to vector<4x16x1xf32>
    %cst_10 = arith.constant 1.000000e-24 : f32
    %38 = vector.broadcast %cst_10 : f32 to vector<4x16x1xf32>
    %39 = arith.maximumf %37, %38 : vector<4x16x1xf32>
    %40 = math.rsqrt %39 : vector<4x16x1xf32>
    %41 = vector.broadcast %40 : vector<4x16x1xf32> to vector<4x16x16xf32>
    %42 = arith.mulf %20, %41 : vector<4x16x16xf32>
    "tpu.trace_start"() <{level = 10 : i32, message = "bnd,bmd->bnm"}> : () -> ()
    %cst_11 = arith.constant dense<0.000000e+00> : vector<4x16x16xf32>
    %43 = tpu.matmul %34, %42, %cst_11 {dimension_numbers = #tpu.dot_dimension_numbers<[2], [2], [1], [1], [0, 0, 0, 1, 1, 1], [0], [0]>} : vector<4x16x16xf32>, vector<4x16x16xf32>, vector<4x16x16xf32> -> vector<4x16x16xf32>
    "tpu.trace_stop"() : () -> ()
    %44 = vector.shape_cast %43 : vector<4x16x16xf32> to vector<4x1x16x16xf32>
    %c0_12 = arith.constant 0 : index
    %c0_13 = arith.constant 0 : index
    %c0_14 = arith.constant 0 : index
    %45 = vector.load %arg11[%c0_12, %c0_13, %c0_14] : memref<4x1x1xf32, #tpu.memory_space<vmem>>, vector<4x1x1xf32>
    %46 = vector.shape_cast %45 : vector<4x1x1xf32> to vector<4x1x1x1xf32>
    %47 = vector.broadcast %46 : vector<4x1x1x1xf32> to vector<4x1x16x16xf32>
    %48 = arith.mulf %44, %47 : vector<4x1x16x16xf32>
    %c0_15 = arith.constant 0 : index
    %c0_16 = arith.constant 0 : index
    %c0_17 = arith.constant 0 : index
    %49 = vector.load %arg7[%c0_15, %c0_16, %c0_17] : memref<4x16x16xf32, #tpu.memory_space<vmem>>, vector<4x16x16xf32>
    %50 = vector.shape_cast %49 : vector<4x16x16xf32> to vector<4x1x16x16xf32>
    %51 = arith.addf %48, %50 : vector<4x1x16x16xf32>
    %c0_18 = arith.constant 0 : index
    %c0_19 = arith.constant 0 : index
    %c0_20 = arith.constant 0 : index
    %52 = vector.load %arg8[%c0_18, %c0_19, %c0_20] : memref<1x16x16xf32, #tpu.memory_space<vmem>>, vector<1x16x16xf32>
    %53 = vector.shape_cast %52 : vector<1x16x16xf32> to vector<1x1x16x16xf32>
    %54 = vector.broadcast %53 : vector<1x1x16x16xf32> to vector<4x1x16x16xf32>
    %55 = arith.addf %51, %54 : vector<4x1x16x16xf32>
    %cst_21 = arith.constant dense<0xFF800000> : vector<4x1x16xf32>
    %56 = vector.multi_reduction <maximumf>, %55, %cst_21 [3] : vector<4x1x16x16xf32> to vector<4x1x16xf32>
    %57 = vector.shape_cast %56 : vector<4x1x16xf32> to vector<4x1x16x1xf32>
    %58 = vector.broadcast %57 : vector<4x1x16x1xf32> to vector<4x1x16x16xf32>
    %59 = arith.subf %55, %58 : vector<4x1x16x16xf32>
    %60 = math.exp %59 : vector<4x1x16x16xf32>
    %cst_22 = arith.constant dense<0.000000e+00> : vector<4x1x16xf32>
    %61 = vector.multi_reduction <add>, %60, %cst_22 [3] : vector<4x1x16x16xf32> to vector<4x1x16xf32>
    %62 = vector.shape_cast %61 : vector<4x1x16xf32> to vector<4x1x16x1xf32>
    %63 = tpu.reciprocal %62 {approx = true} : vector<4x1x16x1xf32> -> vector<4x1x16x1xf32>
    %64 = vector.broadcast %63 : vector<4x1x16x1xf32> to vector<4x1x16x16xf32>
    %65 = arith.mulf %60, %64 : vector<4x1x16x16xf32>
    %66 = vector.shape_cast %65 : vector<4x1x16x16xf32> to vector<4x16x16xf32>
    %67 = arith.truncf %66 : vector<4x16x16xf32> to vector<4x16x16xbf16>
    %68 = arith.truncf %26 : vector<4x16x16xf32> to vector<4x16x16xbf16>
    "tpu.trace_start"() <{level = 10 : i32, message = "bnm,bmd->bnd"}> : () -> ()
    %cst_23 = arith.constant dense<0.000000e+00> : vector<4x16x16xf32>
    %69 = tpu.matmul %67, %68, %cst_23 {dimension_numbers = #tpu.dot_dimension_numbers<[2], [1], [1], [2], [0, 0, 0, 1, 1, 2], [0], [0]>} : vector<4x16x16xbf16>, vector<4x16x16xbf16>, vector<4x16x16xf32> -> vector<4x16x16xf32>
    "tpu.trace_stop"() : () -> ()
    %70 = vector.extract_strided_slice %69 {offsets = [0, 0, 0], sizes = [1, 16, 16], strides = [1, 1, 1]} : vector<4x16x16xf32> to vector<1x16x16xf32>
    %71 = vector.shape_cast %70 : vector<1x16x16xf32> to vector<16x16xf32>
    %72 = vector.extract_strided_slice %69 {offsets = [1, 0, 0], sizes = [1, 16, 16], strides = [1, 1, 1]} : vector<4x16x16xf32> to vector<1x16x16xf32>
    %73 = vector.shape_cast %72 : vector<1x16x16xf32> to vector<16x16xf32>
    %74 = vector.extract_strided_slice %69 {offsets = [2, 0, 0], sizes = [1, 16, 16], strides = [1, 1, 1]} : vector<4x16x16xf32> to vector<1x16x16xf32>
    %75 = vector.shape_cast %74 : vector<1x16x16xf32> to vector<16x16xf32>
    %76 = vector.extract_strided_slice %69 {offsets = [3, 0, 0], sizes = [1, 16, 16], strides = [1, 1, 1]} : vector<4x16x16xf32> to vector<1x16x16xf32>
    %77 = vector.shape_cast %76 : vector<1x16x16xf32> to vector<16x16xf32>
    %78 = tpu.concatenate %71, %73, %75, %77 in 1 : vector<16x16xf32>, vector<16x16xf32>, vector<16x16xf32>, vector<16x16xf32> -> vector<16x64xf32>
    %79 = arith.truncf %78 : vector<16x64xf32> to vector<16x64xbf16>
    %c0_24 = arith.constant 0 : index
    %c0_25 = arith.constant 0 : index
    %80 = vector.load %arg5[%c0_24, %c0_25] : memref<64x64xbf16, #tpu.memory_space<vmem>>, vector<64x64xbf16>
    %cst_26 = arith.constant dense<0.000000e+00> : vector<16x64xf32>
    %81 = tpu.matmul %79, %80, %cst_26 {dimension_numbers = #tpu.dot_dimension_numbers<[1], [0], [0], [1], [0, 0, 1, 1], [], []>} : vector<16x64xbf16>, vector<64x64xbf16>, vector<16x64xf32> -> vector<16x64xf32>
    %c0_27 = arith.constant 0 : index
    %c0_28 = arith.constant 0 : index
    %82 = vector.load %arg6[%c0_27, %c0_28] : memref<1x64xf32, #tpu.memory_space<vmem>>, vector<1x64xf32>
    %83 = vector.broadcast %82 : vector<1x64xf32> to vector<16x64xf32>
    %84 = arith.addf %81, %83 : vector<16x64xf32>
    %cst_29 = arith.constant dense<0.000000e+00> : vector<16xf32>
    %85 = vector.multi_reduction <add>, %84, %cst_29 [1] : vector<16x64xf32> to vector<16xf32>
    %86 = vector.shape_cast %85 : vector<16xf32> to vector<16x1xf32>
    %cst_30 = arith.constant 6.400000e+01 : f32
    %87 = vector.broadcast %cst_30 : f32 to vector<16x1xf32>
    %88 = arith.divf %86, %87 : vector<16x1xf32>
    %89 = vector.broadcast %88 : vector<16x1xf32> to vector<16x64xf32>
    %90 = arith.subf %84, %89 : vector<16x64xf32>
    %91 = arith.mulf %90, %90 : vector<16x64xf32>
    %cst_31 = arith.constant dense<0.000000e+00> : vector<16xf32>
    %92 = vector.multi_reduction <add>, %91, %cst_31 [1] : vector<16x64xf32> to vector<16xf32>
    %93 = vector.shape_cast %92 : vector<16xf32> to vector<16x1xf32>
    %cst_32 = arith.constant 6.400000e+01 : f32
    %94 = vector.broadcast %cst_32 : f32 to vector<16x1xf32>
    %95 = arith.divf %93, %94 : vector<16x1xf32>
    %96 = vector.broadcast %88 : vector<16x1xf32> to vector<16x64xf32>
    %97 = arith.subf %84, %96 : vector<16x64xf32>
    %cst_33 = arith.constant 9.99999974E-6 : f32
    %98 = vector.broadcast %cst_33 : f32 to vector<16x1xf32>
    %99 = arith.addf %95, %98 : vector<16x1xf32>
    %100 = math.rsqrt %99 : vector<16x1xf32>
    %101 = vector.broadcast %100 : vector<16x1xf32> to vector<16x64xf32>
    %102 = arith.mulf %97, %101 : vector<16x64xf32>
    %c0_34 = arith.constant 0 : index
    %c0_35 = arith.constant 0 : index
    %103 = vector.load %arg9[%c0_34, %c0_35] : memref<1x64xf32, #tpu.memory_space<vmem>>, vector<1x64xf32>
    %104 = vector.broadcast %103 : vector<1x64xf32> to vector<16x64xf32>
    %105 = arith.mulf %102, %104 : vector<16x64xf32>
    %c0_36 = arith.constant 0 : index
    %c0_37 = arith.constant 0 : index
    %106 = vector.load %arg10[%c0_36, %c0_37] : memref<1x64xf32, #tpu.memory_space<vmem>>, vector<1x64xf32>
    %107 = vector.broadcast %106 : vector<1x64xf32> to vector<16x64xf32>
    %108 = arith.addf %105, %107 : vector<16x64xf32>
    %109 = arith.addf %3, %108 : vector<16x64xf32>
    %110 = vector.shape_cast %109 : vector<16x64xf32> to vector<1x16x64xf32>
    %111 = arith.truncf %110 : vector<1x16x64xf32> to vector<1x16x64xbf16>
    %c0_38 = arith.constant 0 : index
    %c0_39 = arith.constant 0 : index
    %c0_40 = arith.constant 0 : index
    %c0_41 = arith.constant 0 : index
    %112 = vector.load %arg12[%c0_38, %c0_39, %c0_40, %c0_41] : memref<1x1x16x64xbf16, #tpu.memory_space<vmem>>, vector<1x1x16x64xbf16>
    %113 = vector.shape_cast %112 : vector<1x1x16x64xbf16> to vector<1x16x64xbf16>
    %114 = vector.shape_cast %111 : vector<1x16x64xbf16> to vector<1x1x16x64xbf16>
    tpu.vector_store %arg12[%c0_38, %c0_39, %c0_40, %c0_41], %114 {strides = array<i32>} : memref<1x1x16x64xbf16, #tpu.memory_space<vmem>>, vector<1x1x16x64xbf16>,
    return
  }
  func.func @transform_0(%arg0: i32, %arg1: i32) -> (i32, i32, i32, i32) {
    %c0_i32 = arith.constant 0 : i32
    %c0_i32_0 = arith.constant 0 : i32
    %c0_i32_1 = arith.constant 0 : i32
    return %arg0, %arg1, %c0_i32, %c0_i32_0 : i32, i32, i32, i32
  }
  func.func @transform_1(%arg0: i32, %arg1: i32) -> (i32, i32) {
    %c0_i32 = arith.constant 0 : i32
    %c0_i32_0 = arith.constant 0 : i32
    %c0_i32_1 = arith.constant 0 : i32
    return %c0_i32, %c0_i32_0 : i32, i32
  }
  func.func @transform_2(%arg0: i32, %arg1: i32) -> (i32, i32) {
    %c0_i32 = arith.constant 0 : i32
    %c0_i32_0 = arith.constant 0 : i32
    %c0_i32_1 = arith.constant 0 : i32
    return %c0_i32, %c0_i32_0 : i32, i32
  }
  func.func @transform_3(%arg0: i32, %arg1: i32) -> (i32, i32) {
    %c0_i32 = arith.constant 0 : i32
    %c0_i32_0 = arith.constant 0 : i32
    %c0_i32_1 = arith.constant 0 : i32
    return %c0_i32, %c0_i32_0 : i32, i32
  }
  func.func @transform_4(%arg0: i32, %arg1: i32) -> (i32, i32) {
    %c0_i32 = arith.constant 0 : i32
    %c0_i32_0 = arith.constant 0 : i32
    %c0_i32_1 = arith.constant 0 : i32
    return %c0_i32, %c0_i32_0 : i32, i32
  }
  func.func @transform_5(%arg0: i32, %arg1: i32) -> (i32, i32, i32) {
    %c0_i32 = arith.constant 0 : i32
    %c0_i32_0 = arith.constant 0 : i32
    %c0_i32_1 = arith.constant 0 : i32
    %c0_i32_2 = arith.constant 0 : i32
    return %c0_i32, %c0_i32_0, %c0_i32_1 : i32, i32, i32
  }
  func.func @transform_6(%arg0: i32, %arg1: i32) -> (i32, i32, i32) {
    %c0_i32 = arith.constant 0 : i32
    %c0_i32_0 = arith.constant 0 : i32
    %c0_i32_1 = arith.constant 0 : i32
    return %arg1, %c0_i32, %c0_i32_0 : i32, i32, i32
  }
  func.func @transform_7(%arg0: i32, %arg1: i32) -> (i32, i32) {
    %c0_i32 = arith.constant 0 : i32
    %c0_i32_0 = arith.constant 0 : i32
    %c0_i32_1 = arith.constant 0 : i32
    return %c0_i32, %c0_i32_0 : i32, i32
  }
  func.func @transform_8(%arg0: i32, %arg1: i32) -> (i32, i32) {
    %c0_i32 = arith.constant 0 : i32
    %c0_i32_0 = arith.constant 0 : i32
    %c0_i32_1 = arith.constant 0 : i32
    return %c0_i32, %c0_i32_0 : i32, i32
  }
  func.func @transform_9(%arg0: i32, %arg1: i32) -> (i32, i32, i32) {
    %c0_i32 = arith.constant 0 : i32
    %c0_i32_0 = arith.constant 0 : i32
    %c0_i32_1 = arith.constant 0 : i32
    %c0_i32_2 = arith.constant 0 : i32
    return %c0_i32, %c0_i32_0, %c0_i32_1 : i32, i32, i32
  }
  func.func @transform_10(%arg0: i32, %arg1: i32) -> (i32, i32, i32, i32) {
    %c0_i32 = arith.constant 0 : i32
    %c0_i32_0 = arith.constant 0 : i32
    %c0_i32_1 = arith.constant 0 : i32
    return %arg0, %arg1, %c0_i32, %c0_i32_0 : i32, i32, i32, i32
  }
}

module attributes {stable_mosaic.version = 11 : i64} {
  func.func @_mlp_block_kernel(%arg0: i32, %arg1: memref<32x64xbf16, #tpu.memory_space<vmem>>, %arg2: memref<64x256xbf16, #tpu.memory_space<vmem>>, %arg3: memref<1x256xf32, #tpu.memory_space<vmem>>, %arg4: memref<256x64xbf16, #tpu.memory_space<vmem>>, %arg5: memref<1x64xf32, #tpu.memory_space<vmem>>, %arg6: memref<1x64xf32, #tpu.memory_space<vmem>>, %arg7: memref<1x64xf32, #tpu.memory_space<vmem>>, %arg8: memref<32x64xbf16, #tpu.memory_space<vmem>>) attributes {dimension_semantics = [#tpu.dimension_semantics<parallel>], iteration_bounds = array<i64: 1>, scalar_prefetch = 0 : i64, scratch_operands = 0 : i64, tpu.core_type = #tpu.core_type<tc>, window_params = [{transform_indices = @transform_0, window_bounds = array<i64: 32, 64>}, {pipeline_mode = #tpu.pipeline_mode<synchronous>, transform_indices = @transform_1, window_bounds = array<i64: 64, 256>}, {pipeline_mode = #tpu.pipeline_mode<synchronous>, transform_indices = @transform_2, window_bounds = array<i64: 1, 256>}, {pipeline_mode = #tpu.pipeline_mode<synchronous>, transform_indices = @transform_3, window_bounds = array<i64: 256, 64>}, {pipeline_mode = #tpu.pipeline_mode<synchronous>, transform_indices = @transform_4, window_bounds = array<i64: 1, 64>}, {pipeline_mode = #tpu.pipeline_mode<synchronous>, transform_indices = @transform_5, window_bounds = array<i64: 1, 64>}, {pipeline_mode = #tpu.pipeline_mode<synchronous>, transform_indices = @transform_6, window_bounds = array<i64: 1, 64>}, {transform_indices = @transform_7, window_bounds = array<i64: 32, 64>}]} {
    %c0 = arith.constant 0 : index
    %c0_0 = arith.constant 0 : index
    %0 = vector.load %arg1[%c0, %c0_0] : memref<32x64xbf16, #tpu.memory_space<vmem>>, vector<32x64xbf16>
    %1 = arith.extf %0 : vector<32x64xbf16> to vector<32x64xf32>
    %c0_1 = arith.constant 0 : index
    %c0_2 = arith.constant 0 : index
    %2 = vector.load %arg2[%c0_1, %c0_2] : memref<64x256xbf16, #tpu.memory_space<vmem>>, vector<64x256xbf16>
    %cst = arith.constant dense<0.000000e+00> : vector<32x256xf32>
    %3 = tpu.matmul %0, %2, %cst {dimension_numbers = #tpu.dot_dimension_numbers<[1], [0], [0], [1], [0, 0, 1, 1], [], []>} : vector<32x64xbf16>, vector<64x256xbf16>, vector<32x256xf32> -> vector<32x256xf32>
    %c0_3 = arith.constant 0 : index
    %c0_4 = arith.constant 0 : index
    %4 = vector.load %arg3[%c0_3, %c0_4] : memref<1x256xf32, #tpu.memory_space<vmem>>, vector<1x256xf32>
    %5 = vector.broadcast %4 : vector<1x256xf32> to vector<32x256xf32>
    %6 = arith.addf %3, %5 : vector<32x256xf32>
    %cst_5 = arith.constant 5.000000e-01 : f32
    %7 = vector.broadcast %cst_5 : f32 to vector<32x256xf32>
    %8 = arith.mulf %7, %6 : vector<32x256xf32>
    %cst_6 = arith.constant 4.471500e-02 : f32
    %9 = vector.broadcast %cst_6 : f32 to vector<32x256xf32>
    %10 = arith.mulf %9, %6 : vector<32x256xf32>
    %11 = arith.mulf %10, %6 : vector<32x256xf32>
    %12 = arith.mulf %11, %6 : vector<32x256xf32>
    %13 = arith.addf %6, %12 : vector<32x256xf32>
    %cst_7 = arith.constant 0.797884583 : f32
    %14 = vector.broadcast %cst_7 : f32 to vector<32x256xf32>
    %15 = arith.mulf %14, %13 : vector<32x256xf32>
    %16 = math.tanh %15 : vector<32x256xf32>
    %cst_8 = arith.constant 1.000000e+00 : f32
    %17 = vector.broadcast %cst_8 : f32 to vector<32x256xf32>
    %18 = arith.addf %17, %16 : vector<32x256xf32>
    %19 = arith.mulf %8, %18 : vector<32x256xf32>
    %20 = arith.truncf %19 : vector<32x256xf32> to vector<32x256xbf16>
    %c0_9 = arith.constant 0 : index
    %c0_10 = arith.constant 0 : index
    %21 = vector.load %arg4[%c0_9, %c0_10] : memref<256x64xbf16, #tpu.memory_space<vmem>>, vector<256x64xbf16>
    %cst_11 = arith.constant dense<0.000000e+00> : vector<32x64xf32>
    %22 = tpu.matmul %20, %21, %cst_11 {dimension_numbers = #tpu.dot_dimension_numbers<[1], [0], [0], [1], [0, 0, 1, 1], [], []>} : vector<32x256xbf16>, vector<256x64xbf16>, vector<32x64xf32> -> vector<32x64xf32>
    %c0_12 = arith.constant 0 : index
    %c0_13 = arith.constant 0 : index
    %23 = vector.load %arg5[%c0_12, %c0_13] : memref<1x64xf32, #tpu.memory_space<vmem>>, vector<1x64xf32>
    %24 = vector.broadcast %23 : vector<1x64xf32> to vector<32x64xf32>
    %25 = arith.addf %22, %24 : vector<32x64xf32>
    %cst_14 = arith.constant dense<0.000000e+00> : vector<32xf32>
    %26 = vector.multi_reduction <add>, %25, %cst_14 [1] : vector<32x64xf32> to vector<32xf32>
    %27 = vector.shape_cast %26 : vector<32xf32> to vector<32x1xf32>
    %cst_15 = arith.constant 6.400000e+01 : f32
    %28 = vector.broadcast %cst_15 : f32 to vector<32x1xf32>
    %29 = arith.divf %27, %28 : vector<32x1xf32>
    %30 = vector.broadcast %29 : vector<32x1xf32> to vector<32x64xf32>
    %31 = arith.subf %25, %30 : vector<32x64xf32>
    %32 = arith.mulf %31, %31 : vector<32x64xf32>
    %cst_16 = arith.constant dense<0.000000e+00> : vector<32xf32>
    %33 = vector.multi_reduction <add>, %32, %cst_16 [1] : vector<32x64xf32> to vector<32xf32>
    %34 = vector.shape_cast %33 : vector<32xf32> to vector<32x1xf32>
    %cst_17 = arith.constant 6.400000e+01 : f32
    %35 = vector.broadcast %cst_17 : f32 to vector<32x1xf32>
    %36 = arith.divf %34, %35 : vector<32x1xf32>
    %37 = vector.broadcast %29 : vector<32x1xf32> to vector<32x64xf32>
    %38 = arith.subf %25, %37 : vector<32x64xf32>
    %cst_18 = arith.constant 9.99999974E-6 : f32
    %39 = vector.broadcast %cst_18 : f32 to vector<32x1xf32>
    %40 = arith.addf %36, %39 : vector<32x1xf32>
    %41 = math.rsqrt %40 : vector<32x1xf32>
    %42 = vector.broadcast %41 : vector<32x1xf32> to vector<32x64xf32>
    %43 = arith.mulf %38, %42 : vector<32x64xf32>
    %c0_19 = arith.constant 0 : index
    %c0_20 = arith.constant 0 : index
    %44 = vector.load %arg6[%c0_19, %c0_20] : memref<1x64xf32, #tpu.memory_space<vmem>>, vector<1x64xf32>
    %45 = vector.broadcast %44 : vector<1x64xf32> to vector<32x64xf32>
    %46 = arith.mulf %43, %45 : vector<32x64xf32>
    %c0_21 = arith.constant 0 : index
    %c0_22 = arith.constant 0 : index
    %47 = vector.load %arg7[%c0_21, %c0_22] : memref<1x64xf32, #tpu.memory_space<vmem>>, vector<1x64xf32>
    %48 = vector.broadcast %47 : vector<1x64xf32> to vector<32x64xf32>
    %49 = arith.addf %46, %48 : vector<32x64xf32>
    %50 = arith.addf %1, %49 : vector<32x64xf32>
    %51 = arith.truncf %50 : vector<32x64xf32> to vector<32x64xbf16>
    %c0_23 = arith.constant 0 : index
    %c0_24 = arith.constant 0 : index
    %52 = vector.load %arg8[%c0_23, %c0_24] : memref<32x64xbf16, #tpu.memory_space<vmem>>, vector<32x64xbf16>
    tpu.vector_store %arg8[%c0_23, %c0_24], %51 {strides = array<i32>} : memref<32x64xbf16, #tpu.memory_space<vmem>>, vector<32x64xbf16>,
    return
  }
  func.func @transform_0(%arg0: i32) -> (i32, i32) {
    %c0_i32 = arith.constant 0 : i32
    %c0_i32_0 = arith.constant 0 : i32
    return %arg0, %c0_i32 : i32, i32
  }
  func.func @transform_1(%arg0: i32) -> (i32, i32) {
    %c0_i32 = arith.constant 0 : i32
    %c0_i32_0 = arith.constant 0 : i32
    %c0_i32_1 = arith.constant 0 : i32
    return %c0_i32, %c0_i32_0 : i32, i32
  }
  func.func @transform_2(%arg0: i32) -> (i32, i32) {
    %c0_i32 = arith.constant 0 : i32
    %c0_i32_0 = arith.constant 0 : i32
    %c0_i32_1 = arith.constant 0 : i32
    return %c0_i32, %c0_i32_0 : i32, i32
  }
  func.func @transform_3(%arg0: i32) -> (i32, i32) {
    %c0_i32 = arith.constant 0 : i32
    %c0_i32_0 = arith.constant 0 : i32
    %c0_i32_1 = arith.constant 0 : i32
    return %c0_i32, %c0_i32_0 : i32, i32
  }
  func.func @transform_4(%arg0: i32) -> (i32, i32) {
    %c0_i32 = arith.constant 0 : i32
    %c0_i32_0 = arith.constant 0 : i32
    %c0_i32_1 = arith.constant 0 : i32
    return %c0_i32, %c0_i32_0 : i32, i32
  }
  func.func @transform_5(%arg0: i32) -> (i32, i32) {
    %c0_i32 = arith.constant 0 : i32
    %c0_i32_0 = arith.constant 0 : i32
    %c0_i32_1 = arith.constant 0 : i32
    return %c0_i32, %c0_i32_0 : i32, i32
  }
  func.func @transform_6(%arg0: i32) -> (i32, i32) {
    %c0_i32 = arith.constant 0 : i32
    %c0_i32_0 = arith.constant 0 : i32
    %c0_i32_1 = arith.constant 0 : i32
    return %c0_i32, %c0_i32_0 : i32, i32
  }
  func.func @transform_7(%arg0: i32) -> (i32, i32) {
    %c0_i32 = arith.constant 0 : i32
    %c0_i32_0 = arith.constant 0 : i32
    return %arg0, %c0_i32 : i32, i32
  }
}

module attributes {stable_mosaic.version = 11 : i64} {
  func.func @_ln_kernel(%arg0: i32, %arg1: memref<32x64xbf16, #tpu.memory_space<vmem>>, %arg2: memref<1x64xf32, #tpu.memory_space<vmem>>, %arg3: memref<1x64xf32, #tpu.memory_space<vmem>>, %arg4: memref<32x64xf32, #tpu.memory_space<vmem>>) attributes {dimension_semantics = [#tpu.dimension_semantics<parallel>], iteration_bounds = array<i64: 1>, scalar_prefetch = 0 : i64, scratch_operands = 0 : i64, tpu.core_type = #tpu.core_type<tc>, window_params = [{transform_indices = @transform_0, window_bounds = array<i64: 32, 64>}, {pipeline_mode = #tpu.pipeline_mode<synchronous>, transform_indices = @transform_1, window_bounds = array<i64: 1, 64>}, {pipeline_mode = #tpu.pipeline_mode<synchronous>, transform_indices = @transform_2, window_bounds = array<i64: 1, 64>}, {transform_indices = @transform_3, window_bounds = array<i64: 32, 64>}]} {
    %c0 = arith.constant 0 : index
    %c0_0 = arith.constant 0 : index
    %0 = vector.load %arg1[%c0, %c0_0] : memref<32x64xbf16, #tpu.memory_space<vmem>>, vector<32x64xbf16>
    %1 = arith.extf %0 : vector<32x64xbf16> to vector<32x64xf32>
    %cst = arith.constant dense<0.000000e+00> : vector<32xf32>
    %2 = vector.multi_reduction <add>, %1, %cst [1] : vector<32x64xf32> to vector<32xf32>
    %3 = vector.shape_cast %2 : vector<32xf32> to vector<32x1xf32>
    %cst_1 = arith.constant 6.400000e+01 : f32
    %4 = vector.broadcast %cst_1 : f32 to vector<32x1xf32>
    %5 = arith.divf %3, %4 : vector<32x1xf32>
    %6 = vector.broadcast %5 : vector<32x1xf32> to vector<32x64xf32>
    %7 = arith.subf %1, %6 : vector<32x64xf32>
    %8 = arith.mulf %7, %7 : vector<32x64xf32>
    %cst_2 = arith.constant dense<0.000000e+00> : vector<32xf32>
    %9 = vector.multi_reduction <add>, %8, %cst_2 [1] : vector<32x64xf32> to vector<32xf32>
    %10 = vector.shape_cast %9 : vector<32xf32> to vector<32x1xf32>
    %cst_3 = arith.constant 6.400000e+01 : f32
    %11 = vector.broadcast %cst_3 : f32 to vector<32x1xf32>
    %12 = arith.divf %10, %11 : vector<32x1xf32>
    %13 = vector.broadcast %5 : vector<32x1xf32> to vector<32x64xf32>
    %14 = arith.subf %1, %13 : vector<32x64xf32>
    %cst_4 = arith.constant 9.99999974E-6 : f32
    %15 = vector.broadcast %cst_4 : f32 to vector<32x1xf32>
    %16 = arith.addf %12, %15 : vector<32x1xf32>
    %17 = math.rsqrt %16 : vector<32x1xf32>
    %18 = vector.broadcast %17 : vector<32x1xf32> to vector<32x64xf32>
    %19 = arith.mulf %14, %18 : vector<32x64xf32>
    %c0_5 = arith.constant 0 : index
    %c0_6 = arith.constant 0 : index
    %20 = vector.load %arg2[%c0_5, %c0_6] : memref<1x64xf32, #tpu.memory_space<vmem>>, vector<1x64xf32>
    %21 = vector.broadcast %20 : vector<1x64xf32> to vector<32x64xf32>
    %22 = arith.mulf %19, %21 : vector<32x64xf32>
    %c0_7 = arith.constant 0 : index
    %c0_8 = arith.constant 0 : index
    %23 = vector.load %arg3[%c0_7, %c0_8] : memref<1x64xf32, #tpu.memory_space<vmem>>, vector<1x64xf32>
    %24 = vector.broadcast %23 : vector<1x64xf32> to vector<32x64xf32>
    %25 = arith.addf %22, %24 : vector<32x64xf32>
    %c0_9 = arith.constant 0 : index
    %c0_10 = arith.constant 0 : index
    %26 = vector.load %arg4[%c0_9, %c0_10] : memref<32x64xf32, #tpu.memory_space<vmem>>, vector<32x64xf32>
    tpu.vector_store %arg4[%c0_9, %c0_10], %25 {strides = array<i32>} : memref<32x64xf32, #tpu.memory_space<vmem>>, vector<32x64xf32>,
    return
  }
  func.func @transform_0(%arg0: i32) -> (i32, i32) {
    %c0_i32 = arith.constant 0 : i32
    %c0_i32_0 = arith.constant 0 : i32
    return %arg0, %c0_i32 : i32, i32
  }
  func.func @transform_1(%arg0: i32) -> (i32, i32) {
    %c0_i32 = arith.constant 0 : i32
    %c0_i32_0 = arith.constant 0 : i32
    %c0_i32_1 = arith.constant 0 : i32
    return %c0_i32, %c0_i32_0 : i32, i32
  }
  func.func @transform_2(%arg0: i32) -> (i32, i32) {
    %c0_i32 = arith.constant 0 : i32
    %c0_i32_0 = arith.constant 0 : i32
    %c0_i32_1 = arith.constant 0 : i32
    return %c0_i32, %c0_i32_0 : i32, i32
  }
  func.func @transform_3(%arg0: i32) -> (i32, i32) {
    %c0_i32 = arith.constant 0 : i32
    %c0_i32_0 = arith.constant 0 : i32
    return %arg0, %c0_i32 : i32, i32
  }
}

</mosaic_0001>

<bundles_post_ra>
// kernel: _lambda_.11
= control target key start
LH: loop header
LB: loop body
LE: loop exit
PB: predicated region body
PF: predicated region fallthrough
CT: control target
= control target key end

     0   :  { %vm108_vm0 = vcmask 392192   ;;  %vm230_vm1 = vcmask 261120   ;;  %vm550_vm2 = vcmask 257024   ;;  %s1063_s1 = inlined_call_operand.vmem [shape: bf16[48,32], index: 1, kind: input, shape index: {}]   ;;  %s1064_s0 = inlined_call_operand.vmem [shape: bf16[128,48], index: 0, kind: input, shape index: {}]   ;;  %s1065_s2 = inlined_call_operand.vmem [shape: f32[1,32], index: 2, kind: input, shape index: {}]   ;;  %s1066_s3 = inlined_call_operand.vmem [shape: f32[1,32], index: 3, kind: input, shape index: {}]   ;;  %s1067_s4 = inlined_call_operand.vmem [shape: f32[1,32], index: 4, kind: input, shape index: {}]   ;;  %s1068_s5 = inlined_call_operand.vmem [shape: bf16[128,32], index: 5, kind: output, shape index: {}]  }
   0x1   :  { %v664_v0 = vld [vmem:[%s1063_s1] sm:$0xff]   ;;  %v665_v1 = vld [vmem:[%s1063_s1 + $0x8] sm:$0xff]   ;;  %v666_v2 = vld [vmem:[%s1063_s1 + $0x10] sm:$0xff]  }
   0x2   :  { %636 = vmatprep.subr.bf16.mxu0 %v664_v0  ;;  %658 = vmatprep.subr.bf16.mxu1 %v664_v0  ;;  %v667_v3 = vld [vmem:[%s1064_s0] sm:$0xff]   ;;  %v669_v5 = vld [vmem:[%s1064_s0 + $0x8] sm:$0xff]   ;;  %v671_v7 = vld [vmem:[%s1064_s0 + $0x10] sm:$0xff]  }
   0x3   :  { %637 = vmatpush3.bf16.msra.mxu0 %v664_v0  ;;  %661 = vmatpush3.bf16.msra.mxu1 %v664_v0  ;;  %v668_v4 = vld [vmem:[%s1064_s0 + $0x20] sm:$0xff]   ;;  %v670_v6 = vld [vmem:[%s1064_s0 + $0x28] sm:$0xff]   ;;  %v673_v8 = vld [vmem:[%s1064_s0 + $0x30] sm:$0xff]  }
   0x4   :  { %638 = vmatprep.subr.bf16.mxu0 %v665_v1  ;;  %659 = vmatprep.subr.bf16.mxu1 %v665_v1  ;;  %v672_v9 = vld [vmem:[%s1064_s0 + $0x18] sm:$0xff]   ;;  %v571_v11 = vld [vmem:[%s1065_s2] ss:$0 sm:$0xff] }
   0x5   :  { %642 = vmatprep.mubr.msk.bf16.mxu0 %vm108_vm0, %v667_v3  ;;  %650 = vmatprep.mubr.msk.bf16.mxu1 %vm108_vm0, %v668_v4  ;;  %v674_v10 = vld [vmem:[%s1064_s0 + $0x38] sm:$0xff]  }
   0x7   :  { %639 = vmatpush3.bf16.msra.mxu0 %v665_v1  ;;  %662 = vmatpush3.bf16.msra.mxu1 %v665_v1 }
   0x8   :  { %640 = vmatprep.subr.bf16.mxu0 %v666_v2  ;;  %660 = vmatprep.subr.bf16.mxu1 %v666_v2 }
   0xb   :  { %641 = vmatpush3.bf16.msra.mxu0 %v666_v2  ;;  %663 = vmatpush3.bf16.msra.mxu1 %v666_v2 }
   0xe   :  { %643 = vmatmul.mubr.msk.bf16.vlgmr.msra.gmra.mrb[0].mxu0 %vm108_vm0, %v669_v5  ;;  %651 = vmatmul.mubr.msk.bf16.vlgmr.msra.gmra.mrb[0].mxu1 %vm108_vm0, %v670_v6 }
   0xf   :  { %646 = vmatprep.mubr.msk.bf16.mxu0 %vm108_vm0, %v671_v7  ;;  %654 = vmatprep.mubr.msk.bf16.mxu1 %vm108_vm0, %v673_v8 }
  0x16   :  { %647 = vmatmul.mubr.msk.bf16.gmra.mrb[4].mxu0 %vm108_vm0, %v672_v9  ;;  %655 = vmatmul.mubr.msk.bf16.gmra.mrb[4].mxu1 %vm108_vm0, %v674_v10 }
  0xe1   :  { %v644_v12 = vpop.f32.mrb[0].mxu0  ;;  %v652_v13 = vpop.f32.mrb[0].mxu1 }
  0xe2   :  { %v781_v14 = vadd.f32 %v644_v12, %v571_v11  ;;  %v783_v15 = vadd.f32 %v652_v13, %v571_v11  ;;  %v167_v16 = vpop.f32.mrb[1].mxu0  ;;  %v199_v17 = vpop.f32.mrb[1].mxu1 }
  0xe3   :  { %v645_v18 = vpop.f32.mrb[2].mxu0  ;;  %v653_v19 = vpop.f32.mrb[2].mxu1  ;;  %v785_v20 = vadd.f32 %v571_v11, %v167_v16  ;;  %v793_v26 = vadd.f32 %v571_v11, %v199_v17 }
  0xe4   :  { %v787_v21 = vadd.f32 %v645_v18, %v571_v11  ;;  %v170_v22 = vpop.f32.mrb[3].mxu0  ;;  %v202_v23 = vpop.f32.mrb[3].mxu1  ;;  %v261_v24 = vsel %vm230_vm1, %v783_v15, 0.0  ;;  %v237_v25 = vsel %vm230_vm1, %v781_v14, 0.0  ;;  %v795_v27 = vadd.f32 %v653_v19, %v571_v11 }
  0xe5   :  { %262 = vadd.xlane.f32.xlu0 %v261_v24  ;;  %238 = vadd.xlane.f32.xlu1 %v237_v25  ;;  %v231_v29 = vsel %vm230_vm1, %v785_v20, 0.0  ;;  %v801_v36 = vadd.f32 %v571_v11, %v170_v22  ;;  %v803_v37 = vadd.f32 %v571_v11, %v202_v23  ;;  %v255_v39 = vsel %vm230_vm1, %v793_v26, 0.0 }
  0xe6   :  { %v240_v28 = vsel %vm230_vm1, %v787_v21, 0.0  ;;  %v264_v38 = vsel %vm230_vm1, %v795_v27, 0.0 }
  0xe7   :  { %v258_v44 = vsel %vm230_vm1, %v803_v37, 0.0  ;;  %v234_v45 = vsel %vm230_vm1, %v801_v36, 0.0 }
  0xe9   :  { %241 = vadd.xlane.f32.xlu1 %v240_v28  ;;  %232 = vadd.xlane.f32.xlu0 %v231_v29  ;;  %v648_v30 = vpop.f32.mrb[4].mxu0  ;;  %v656_v31 = vpop.f32.mrb[4].mxu1 }
  0xea   :  { %v183_v32 = vpop.f32.mrb[5].mxu0  ;;  %v215_v33 = vpop.f32.mrb[5].mxu1  ;;  %v809_v42 = vadd.f32 %v648_v30, %v571_v11  ;;  %v837_v56 = vadd.f32 %v656_v31, %v571_v11 }
  0xeb   :  { %v649_v34 = vpop.f32.mrb[6].mxu0  ;;  %v657_v35 = vpop.f32.mrb[6].mxu1  ;;  %v821_v48 = vadd.f32 %v571_v11, %v183_v32  ;;  %v825_v50 = vadd.f32 %v571_v11, %v215_v33 }
  0xec   :  { %v186_v40 = vpop.f32.mrb[7].mxu0  ;;  %v218_v41 = vpop.f32.mrb[7].mxu1  ;;  %v811_v43 = vadd.f32 %v649_v34, %v571_v11  ;;  %v249_v47 = vsel %vm230_vm1, %v809_v42, 0.0  ;;  %v839_v57 = vadd.f32 %v657_v35, %v571_v11  ;;  %v273_v59 = vsel %vm230_vm1, %v837_v56, 0.0 }
  0xed   :  { %265 = vadd.xlane.f32.xlu1 %v264_v38  ;;  %256 = vadd.xlane.f32.xlu0 %v255_v39  ;;  %v823_v49 = vadd.f32 %v571_v11, %v186_v40  ;;  %v827_v51 = vadd.f32 %v571_v11, %v218_v41  ;;  %v243_v53 = vsel %vm230_vm1, %v821_v48, 0.0  ;;  %v267_v55 = vsel %vm230_vm1, %v825_v50, 0.0 }
  0xee   :  { %v252_v46 = vsel %vm230_vm1, %v811_v43, 0.0  ;;  %v276_v58 = vsel %vm230_vm1, %v839_v57, 0.0 }
  0xef   :  { %v246_v52 = vsel %vm230_vm1, %v823_v49, 0.0  ;;  %v270_v54 = vsel %vm230_vm1, %v827_v51, 0.0 }
  0xf1   :  { %259 = vadd.xlane.f32.xlu1 %v258_v44  ;;  %235 = vadd.xlane.f32.xlu0 %v234_v45 }
  0xf5   :  { %253 = vadd.xlane.f32.xlu1 %v252_v46  ;;  %250 = vadd.xlane.f32.xlu0 %v249_v47 }
  0xf9   :  { %247 = vadd.xlane.f32.xlu1 %v246_v52  ;;  %244 = vadd.xlane.f32.xlu0 %v243_v53 }
  0xfd   :  { %271 = vadd.xlane.f32.xlu1 %v270_v54  ;;  %268 = vadd.xlane.f32.xlu0 %v267_v55 }
 0x101   :  { %277 = vadd.xlane.f32.xlu1 %v276_v58  ;;  %274 = vadd.xlane.f32.xlu0 %v273_v59 }
 0x172   :  { %v263_v60 = vpop.xlane.xlu0 %262  ;;  %v239_v61 = vpop.xlane.xlu1 %238 }
 0x173   :  { %v290_v62 = vmul.f32 0.03125, %v263_v60  ;;  %v282_v63 = vmul.f32 0.03125, %v239_v61 }
 0x175   :  { %v846_v0 = vsub.f32 %v783_v15, %v290_v62  ;;  %v849_v1 = vsub.f32 %v781_v14, %v282_v63 }
 0x176   :  { %v242_v2 = vpop.xlane.xlu1 %241  ;;  %v233_v3 = vpop.xlane.xlu0 %232 }
 0x177   :  { %v283_v4 = vmul.f32 0.03125, %v242_v2  ;;  %v280_v5 = vmul.f32 0.03125, %v233_v3  ;;  %v314_v6 = vmul.f32 %v849_v1, %v849_v1  ;;  %v322_v10 = vmul.f32 %v846_v0, %v846_v0 }
 0x179   :  { %v854_v7 = vsub.f32 %v787_v21, %v283_v4  ;;  %v857_v8 = vsub.f32 %v785_v20, %v280_v5  ;;  %v334_v9 = vsel %vm230_vm1, %v314_v6, 0.0  ;;  %v358_v20 = vsel %vm230_vm1, %v322_v10, 0.0 }
 0x17a   :  { %v266_v11 = vpop.xlane.xlu1 %265  ;;  %335 = vadd.xlane.f32.xlu0 %v334_v9  ;;  %v257_v12 = vpop.xlane.xlu0 %256 }
 0x17b   :  { %v291_v13 = vmul.f32 0.03125, %v266_v11  ;;  %v288_v14 = vmul.f32 0.03125, %v257_v12  ;;  %v315_v15 = vmul.f32 %v854_v7, %v854_v7  ;;  %v312_v16 = vmul.f32 %v857_v8, %v857_v8 }
 0x17d   :  { %v867_v17 = vsub.f32 %v795_v27, %v291_v13  ;;  %v870_v18 = vsub.f32 %v793_v26, %v288_v14  ;;  %v337_v19 = vsel %vm230_vm1, %v315_v15, 0.0  ;;  %v328_v28 = vsel %vm230_vm1, %v312_v16, 0.0 }
 0x17e   :  { %v260_v21 = vpop.xlane.xlu1 %259  ;;  %338 = vadd.xlane.f32.xlu1 %v337_v19  ;;  %359 = vadd.xlane.f32.xlu0 %v358_v20  ;;  %v236_v22 = vpop.xlane.xlu0 %235 }
 0x17f   :  { %v289_v23 = vmul.f32 0.03125, %v260_v21  ;;  %v281_v24 = vmul.f32 0.03125, %v236_v22  ;;  %v323_v25 = vmul.f32 %v867_v17, %v867_v17  ;;  %v320_v30 = vmul.f32 %v870_v18, %v870_v18 }
 0x181   :  { %v878_v27 = vsub.f32 %v803_v37, %v289_v23  ;;  %v881_v26 = vsub.f32 %v801_v36, %v281_v24  ;;  %v361_v29 = vsel %vm230_vm1, %v323_v25, 0.0  ;;  %v352_v39 = vsel %vm230_vm1, %v320_v30, 0.0 }
 0x182   :  { %v254_v31 = vpop.xlane.xlu1 %253  ;;  %362 = vadd.xlane.f32.xlu1 %v361_v29  ;;  %329 = vadd.xlane.f32.xlu0 %v328_v28  ;;  %v251_v32 = vpop.xlane.xlu0 %250 }
 0x183   :  { %v287_v33 = vmul.f32 0.03125, %v254_v31  ;;  %v286_v34 = vmul.f32 0.03125, %v251_v32  ;;  %v313_v35 = vmul.f32 %v881_v26, %v881_v26  ;;  %v321_v37 = vmul.f32 %v878_v27, %v878_v27 }
 0x185   :  { %v891_v36 = vsub.f32 %v811_v43, %v287_v33  ;;  %v894_v38 = vsub.f32 %v809_v42, %v286_v34  ;;  %v331_v40 = vsel %vm230_vm1, %v313_v35, 0.0  ;;  %v355_v52 = vsel %vm230_vm1, %v321_v37, 0.0 }
 0x186   :  { %v248_v41 = vpop.xlane.xlu1 %247  ;;  %353 = vadd.xlane.f32.xlu0 %v352_v39  ;;  %332 = vadd.xlane.f32.xlu1 %v331_v40  ;;  %v245_v44 = vpop.xlane.xlu0 %244 }
 0x187   :  { %v285_v45 = vmul.f32 0.03125, %v248_v41  ;;  %v284_v46 = vmul.f32 0.03125, %v245_v44  ;;  %v318_v47 = vmul.f32 %v894_v38, %v894_v38  ;;  %v319_v54 = vmul.f32 %v891_v36, %v891_v36  ;;  %v944_v44 = vld [vmem:[%s1066_s3] ss:$0 sm:$0xff] }
 0x189   :  { %v902_v43 = vsub.f32 %v823_v49, %v285_v45  ;;  %v905_v42 = vsub.f32 %v821_v48, %v284_v46  ;;  %v346_v53 = vsel %vm230_vm1, %v318_v47, 0.0  ;;  %v349_v63 = vsel %vm230_vm1, %v319_v54, 0.0  ;;  %v950_v54 = vld [vmem:[%s1067_s4] ss:$0 sm:$0xff] }
 0x18a   :  { %v272_v55 = vpop.xlane.xlu1 %271  ;;  %356 = vadd.xlane.f32.xlu1 %v355_v52  ;;  %347 = vadd.xlane.f32.xlu0 %v346_v53  ;;  %v269_v58 = vpop.xlane.xlu0 %268 }
 0x18b   :  { %v293_v59 = vmul.f32 0.03125, %v272_v55  ;;  %v292_v60 = vmul.f32 0.03125, %v269_v58  ;;  %v316_v61 = vmul.f32 %v905_v42, %v905_v42  ;;  %v317_v49 = vmul.f32 %v902_v43, %v902_v43 }
 0x18d   :  { %v915_v48 = vsub.f32 %v827_v51, %v293_v59  ;;  %v918_v62 = vsub.f32 %v825_v50, %v292_v60  ;;  %v340_v2 = vsel %vm230_vm1, %v316_v61, 0.0  ;;  %v343_v10 = vsel %vm230_vm1, %v317_v49, 0.0 }
 0x18e   :  { %v278_v3 = vpop.xlane.xlu1 %277  ;;  %350 = vadd.xlane.f32.xlu1 %v349_v63  ;;  %341 = vadd.xlane.f32.xlu0 %v340_v2  ;;  %v275_v4 = vpop.xlane.xlu0 %274 }
 0x18f   :  { %v295_v5 = vmul.f32 0.03125, %v278_v3  ;;  %v294_v6 = vmul.f32 0.03125, %v275_v4  ;;  %v324_v9 = vmul.f32 %v918_v62, %v918_v62  ;;  %v325_v12 = vmul.f32 %v915_v48, %v915_v48 }
 0x191   :  { %v926_v51 = vsub.f32 %v839_v57, %v295_v5  ;;  %v929_v50 = vsub.f32 %v837_v56, %v294_v6  ;;  %v364_v11 = vsel %vm230_vm1, %v324_v9, 0.0  ;;  %v367_v14 = vsel %vm230_vm1, %v325_v12, 0.0 }
 0x192   :  { %344 = vadd.xlane.f32.xlu1 %v343_v10  ;;  %365 = vadd.xlane.f32.xlu0 %v364_v11 }
 0x193   :  { %v326_v13 = vmul.f32 %v929_v50, %v929_v50  ;;  %v327_v57 = vmul.f32 %v926_v51, %v926_v51 }
 0x195   :  { %v370_v15 = vsel %vm230_vm1, %v326_v13, 0.0  ;;  %v373_v56 = vsel %vm230_vm1, %v327_v57, 0.0 }
 0x196   :  { %368 = vadd.xlane.f32.xlu1 %v367_v14  ;;  %371 = vadd.xlane.f32.xlu0 %v370_v15 }
 0x19a   :  { %374 = vadd.xlane.f32.xlu1 %v373_v56 }
 0x207   :  { %v336_v16 = vpop.xlane.xlu0 %335 }
 0x208   :  { %v378_v19 = vmul.f32 0.03125, %v336_v16 }
 0x20a   :  { %v394_v20 = vadd.f32 1e-05, %v378_v19 }
 0x20b   :  { %v339_v21 = vpop.xlane.xlu1 %338  ;;  %v360_v22 = vpop.xlane.xlu0 %359 }
 0x20c   :  { %675 = vrsqrt.f32 %v394_v20  ;;  %v379_v23 = vmul.f32 0.03125, %v339_v21  ;;  %v386_v24 = vmul.f32 0.03125, %v360_v22 }
 0x20e   :  { %v395_v25 = vadd.f32 1e-05, %v379_v23  ;;  %v402_v28 = vadd.f32 1e-05, %v386_v24 }
 0x20f   :  { %v363_v29 = vpop.xlane.xlu1 %362  ;;  %v330_v30 = vpop.xlane.xlu0 %329 }
 0x210   :  { %677 = vrsqrt.f32 %v395_v25  ;;  %v387_v31 = vmul.f32 0.03125, %v363_v29  ;;  %v376_v32 = vmul.f32 0.03125, %v330_v30 }
 0x211   :  { %679 = vrsqrt.f32 %v402_v28 }
 0x212   :  { %v403_v33 = vadd.f32 1e-05, %v387_v31  ;;  %v392_v34 = vadd.f32 1e-05, %v376_v32 }
 0x213   :  { %v333_v35 = vpop.xlane.xlu1 %332  ;;  %v354_v37 = vpop.xlane.xlu0 %353 }
 0x214   :  { %681 = vrsqrt.f32 %v403_v33  ;;  %v377_v39 = vmul.f32 0.03125, %v333_v35  ;;  %v384_v40 = vmul.f32 0.03125, %v354_v37 }
 0x215   :  { %683 = vrsqrt.f32 %v392_v34 }
 0x216   :  { %v676_v41 = vpop.eup %675  ;;  %v393_v45 = vadd.f32 1e-05, %v377_v39  ;;  %v400_v46 = vadd.f32 1e-05, %v384_v40 }
 0x217   :  { %v426_v47 = vmul.f32 %v676_v41, %v849_v1  ;;  %v357_v52 = vpop.xlane.xlu1 %356  ;;  %v348_v53 = vpop.xlane.xlu0 %347 }
 0x218   :  { %685 = vrsqrt.f32 %v393_v45  ;;  %v385_v55 = vmul.f32 0.03125, %v357_v52  ;;  %v382_v58 = vmul.f32 0.03125, %v348_v53 }
 0x219   :  { %v449_v59 = vmul.f32 %v944_v44, %v426_v47  ;;  %687 = vrsqrt.f32 %v400_v46 }
 0x21a   :  { %v678_v60 = vpop.eup %677  ;;  %v401_v61 = vadd.f32 1e-05, %v385_v55  ;;  %v398_v49 = vadd.f32 1e-05, %v382_v58 }
 0x21b   :  { %v680_v63 = vpop.eup %679  ;;  %v472_v1 = vadd.f32 %v950_v54, %v449_v59  ;;  %v427_v2 = vmul.f32 %v678_v60, %v854_v7  ;;  %v351_v3 = vpop.xlane.xlu1 %350 }
 0x21c   :  { %v342_v4 = vpop.xlane.xlu0 %341  ;;  %v434_v5 = vmul.f32 %v680_v63, %v846_v0  ;;  %689 = vrsqrt.f32 %v401_v61  ;;  %v383_v6 = vmul.f32 0.03125, %v351_v3 }
 0x21d   :  { %v380_v9 = vmul.f32 0.03125, %v342_v4  ;;  %v611_v10 = vpack.c.bf16 %v472_v1, %v472_v1  ;;  %v450_v11 = vmul.f32 %v944_v44, %v427_v2  ;;  %691 = vrsqrt.f32 %v398_v49 }
 0x21e   :  { %v682_v12 = vpop.eup %681  ;;  %v457_v13 = vmul.f32 %v944_v44, %v434_v5  ;;  %v399_v14 = vadd.f32 1e-05, %v383_v6 }
 0x21f   :  { %v396_v15 = vadd.f32 1e-05, %v380_v9  ;;  %v684_v57 = vpop.eup %683  ;;  %553 = vst.msk [vmem:[%s1068_s5 + $0x8] sm:$0xf] %vm550_vm2, %v611_v10  ;;  %v473_v0 = vadd.f32 %v950_v54, %v450_v11  ;;  %v435_v7 = vmul.f32 %v682_v12, %v867_v17  ;;  %v345_v56 = vpop.xlane.xlu1 %344 }
 0x220   :  { %v366_v16 = vpop.xlane.xlu0 %365  ;;  %v480_v19 = vadd.f32 %v950_v54, %v457_v13  ;;  %v424_v20 = vmul.f32 %v684_v57, %v857_v8  ;;  %693 = vrsqrt.f32 %v399_v14  ;;  %v381_v21 = vmul.f32 0.03125, %v345_v56 }
 0x221   :  { %v612_v22 = vpack.c.bf16 %v473_v0, %v473_v0  ;;  %v458_v23 = vmul.f32 %v944_v44, %v435_v7  ;;  %695 = vrsqrt.f32 %v396_v15  ;;  %v388_v24 = vmul.f32 0.03125, %v366_v16 }
 0x222   :  { %v686_v25 = vpop.eup %685  ;;  %v619_v28 = vpack.c.bf16 %v480_v19, %v480_v19  ;;  %v447_v29 = vmul.f32 %v944_v44, %v424_v20  ;;  %v397_v30 = vadd.f32 1e-05, %v381_v21 }
 0x223   :  { %v688_v31 = vpop.eup %687  ;;  %554 = vst.msk [vmem:[%s1068_s5 + $0xc] sm:$0xf] %vm550_vm2, %v612_v22  ;;  %v481_v8 = vadd.f32 %v950_v54, %v458_v23  ;;  %v425_v17 = vmul.f32 %v686_v25, %v881_v26  ;;  %v404_v32 = vadd.f32 1e-05, %v388_v24  ;;  %v369_v33 = vpop.xlane.xlu1 %368 }
 0x224   :  { %v372_v34 = vpop.xlane.xlu0 %371  ;;  %561 = vst.msk [vmem:[%s1068_s5 + $0x28] sm:$0xf] %vm550_vm2, %v619_v28  ;;  %v470_v35 = vadd.f32 %v950_v54, %v447_v29  ;;  %v432_v37 = vmul.f32 %v688_v31, %v870_v18  ;;  %697 = vrsqrt.f32 %v397_v30  ;;  %v389_v39 = vmul.f32 0.03125, %v369_v33 }
 0x225   :  { %v620_v40 = vpack.c.bf16 %v481_v8, %v481_v8  ;;  %v448_v41 = vmul.f32 %v944_v44, %v425_v17  ;;  %699 = vrsqrt.f32 %v404_v32  ;;  %v390_v45 = vmul.f32 0.03125, %v372_v34 }
 0x226   :  { %v690_v26 = vpop.eup %689  ;;  %v609_v46 = vpack.c.bf16 %v470_v35, %v470_v35  ;;  %v455_v47 = vmul.f32 %v944_v44, %v432_v37  ;;  %v405_v52 = vadd.f32 1e-05, %v389_v39 }
 0x227   :  { %v692_v53 = vpop.eup %691  ;;  %562 = vst.msk [vmem:[%s1068_s5 + $0x2c] sm:$0xf] %vm550_vm2, %v620_v40  ;;  %v471_v18 = vadd.f32 %v950_v54, %v448_v41  ;;  %v433_v55 = vmul.f32 %v690_v26, %v878_v27  ;;  %v406_v58 = vadd.f32 1e-05, %v390_v45  ;;  %v375_v59 = vpop.xlane.xlu1 %374 }
 0x228   :  { %551 = vst.msk [vmem:[%s1068_s5] sm:$0xf] %vm550_vm2, %v609_v46  ;;  %v478_v60 = vadd.f32 %v950_v54, %v455_v47  ;;  %v430_v61 = vmul.f32 %v692_v53, %v894_v38  ;;  %701 = vrsqrt.f32 %v405_v52  ;;  %v391_v49 = vmul.f32 0.03125, %v375_v59 }
 0x229   :  { %v610_v63 = vpack.c.bf16 %v471_v18, %v471_v18  ;;  %v456_v1 = vmul.f32 %v944_v44, %v433_v55  ;;  %703 = vrsqrt.f32 %v406_v58 }
 0x22a   :  { %v694_v2 = vpop.eup %693  ;;  %v617_v3 = vpack.c.bf16 %v478_v60, %v478_v60  ;;  %v453_v27 = vmul.f32 %v944_v44, %v430_v61  ;;  %v407_v4 = vadd.f32 1e-05, %v391_v49 }
 0x22b   :  { %v696_v5 = vpop.eup %695  ;;  %552 = vst.msk [vmem:[%s1068_s5 + $0x4] sm:$0xf] %vm550_vm2, %v610_v63  ;;  %v479_v6 = vadd.f32 %v950_v54, %v456_v1  ;;  %v431_v38 = vmul.f32 %v694_v2, %v891_v36 }
 0x22c   :  { %559 = vst.msk [vmem:[%s1068_s5 + $0x20] sm:$0xf] %vm550_vm2, %v617_v3  ;;  %v476_v9 = vadd.f32 %v950_v54, %v453_v27  ;;  %v428_v10 = vmul.f32 %v696_v5, %v905_v42  ;;  %705 = vrsqrt.f32 %v407_v4 }
 0x22d   :  { %v618_v11 = vpack.c.bf16 %v479_v6, %v479_v6  ;;  %v454_v12 = vmul.f32 %v944_v44, %v431_v38 }
 0x22e   :  { %v698_v13 = vpop.eup %697  ;;  %v615_v14 = vpack.c.bf16 %v476_v9, %v476_v9  ;;  %v451_v15 = vmul.f32 %v944_v44, %v428_v10 }
 0x22f   :  { %v700_v57 = vpop.eup %699  ;;  %560 = vst.msk [vmem:[%s1068_s5 + $0x24] sm:$0xf] %vm550_vm2, %v618_v11  ;;  %v477_v36 = vadd.f32 %v950_v54, %v454_v12  ;;  %v429_v0 = vmul.f32 %v698_v13, %v902_v43 }
 0x230   :  { %557 = vst.msk [vmem:[%s1068_s5 + $0x18] sm:$0xf] %vm550_vm2, %v615_v14  ;;  %v474_v42 = vadd.f32 %v950_v54, %v451_v15  ;;  %v436_v7 = vmul.f32 %v700_v57, %v918_v62 }
 0x231   :  { %v616_v56 = vpack.c.bf16 %v477_v36, %v477_v36  ;;  %v452_v16 = vmul.f32 %v944_v44, %v429_v0 }
 0x232   :  { %v702_v19 = vpop.eup %701  ;;  %v613_v20 = vpack.c.bf16 %v474_v42, %v474_v42  ;;  %v459_v21 = vmul.f32 %v944_v44, %v436_v7 }
 0x233   :  { %v704_v22 = vpop.eup %703  ;;  %558 = vst.msk [vmem:[%s1068_s5 + $0x1c] sm:$0xf] %vm550_vm2, %v616_v56  ;;  %v475_v43 = vadd.f32 %v950_v54, %v452_v16  ;;  %v437_v23 = vmul.f32 %v702_v19, %v915_v48 }
 0x234   :  { %555 = vst.msk [vmem:[%s1068_s5 + $0x10] sm:$0xf] %vm550_vm2, %v613_v20  ;;  %v482_v62 = vadd.f32 %v950_v54, %v459_v21  ;;  %v438_v24 = vmul.f32 %v704_v22, %v929_v50 }
 0x235   :  { %v614_v25 = vpack.c.bf16 %v475_v43, %v475_v43  ;;  %v460_v28 = vmul.f32 %v944_v44, %v437_v23 }
 0x236   :  { %v706_v29 = vpop.eup %705  ;;  %v621_v30 = vpack.c.bf16 %v482_v62, %v482_v62  ;;  %v461_v31 = vmul.f32 %v944_v44, %v438_v24 }
 0x237   :  { %556 = vst.msk [vmem:[%s1068_s5 + $0x14] sm:$0xf] %vm550_vm2, %v614_v25  ;;  %v483_v48 = vadd.f32 %v950_v54, %v460_v28  ;;  %v439_v8 = vmul.f32 %v706_v29, %v926_v51 }
 0x238   :  { %563 = vst.msk [vmem:[%s1068_s5 + $0x30] sm:$0xf] %vm550_vm2, %v621_v30  ;;  %v484_v50 = vadd.f32 %v950_v54, %v461_v31 }
 0x239   :  { %v622_v17 = vpack.c.bf16 %v483_v48, %v483_v48  ;;  %v462_v32 = vmul.f32 %v944_v44, %v439_v8 }
 0x23a   :  { %v623_v33 = vpack.c.bf16 %v484_v50, %v484_v50 }
 0x23b   :  { %564 = vst.msk [vmem:[%s1068_s5 + $0x34] sm:$0xf] %vm550_vm2, %v622_v17  ;;  %v485_v34 = vadd.f32 %v950_v54, %v462_v32 }
 0x23c   :  { %565 = vst.msk [vmem:[%s1068_s5 + $0x38] sm:$0xf] %vm550_vm2, %v623_v33 }
 0x23d   :  { %v624_v51 = vpack.c.bf16 %v485_v34, %v485_v34 }
 0x23f   :  { %566 = vst.msk [vmem:[%s1068_s5 + $0x3c] sm:$0xf] %vm550_vm2, %v624_v51 }

// kernel: _lambda_.12
= control target key start
LH: loop header
LB: loop body
LE: loop exit
PB: predicated region body
PF: predicated region fallthrough
CT: control target
= control target key end

     0   :  { %s3366_s13 = smov 0   ;;  %s3368_s14 = smov 0   ;;  %s4134_s0 = inlined_call_operand.vmem [shape: bf16[2,4,16,32], index: 0, kind: input, shape index: {}]   ;;  %s4135_s1 = inlined_call_operand.vmem [shape: bf16[32,96], index: 1, kind: input, shape index: {}]   ;;  %s4136_s2 = inlined_call_operand.vmem [shape: f32[1,96], index: 2, kind: input, shape index: {}]   ;;  %s4137_s3 = inlined_call_operand.vmem [shape: bf16[32,32], index: 3, kind: input, shape index: {}]   ;;  %s4138_s4 = inlined_call_operand.vmem [shape: f32[1,32], index: 4, kind: input, shape index: {}]   ;;  %s4139_s5 = inlined_call_operand.vmem [shape: f32[2,16,16], index: 5, kind: input, shape index: {}]   ;;  %s4140_s6 = inlined_call_operand.vmem [shape: f32[4,16,16], index: 6, kind: input, shape index: {}]   ;;  %s4141_s7 = inlined_call_operand.vmem [shape: f32[1,32], index: 7, kind: input, shape index: {}]   ;;  %s4142_s8 = inlined_call_operand.vmem [shape: f32[1,32], index: 8, kind: input, shape index: {}]   ;;  %s4143_s9 = inlined_call_operand.vmem [shape: f32[2,1,1], index: 9, kind: input, shape index: {}]   ;;  %s4144_s10 = inlined_call_operand.vmem [shape: bf16[2,4,16,32], index: 10, kind: output, shape index: {}]  }
   0x1   :  { %s3370_s15 = smov 0  }
   0x2 LB: > { %s32_s16 = sadd.s32 1, %s3298_s14  ;;  %p2700_p0 = scmp.ge.s32.totalorder %s3302_s15, 1  ;;  %s3302_s15 = sphi %s3370_s15, %s20_s15   ;;  %s3298_s14 = sphi %s3368_s14, %s4148_s14   ;;  %s3294_s13 = sphi %s3366_s13, %s4147_s13  }
   0x3   : > { %p34_p1 = scmp.ge.s32.totalorder %s32_s16, 2  ;;  %p346_p2 = scmp.lt.s32.totalorder %s3302_s15, 3 }
   0x5   : > { %s4150_s16 = smov (%p34_p1, %s32_s16), 0  ;;  %p347_p3 = pnand %p2700_p0, %p346_p2 }
   0x6   : > { %v3120_v0 = vld [vmem:[%s4135_s1] sm:$0xff] (!%p347_p3)   ;;  %p401_p4 = scmp.lt.s32.totalorder (!%p347_p3), %s3294_s13, 1  ;;  %v3121_v1 = vld [vmem:[%s4135_s1 + $0x8] sm:$0xff] (!%p347_p3)   ;;  %vm489_vm0 = vcmask (!%p347_p3), 261120   ;;  %s3304_s27 = smov (!%p347_p3), 112   ;;  %vm615_vm1 = vcmask (!%p347_p3), 130048  }
   0x7   : > { %350 = sbr.rel (%p347_p3) target bundleno = 2333 (0x91d), region = 60  ;;  %2847 = vmatprep.subr.bf16.mxu0 (!%p347_p3), %v3120_v0  ;;  %3023 = vmatprep.subr.bf16.mxu1 (!%p347_p3), %v3120_v0  ;;  %v2705_v6 = vld [vmem:[%s4136_s2] ss:$0 sm:$0xff] (!%p347_p3)  ;;  %s3305_s28 = smov (!%p347_p3), 96   ;;  %vm3646_vm2 = vmpackc.low (!%p347_p3), %vm615_vm1, %vm615_vm1  ;;  %vm3309_vm3 = vmmov (!%p347_p3), 0   ;;  %vm2575_vm4 = vcmask (!%p347_p3), 257024  }
   0x8   : > { %2848 = vmatpush3.bf16.msra.mxu0 (!%p347_p3), %v3120_v0  ;;  %3025 = vmatpush3.bf16.msra.mxu1 (!%p347_p3), %v3120_v0  ;;  %s3307_s22 = smov (!%p347_p3), 64   ;;  %s3310_s18 = smov (!%p347_p3), 16  }
   0x9   : > { %2849 = vmatprep.subr.bf16.mxu0 (!%p347_p3), %v3121_v1  ;;  %3024 = vmatprep.subr.bf16.mxu1 (!%p347_p3), %v3121_v1 }
   0xc   : > { %2850 = vmatpush3.bf16.msra.mxu0 (!%p347_p3), %v3121_v1  ;;  %3026 = vmatpush3.bf16.msra.mxu1 (!%p347_p3), %v3121_v1 }
   0xe   : > { %s4152_s13 = smov (!%p401_p4, %s3294_s13), 1 }
   0xf   : > { %s2777_s21 = sshll.u32 %s4152_s13, 5 }
  0x10   : > { %s3398_s24 = scalar_lea.vmem %s4134_s0, %s2777_s21  ;;  %s4086_s29 = scalar_lea.vmem %s4144_s10, %s2777_s21 }
  0x11   : > { %v430_v2 = vld [vmem:[%s3398_s24] sm:$0xff]   ;;  %v432_v3 = vld [vmem:[%s3398_s24 + $0x8] sm:$0xff]   ;;  %v434_v4 = vld [vmem:[%s3398_s24 + $0x10] sm:$0xff]  }
  0x12   : > { %v436_v5 = vld [vmem:[%s3398_s24 + $0x18] sm:$0xff]   ;;  %2851 = vmatprep.mubr.msk.bf16.mxu0 %vm489_vm0, %v430_v2  ;;  %2855 = vmatprep.mubr.msk.bf16.mxu1 %vm489_vm0, %v434_v4 }
  0x13   : > { %2852 = vmatmul.mubr.msk.bf16.vlgmr.msra.gmra.mrb[0].mxu0 %vm489_vm0, %v432_v3  ;;  %2856 = vmatmul.mubr.msk.bf16.vlgmr.msra.gmra.mrb[0].mxu1 %vm489_vm0, %v436_v5 }
  0xe6   : > { %v2853_v7 = vpop.f32.mrb[0].mxu0  ;;  %v2857_v12 = vpop.f32.mrb[0].mxu1 }
  0xe7   : > { %v3411_v8 = vadd.f32 %v2853_v7, %v2705_v6  ;;  %v536_v9 = vpop.f32.mrb[1].mxu0  ;;  %v552_v14 = vpop.f32.mrb[1].mxu1  ;;  %v3431_v22 = vadd.f32 %v2857_v12, %v2705_v6 }
  0xe8   : > { %v3413_v10 = vadd.f32 %v2705_v6, %v536_v9  ;;  %v2854_v11 = vpop.f32.mrb[2].mxu0  ;;  %v2858_v15 = vpop.f32.mrb[2].mxu1  ;;  %v3425_v20 = vadd.f32 %v2705_v6, %v552_v14 }
  0xe9   : > { %579 = vrot.lane.b32.xlu1 %v3411_v8, %s3304_s27  ;;  %v539_v13 = vpop.f32.mrb[3].mxu0  ;;  %v3417_v16 = vadd.f32 %v2854_v11, %v2705_v6  ;;  %v555_v17 = vpop.f32.mrb[3].mxu1  ;;  %v3423_v19 = vadd.f32 %v2858_v15, %v2705_v6  ;;  %v3453_v26 = vmul.f32 %v3411_v8, %v3411_v8  ;;  %v3465_v28 = vmul.f32 %v3431_v22, %v3431_v22 }
  0xea   : > { %575 = vrot.lane.b32.xlu0 %v3413_v10, %s3304_s27  ;;  %v3419_v18 = vadd.f32 %v2705_v6, %v539_v13  ;;  %v3429_v21 = vadd.f32 %v2705_v6, %v555_v17  ;;  %v3441_v24 = vmul.f32 %v3413_v10, %v3413_v10  ;;  %v3477_v30 = vmul.f32 %v3425_v20, %v3425_v20 }
  0xeb   : > { %v3437_v23 = vmul.f32 %v3417_v16, %v3417_v16  ;;  %v3449_v25 = vmul.f32 %v3423_v19, %v3423_v19  ;;  %v622_v14 = vsel %vm615_vm1, %v3453_v26, 0.0  ;;  %v634_v17 = vsel %vm615_vm1, %v3465_v28, 0.0 }
  0xec   : > { %v3461_v27 = vmul.f32 %v3419_v18, %v3419_v18  ;;  %v3473_v29 = vmul.f32 %v3429_v21, %v3429_v21  ;;  %v616_v3 = vsel %vm615_vm1, %v3441_v24, 0.0  ;;  %v628_v15 = vsel %vm615_vm1, %v3477_v30, 0.0 }
  0xed   : > { %581 = vrot.lane.b32.xlu1 %v3417_v16, %s3304_s27 }
  0xee   : > { %577 = vrot.lane.b32.xlu0 %v3419_v18, %s3304_s27 }
  0xf1   : > { %589 = vrot.lane.b32.xlu1 %v3423_v19, %s3304_s27 }
  0xf2   : > { %583 = vrot.lane.b32.xlu0 %v3425_v20, %s3304_s27 }
  0xf5   : > { %585 = vrot.lane.b32.xlu1 %v3429_v21, %s3304_s27 }
  0xf6   : > { %587 = vrot.lane.b32.xlu0 %v3431_v22, %s3304_s27 }
  0xf9   : > { %734 = vrot.lane.b32.xlu1 %v3437_v23, %s3305_s28 }
  0xfa   : > { %728 = vrot.lane.b32.xlu0 %v3441_v24, %s3305_s28 }
  0xfd   : > { %742 = vrot.lane.b32.xlu1 %v3449_v25, %s3305_s28 }
  0xfe   : > { %732 = vrot.lane.b32.xlu0 %v3453_v26, %s3305_s28  ;;  %v619_v26 = vsel %vm615_vm1, %v3461_v27, 0.0 }
 0x101   : > { %730 = vrot.lane.b32.xlu1 %v3461_v27, %s3305_s28  ;;  %v625_v27 = vsel %vm615_vm1, %v3437_v23, 0.0 }
 0x102   : > { %740 = vrot.lane.b32.xlu0 %v3465_v28, %s3305_s28 }
 0x105   : > { %738 = vrot.lane.b32.xlu1 %v3473_v29, %s3305_s28 }
 0x106   : > { %736 = vrot.lane.b32.xlu0 %v3477_v30, %s3305_s28 }
 0x15b   : > { %v3483_v31 = vpop.permute.xlu1 %579 }
 0x15c   : > { %v3485_v32 = vpop.permute.xlu0 %575  ;;  %v3489_v33 = vmul.f32 %v3483_v31, %v3483_v31 }
 0x15d   : > { %v3503_v37 = vmul.f32 %v3485_v32, %v3485_v32 }
 0x15e   : > { %748 = vrot.lane.b32.xlu0 %v3489_v33, %s3305_s28  ;;  %v646_v23 = vsel %vm615_vm1, %v3489_v33, 0.0 }
 0x15f   : > { %v3493_v34 = vpop.permute.xlu1 %581 }
 0x160   : > { %v3495_v35 = vpop.permute.xlu0 %577  ;;  %v3499_v36 = vmul.f32 %v3493_v34, %v3493_v34 }
 0x161   : > { %v3542_v57 = vmul.f32 %v3495_v35, %v3495_v35 }
 0x162   : > { %750 = vrot.lane.b32.xlu1 %v3499_v36, %s3305_s28  ;;  %744 = vrot.lane.b32.xlu0 %v3503_v37, %s3305_s28 }
 0x163   : > { %v3509_v38 = vpop.permute.xlu1 %589 }
 0x164   : > { %v3511_v39 = vpop.permute.xlu0 %583  ;;  %v3515_v40 = vmul.f32 %v3509_v38, %v3509_v38 }
 0x165   : > { %v3529_v43 = vmul.f32 %v3511_v39, %v3511_v39 }
 0x166   : > { %758 = vrot.lane.b32.xlu1 %v3515_v40, %s3305_s28 }
 0x167   : > { %v3533_v47 = vpop.permute.xlu1 %585 }
 0x168   : > { %v3519_v41 = vpop.permute.xlu0 %587  ;;  %v3550_v61 = vmul.f32 %v3533_v47, %v3533_v47 }
 0x169   : > { %v3523_v42 = vmul.f32 %v3519_v41, %v3519_v41 }
 0x16b   : > { %756 = vrot.lane.b32.xlu0 %v3523_v42, %s3305_s28  ;;  %v735_v49 = vpop.permute.xlu1 %734 }
 0x16c   : > { %v729_v44 = vpop.permute.xlu0 %728  ;;  %v785_v55 = vsel %vm615_vm1, %v735_v49, 0.0 }
 0x16d   : > { %v776_v53 = vsel %vm615_vm1, %v729_v44, 0.0 }
 0x16f   : > { %752 = vrot.lane.b32.xlu0 %v3529_v43, %s3305_s28  ;;  %v743_v52 = vpop.permute.xlu1 %742 }
 0x170   : > { %v733_v45 = vpop.permute.xlu0 %732  ;;  %v797_v56 = vsel %vm615_vm1, %v743_v52, 0.0 }
 0x171   : > { %v782_v51 = vsel %vm615_vm1, %v733_v45, 0.0 }
 0x173   : > { %v731_v54 = vpop.permute.xlu1 %730 }
 0x174   : > { %v741_v46 = vpop.permute.xlu0 %740  ;;  %v779_v4 = vsel %vm615_vm1, %v731_v54, 0.0 }
 0x175   : > { %v794_v60 = vsel %vm615_vm1, %v741_v46, 0.0 }
 0x177   : > { %v739_v58 = vpop.permute.xlu1 %738 }
 0x178   : > { %v737_v48 = vpop.permute.xlu0 %736  ;;  %v791_v59 = vsel %vm615_vm1, %v739_v58, 0.0 }
 0x179   : > { %v788_v50 = vsel %vm615_vm1, %v737_v48, 0.0 }
 0x18a   : > { %789 = vadd.xlane.f32.xlu1 %v788_v50 }
 0x18e   : > { %783 = vadd.xlane.f32.xlu0 %v782_v51 }
 0x192   : > { %777 = vadd.xlane.f32.xlu0 %v776_v53 }
 0x196   : > { %786 = vadd.xlane.f32.xlu0 %v785_v55 }
 0x19a   : > { %798 = vadd.xlane.f32.xlu0 %v797_v56 }
 0x19b   : > { %746 = vrot.lane.b32.xlu1 %v3542_v57, %s3305_s28 }
 0x19e   : > { %792 = vadd.xlane.f32.xlu0 %v791_v59  ;;  %v631_v59 = vsel %vm615_vm1, %v3473_v29, 0.0  ;;  %v649_v29 = vsel %vm615_vm1, %v3499_v36, 0.0 }
 0x1bf   : > { %795 = vadd.xlane.f32.xlu1 %v794_v60  ;;  %v637_v60 = vsel %vm615_vm1, %v3449_v25, 0.0  ;;  %v652_v25 = vsel %vm615_vm1, %v3529_v43, 0.0 }
 0x1d0   : > { %754 = vrot.lane.b32.xlu1 %v3550_v61, %s3305_s28  ;;  %v749_v2 = vpop.permute.xlu0 %748 }
 0x1d1   : > { %v806_v6 = vsel %vm615_vm1, %v749_v2, 0.0  ;;  %v661_v2 = vsel %vm615_vm1, %v3515_v40, 0.0 }
 0x1d4   : > { %v751_v62 = vpop.permute.xlu1 %750  ;;  %v745_v5 = vpop.permute.xlu0 %744 }
 0x1d5   : > { %v809_v63 = vsel %vm615_vm1, %v751_v62, 0.0  ;;  %v800_v11 = vsel %vm615_vm1, %v745_v5, 0.0  ;;  %v640_v62 = vsel %vm615_vm1, %v3503_v37, 0.0  ;;  %v658_v37 = vsel %vm615_vm1, %v3523_v42, 0.0 }
 0x1d6   : > { %810 = vadd.xlane.f32.xlu0 %v809_v63  ;;  %v643_v63 = vsel %vm615_vm1, %v3542_v57, 0.0 }
 0x1d8   : > { %v759_v0 = vpop.permute.xlu1 %758 }
 0x1d9   : > { %v821_v1 = vsel %vm615_vm1, %v759_v0, 0.0 }
 0x1da   : > { %822 = vadd.xlane.f32.xlu0 %v821_v1 }
 0x1dd   : > { %v757_v7 = vpop.permute.xlu0 %756 }
 0x1de   : > { %v818_v9 = vsel %vm615_vm1, %v757_v7, 0.0 }
 0x1e1   : > { %v753_v12 = vpop.permute.xlu0 %752 }
 0x1e2   : > { %v812_v13 = vsel %vm615_vm1, %v753_v12, 0.0 }
 0x1f4   : > { %617 = vadd.xlane.f32.xlu1 %v616_v3 }
 0x1f8   : > { %780 = vadd.xlane.f32.xlu1 %v779_v4 }
 0x1fc   : > { %807 = vadd.xlane.f32.xlu1 %v806_v6 }
 0x200   : > { %819 = vadd.xlane.f32.xlu1 %v818_v9 }
 0x204   : > { %801 = vadd.xlane.f32.xlu1 %v800_v11 }
 0x208   : > { %813 = vadd.xlane.f32.xlu1 %v812_v13 }
 0x20c   : > { %623 = vadd.xlane.f32.xlu1 %v622_v14 }
 0x210   : > { %629 = vadd.xlane.f32.xlu1 %v628_v15 }
 0x214   : > { %635 = vadd.xlane.f32.xlu1 %v634_v17 }
 0x217   : > { %v790_v24 = vpop.xlane.xlu1 %789 }
 0x218   : > { %v828_v33 = vmax.f32 %v790_v24, 1e-24 }
 0x21b   : > { %v747_v44 = vpop.permute.xlu1 %746  ;;  %v784_v45 = vpop.xlane.xlu0 %783 }
 0x21c   : > { %v803_v46 = vsel %vm615_vm1, %v747_v44, 0.0  ;;  %v826_v49 = vmax.f32 %v784_v45, 1e-24 }
 0x21d   : > { %804 = vadd.xlane.f32.xlu0 %v803_v46 }
 0x21e   : > { %3132 = vrsqrt.f32 %v826_v49 }
 0x21f   : > { %v778_v48 = vpop.xlane.xlu0 %777 }
 0x220   : > { %v824_v5 = vmax.f32 %v778_v48, 1e-24 }
 0x221   : > { %620 = vadd.xlane.f32.xlu0 %v619_v26 }
 0x223   : > { %v787_v50 = vpop.xlane.xlu0 %786 }
 0x224   : > { %v827_v30 = vmax.f32 %v787_v50, 1e-24 }
 0x226   : > { %3134 = vrsqrt.f32 %v827_v30 }
 0x227   : > { %v799_v0 = vpop.xlane.xlu0 %798 }
 0x228   : > { %v3133_v51 = vpop.eup %3132  ;;  %v831_v36 = vmax.f32 %v799_v0, 1e-24 }
 0x229   : > { %v858_v28 = vmul.f32 %v3133_v51, %v3411_v8 }
 0x22b   : > { %v793_v1 = vpop.xlane.xlu0 %792 }
 0x22c   : > { %v829_v57 = vmax.f32 %v793_v1, 1e-24 }
 0x22e   : > { %3136 = vrsqrt.f32 %v829_v57  ;;  %v655_v57 = vsel %vm615_vm1, %v3550_v61, 0.0 }
 0x22f   : > { %3138 = vrsqrt.f32 %v828_v33 }
 0x230   : > { %v3135_v52 = vpop.eup %3134 }
 0x231   : > { %v859_v53 = vmul.f32 %v3135_v52, %v3417_v16 }
 0x233   : > { %v3058_v54 = vpack.i.bf16 %v859_v53, %v858_v28 }
 0x235   : > { %3059 = vrot.lane.b32.xlu1 %v3058_v54, %s3305_s28 }
 0x238   : > { %v3137_v7 = vpop.eup %3136 }
 0x239   : > { %v3139_v9 = vpop.eup %3138  ;;  %v861_v40 = vmul.f32 %v3137_v7, %v3429_v21 }
 0x23a   : > { %v860_v13 = vmul.f32 %v3139_v9, %v3425_v20 }
 0x23c   : > { %v3068_v24 = vpack.i.bf16 %v861_v40, %v860_v13 }
 0x24c   : > { %v796_v55 = vpop.xlane.xlu1 %795 }
 0x24d   : > { %v830_v3 = vmax.f32 %v796_v55, 1e-24 }
 0x24f   : > { %3140 = vrsqrt.f32 %v830_v3 }
 0x250   : > { %v755_v56 = vpop.permute.xlu1 %754  ;;  %3142 = vrsqrt.f32 %v831_v36 }
 0x251   : > { %v815_v58 = vsel %vm615_vm1, %v755_v56, 0.0 }
 0x252   : > { %816 = vadd.xlane.f32.xlu0 %v815_v58 }
 0x256   : > { %626 = vadd.xlane.f32.xlu0 %v625_v27 }
 0x259   : > { %v3141_v12 = vpop.eup %3140 }
 0x25a   : > { %632 = vadd.xlane.f32.xlu0 %v631_v59  ;;  %v3143_v14 = vpop.eup %3142  ;;  %v862_v44 = vmul.f32 %v3141_v12, %v3431_v22  ;;  %v3306_v12 = vmov 0  }
 0x25b   : > { %v863_v48 = vmul.f32 %v3143_v14, %v3423_v19  ;;  %3098 = vset.pattern.permute.xlu0 %v3306_v12  ;;  %3099 = vset.pattern.permute.xlu1 %v3306_v12 }
 0x25d   : > { %v3073_v50 = vpack.i.bf16 %v863_v48, %v862_v44 }
 0x25e   : > { %638 = vadd.xlane.f32.xlu0 %v637_v60 }
 0x262   : > { %641 = vadd.xlane.f32.xlu0 %v640_v62 }
 0x263   : > { %v811_v56 = vpop.xlane.xlu0 %810 }
 0x266   : > { %644 = vadd.xlane.f32.xlu0 %v643_v63 }
 0x267   : > { %v823_v58 = vpop.xlane.xlu0 %822 }
 0x268   : > { %v839_v9 = vmax.f32 %v823_v58, 1e-24 }
 0x26a   : > { %647 = vadd.xlane.f32.xlu0 %v646_v23 }
 0x26e   : > { %650 = vadd.xlane.f32.xlu0 %v649_v29 }
 0x272   : > { %653 = vadd.xlane.f32.xlu0 %v652_v25  ;;  %v835_v25 = vmax.f32 %v811_v56, 1e-24 }
 0x276   : > { %659 = vadd.xlane.f32.xlu0 %v658_v37 }
 0x27a   : > { %662 = vadd.xlane.f32.xlu0 %v661_v2 }
 0x281   : > { %v618_v4 = vpop.xlane.xlu1 %617 }
 0x282   : > { %v664_v43 = vmax.f32 %v618_v4, 1e-24 }
 0x284   : > { %3144 = vrsqrt.f32 %v664_v43 }
 0x285   : > { %v781_v6 = vpop.xlane.xlu1 %780  ;;  %3146 = vrsqrt.f32 %v824_v5 }
 0x286   : > { %v825_v42 = vmax.f32 %v781_v6, 1e-24 }
 0x288   : > { %3148 = vrsqrt.f32 %v825_v42 }
 0x289   : > { %v808_v11 = vpop.xlane.xlu1 %807 }
 0x28a   : > { %v834_v29 = vmax.f32 %v808_v11, 1e-24 }
 0x28d   : > { %v820_v15 = vpop.xlane.xlu1 %819 }
 0x28e   : > { %v3145_v17 = vpop.eup %3144  ;;  %v838_v42 = vmax.f32 %v820_v15, 1e-24 }
 0x28f   : > { %v696_v45 = vmul.f32 %v3145_v17, %v3413_v10  ;;  %v3147_v46 = vpop.eup %3146 }
 0x290   : > { %3069 = vrot.lane.b32.xlu0 %v3068_v24, %s3305_s28  ;;  %v856_v30 = vmul.f32 %v3147_v46, %v3413_v10 }
 0x291   : > { %2863 = vmatprep.mubr.msk.f32.mxu1 %vm615_vm1, %v696_v45  ;;  %v802_v49 = vpop.xlane.xlu1 %801 }
 0x292   : > { %v3149_v26 = vpop.eup %3148  ;;  %v832_v27 = vmax.f32 %v802_v49, 1e-24 }
 0x293   : > { %v857_v51 = vmul.f32 %v3149_v26, %v3419_v18 }
 0x294   : > { %3074 = vrot.lane.b32.xlu0 %v3073_v50, %s3305_s28 }
 0x295   : > { %v814_v52 = vpop.xlane.xlu1 %813  ;;  %v3063_v28 = vpack.i.bf16 %v857_v51, %v856_v30  ;;  %v2749_v51 = vld [vmem:[%s4143_s9 + $0x1] ss:$0 sm:$0xff] }
 0x296   : > { %v836_v6 = vmax.f32 %v814_v52, 1e-24  ;;  %v2748_v52 = vld [vmem:[%s4143_s9] ss:$0 sm:$0xff] }
 0x297   : > { %3064 = vrot.lane.b32.xlu1 %v3063_v28, %s3305_s28 }
 0x299   : > { %v3607_v53 = vpop.xlane.xlu1 %623 }
 0x29d   : > { %v630_v54 = vpop.xlane.xlu1 %629 }
 0x29e   : > { %v668_v55 = vmax.f32 %v630_v54, 1e-24 }
 0x2a0   : > { %3150 = vrsqrt.f32 %v668_v55 }
 0x2a1   : > { %3152 = vrsqrt.f32 %v832_v27  ;;  %v636_v56 = vpop.xlane.xlu1 %635 }
 0x2aa   : > { %v3151_v59 = vpop.eup %3150  ;;  %v805_v60 = vpop.xlane.xlu0 %804 }
 0x2ab   : > { %v833_v62 = vmax.f32 %v805_v60, 1e-24  ;;  %v700_v63 = vmul.f32 %v3151_v59, %v3425_v20  ;;  %v3153_v23 = vpop.eup %3152  ;;  %v666_v59 = vmax.f32 %v3607_v53, 1e-24  ;;  %v3060_v60 = vpop.permute.xlu1 %3059 }
 0x2ac   : > { %v864_v37 = vmul.f32 %v3153_v23, %v3485_v32 }
 0x2ad   : > { %3154 = vrsqrt.f32 %v833_v62  ;;  %2877 = vmatprep.mubr.msk.f32.mxu0 %vm615_vm1, %v700_v63 }
 0x2ae   : > { %3156 = vrsqrt.f32 %v834_v29  ;;  %v621_v43 = vpop.xlane.xlu0 %620  ;;  %v3062_v29 = vunpack.i.h.bf16 %v3060_v60 }
 0x2af   : > { %3158 = vrsqrt.f32 %v835_v25  ;;  %v665_v58 = vmax.f32 %v621_v43, 1e-24  ;;  %v3061_v25 = vunpack.i.l.bf16 %v3060_v60 }
 0x2b0   : > { %3160 = vrsqrt.f32 %v836_v6 }
 0x2b1   : > { %3162 = vrsqrt.f32 %v838_v42 }
 0x2b7   : > { %v3155_v0 = vpop.eup %3154 }
 0x2b8   : > { %v865_v1 = vmul.f32 %v3155_v0, %v3495_v35  ;;  %v3157_v33 = vpop.eup %3156 }
 0x2b9   : > { %v3159_v3 = vpop.eup %3158  ;;  %v866_v36 = vmul.f32 %v3157_v33, %v3483_v31  ;;  %v670_v33 = vmax.f32 %v636_v56, 1e-24 }
 0x2ba   : > { %v3078_v2 = vpack.i.bf16 %v865_v1, %v864_v37  ;;  %v867_v4 = vmul.f32 %v3159_v3, %v3493_v34  ;;  %v3161_v13 = vpop.eup %3160 }
 0x2bb   : > { %656 = vadd.xlane.f32.xlu1 %v655_v57  ;;  %v3163_v14 = vpop.eup %3162  ;;  %v868_v44 = vmul.f32 %v3161_v13, %v3511_v39 }
 0x2bc   : > { %3079 = vrot.lane.b32.xlu0 %v3078_v2, %s3305_s28  ;;  %v3083_v5 = vpack.i.bf16 %v867_v4, %v866_v36  ;;  %v870_v49 = vmul.f32 %v3163_v14, %v3519_v41 }
 0x2cc   : > { %3084 = vrot.lane.b32.xlu1 %v3083_v5, %s3305_s28  ;;  %v2981_v5 = vpack.c.bf16 %v3062_v29, %v3061_v25 }
 0x2d0   : > { %1617 = vperm.xlu1 %3099, %v2749_v51  }
 0x2df   : > { %v817_v7 = vpop.xlane.xlu0 %816 }
 0x2e0   : > { %v837_v61 = vmax.f32 %v817_v7, 1e-24 }
 0x2e2   : > { %3164 = vrsqrt.f32 %v837_v61 }
 0x2e3   : > { %v627_v11 = vpop.xlane.xlu0 %626  ;;  %3166 = vrsqrt.f32 %v839_v9 }
 0x2e4   : > { %3168 = vrsqrt.f32 %v665_v58  ;;  %v667_v57 = vmax.f32 %v627_v11, 1e-24 }
 0x2e5   : > { %3170 = vrsqrt.f32 %v666_v59 }
 0x2e7   : > { %v633_v40 = vpop.xlane.xlu0 %632 }
 0x2e8   : > { %v669_v62 = vmax.f32 %v633_v40, 1e-24 }
 0x2ea   : > { %3172 = vrsqrt.f32 %v669_v62 }
 0x2eb   : > { %v3619_v17 = vpop.xlane.xlu0 %638 }
 0x2ec   : > { %v3165_v24 = vpop.eup %3164  ;;  %v671_v40 = vmax.f32 %v3619_v17, 1e-24 }
 0x2ed   : > { %v869_v15 = vmul.f32 %v3165_v24, %v3533_v47  ;;  %v3167_v45 = vpop.eup %3166 }
 0x2ee   : > { %v871_v26 = vmul.f32 %v3167_v45, %v3509_v38  ;;  %v3169_v42 = vpop.eup %3168 }
 0x2ef   : > { %v642_v46 = vpop.xlane.xlu0 %641  ;;  %v3088_v48 = vpack.i.bf16 %v869_v15, %v868_v44  ;;  %v3171_v7 = vpop.eup %3170  ;;  %v697_v14 = vmul.f32 %v3169_v42, %v3419_v18 }
 0x2f0   : > { %v3093_v30 = vpack.i.bf16 %v871_v26, %v870_v49  ;;  %v672_v63 = vmax.f32 %v642_v46, 1e-24  ;;  %v698_v24 = vmul.f32 %v3171_v7, %v3411_v8 }
 0x2f1   : > { %3089 = vrot.lane.b32.xlu0 %v3088_v48, %s3305_s28 }
 0x2f2   : > { %3174 = vrsqrt.f32 %v672_v63 }
 0x2f3   : > { %v3626_v50 = vpop.xlane.xlu0 %644  ;;  %3176 = vrsqrt.f32 %v667_v57 }
 0x2f4   : > { %3178 = vrsqrt.f32 %v670_v33  ;;  %v3173_v11 = vpop.eup %3172 }
 0x2f5   : > { %3094 = vrot.lane.b32.xlu0 %v3093_v30, %s3305_s28  ;;  %v701_v15 = vmul.f32 %v3173_v11, %v3429_v21  ;;  %3180 = vrsqrt.f32 %v671_v40 }
 0x2f7   : > { %v648_v28 = vpop.xlane.xlu0 %647 }
 0x2f8   : > { %v674_v13 = vmax.f32 %v648_v28, 1e-24  ;;  %v673_v28 = vmax.f32 %v3626_v50, 1e-24 }
 0x2f9   : > { %1613 = vperm.xlu0 %3098, %v2748_v52  }
 0x2fa   : > { %3182 = vrsqrt.f32 %v674_v13 }
 0x2fb   : > { %v3635_v54 = vpop.xlane.xlu0 %650  ;;  %3184 = vrsqrt.f32 %v673_v28 }
 0x2fc   : > { %v3175_v12 = vpop.eup %3174 }
 0x2fd   : > { %v704_v45 = vmul.f32 %v3175_v12, %v3485_v32  ;;  %v3177_v17 = vpop.eup %3176 }
 0x2fe   : > { %v3179_v46 = vpop.eup %3178  ;;  %v699_v48 = vmul.f32 %v3177_v17, %v3417_v16  ;;  %v3725_v17 = vld [vmem:[%s4139_s5] sm:$0xff] }
 0x2ff   : > { %v3637_v55 = vpop.xlane.xlu0 %653  ;;  %v702_v49 = vmul.f32 %v3179_v46, %v3431_v22  ;;  %v3181_v26 = vpop.eup %3180 }
 0x300   : > { %v703_v51 = vmul.f32 %v3181_v26, %v3423_v19  ;;  %v676_v56 = vmax.f32 %v3637_v55, 1e-24  ;;  %v675_v55 = vmax.f32 %v3635_v54, 1e-24 }
 0x302   : > { %3186 = vrsqrt.f32 %v676_v56 }
 0x303   : > { %v3639_v27 = vpop.xlane.xlu0 %659  ;;  %3188 = vrsqrt.f32 %v675_v55 }
 0x304   : > { %v3183_v30 = vpop.eup %3182  ;;  %v678_v25 = vmax.f32 %v3639_v27, 1e-24 }
 0x305   : > { %v706_v52 = vmul.f32 %v3183_v30, %v3483_v31  ;;  %v3185_v63 = vpop.eup %3184 }
 0x306   : > { %3190 = vrsqrt.f32 %v678_v25 }
 0x307   : > { %v3642_v23 = vpop.xlane.xlu0 %662 }
 0x309   : > { %v3065_v0 = vpop.permute.xlu1 %3064 }
 0x30a   : > { %v3067_v37 = vunpack.i.h.bf16 %v3065_v0  ;;  %v3066_v1 = vunpack.i.l.bf16 %v3065_v0  ;;  %v705_v0 = vmul.f32 %v3185_v63, %v3495_v35 }
 0x30b   : > { %v3070_v2 = vpop.permute.xlu0 %3069 }
 0x30c   : > { %v2975_v3 = vpack.c.bf16 %v3067_v37, %v3066_v1  ;;  %v3072_v36 = vunpack.i.h.bf16 %v3070_v2  ;;  %v3071_v4 = vunpack.i.l.bf16 %v3070_v2  ;;  %v3187_v29 = vpop.eup %3186 }
 0x30d   : > { %v708_v50 = vmul.f32 %v3187_v29, %v3511_v39 }
 0x30e   : > { %v2987_v43 = vpack.c.bf16 %v3072_v36, %v3071_v4  ;;  %2977 = vmatprep.subr.msk.bf16.mxu1 %vm3646_vm2, %v2975_v3 }
 0x30f   : > { %v3075_v6 = vpop.permute.xlu0 %3074  ;;  %2980 = vmatpush3.bf16.xpose.msk.msra.mxu1 %vm3646_vm2, %v2975_v3  ;;  %v3189_v3 = vpop.eup %3188 }
 0x310   : > { %2983 = vmatprep.subr.msk.bf16.mxu1 %vm3646_vm2, %v2981_v5  ;;  %2989 = vmatprep.subr.msk.bf16.mxu0 %vm3646_vm2, %v2987_v43  ;;  %v3077_v9 = vunpack.i.h.bf16 %v3075_v6  ;;  %v3076_v61 = vunpack.i.l.bf16 %v3075_v6  ;;  %v3191_v36 = vpop.eup %3190  ;;  %v707_v4 = vmul.f32 %v3189_v3, %v3493_v34  ;;  %v1658_v3 = vld [vmem:[%s4140_s6 + $0x10] sm:$0xff] }
 0x311   : > { %2992 = vmatpush3.bf16.xpose.msk.msra.mxu0 %vm3646_vm2, %v2987_v43  ;;  %v710_v54 = vmul.f32 %v3191_v36, %v3519_v41 }
 0x312   : > { %v2993_v44 = vpack.c.bf16 %v3077_v9, %v3076_v61 }
 0x316   : > { %2864 = vmatmul.mubr.msk.f32.vlgmr.msra.gmra.mrb[4].mxu1 %vm615_vm1, %v697_v14 }
 0x317   : > { %2986 = vmatpush3.bf16.xpose.msk.msra.mxu1 %vm3646_vm2, %v2981_v5  ;;  %2870 = vmatprep.mubr.msk.f32.mxu1 %vm615_vm1, %v698_v24  ;;  %v679_v5 = vmax.f32 %v3642_v23, 1e-24 }
 0x318   : > { %2878 = vmatmul.mubr.msk.f32.vlgmr.msra.gmra.mrb[4].mxu0 %vm615_vm1, %v701_v15  ;;  %2995 = vmatprep.subr.msk.bf16.mxu1 %vm3646_vm2, %v2993_v44  ;;  %v1637_v15 = vld [vmem:[%s4139_s5 + $0x8] sm:$0xff] }
 0x319   : > { %2891 = vmatprep.mubr.msk.f32.mxu0 %vm615_vm1, %v704_v45 }
 0x31e   : > { %2871 = vmatmul.mubr.msk.f32.vlgmr.msra.gmra.mrb[6].mxu1 %vm615_vm1, %v699_v48 }
 0x31f   : > { %2998 = vmatpush3.bf16.xpose.msk.msra.mxu1 %vm3646_vm2, %v2993_v44  ;;  %2884 = vmatprep.mubr.msk.f32.mxu1 %vm615_vm1, %v702_v49  ;;  %v1657_v49 = vld [vmem:[%s4140_s6 + $0x8] sm:$0xff] }
 0x326   : > { %2885 = vmatmul.mubr.msk.f32.vlgmr.msra.gmra.mrb[8].mxu1 %vm615_vm1, %v703_v51  ;;  %v1656_v51 = vld [vmem:[%s4140_s6] sm:$0xff] }
 0x327   : > { %2898 = vmatprep.mubr.msk.f32.mxu1 %vm615_vm1, %v706_v52 }
 0x32e   : > { %v3080_v58 = vpop.permute.xlu0 %3079 }
 0x32f   : > { %v3082_v59 = vunpack.i.h.bf16 %v3080_v58  ;;  %v3081_v60 = vunpack.i.l.bf16 %v3080_v58  ;;  %v3741_v58 = vld [vmem:[%s4140_s6 + $0x20] sm:$0xff] }
 0x331   : > { %v2999_v62 = vpack.c.bf16 %v3082_v59, %v3081_v60 }
 0x333   : > { %3001 = vmatprep.subr.msk.bf16.mxu0 %vm3646_vm2, %v2999_v62 }
 0x334   : > { %3004 = vmatpush3.bf16.xpose.msk.msra.mxu0 %vm3646_vm2, %v2999_v62 }
 0x33b   : > { %2892 = vmatmul.mubr.msk.f32.vlgmr.msra.gmra.mrb[6].mxu0 %vm615_vm1, %v705_v0 }
 0x33c   : > { %2905 = vmatprep.mubr.msk.f32.mxu0 %vm615_vm1, %v708_v50 }
 0x348   : > { %v657_v37 = vpop.xlane.xlu1 %656 }
 0x349   : > { %v677_v27 = vmax.f32 %v657_v37, 1e-24 }
 0x34b   : > { %3192 = vrsqrt.f32 %v677_v27 }
 0x34c   : > { %v3085_v1 = vpop.permute.xlu1 %3084  ;;  %3194 = vrsqrt.f32 %v679_v5 }
 0x34d   : > { %v3087_v57 = vunpack.i.h.bf16 %v3085_v1  ;;  %v3086_v2 = vunpack.i.l.bf16 %v3085_v1  ;;  %v1659_v1 = vld [vmem:[%s4140_s6 + $0x18] sm:$0xff] }
 0x34f   : > { %v3005_v33 = vpack.c.bf16 %v3087_v57, %v3086_v2 }
 0x351   : > { %3007 = vmatprep.subr.msk.bf16.mxu1 %vm3646_vm2, %v3005_v33 }
 0x352   : > { %3010 = vmatpush3.bf16.xpose.msk.msra.mxu1 %vm3646_vm2, %v3005_v33 }
 0x355   : > { %v3193_v12 = vpop.eup %3192 }
 0x356   : > { %v709_v23 = vmul.f32 %v3193_v12, %v3533_v47  ;;  %v3195_v13 = vpop.eup %3194 }
 0x357   : > { %v711_v14 = vmul.f32 %v3195_v13, %v3509_v38  ;;  %v1864_v13 = vpack.c.bf16 %v3419_v18, %v3413_v10  ;;  %v1638_v10 = vld [vmem:[%s4139_s5 + $0x10] sm:$0xff] }
 0x359   : > { %2899 = vmatmul.mubr.msk.f32.vlgmr.msra.gmra.mrb[10].mxu1 %vm615_vm1, %v707_v4 }
 0x35a   : > { %2912 = vmatprep.mubr.msk.f32.mxu1 %vm615_vm1, %v710_v54 }
 0x363   : > { %v3090_v43 = vpop.permute.xlu0 %3089 }
 0x364   : > { %v3092_v6 = vunpack.i.h.bf16 %v3090_v43  ;;  %v3091_v42 = vunpack.i.l.bf16 %v3090_v43  ;;  %v3774_v43 = vld [vmem:[%s4140_s6 + $0x28] sm:$0xff] }
 0x366   : > { %v3011_v7 = vpack.c.bf16 %v3092_v6, %v3091_v42 }
 0x367   : > { %v3095_v9 = vpop.permute.xlu0 %3094 }
 0x368   : > { %v3097_v61 = vunpack.i.h.bf16 %v3095_v9  ;;  %v3096_v11 = vunpack.i.l.bf16 %v3095_v9  ;;  %3013 = vmatprep.subr.msk.bf16.mxu0 %vm3646_vm2, %v3011_v7 }
 0x369   : > { %3016 = vmatpush3.bf16.xpose.msk.msra.mxu0 %vm3646_vm2, %v3011_v7 }
 0x36a   : > { %v3017_v40 = vpack.c.bf16 %v3097_v61, %v3096_v11  ;;  %v1663_v11 = vld [vmem:[%s4140_s6 + $0x38] sm:$0xff] }
 0x36c   : > { %3019 = vmatprep.subr.msk.bf16.mxu1 %vm3646_vm2, %v3017_v40 }
 0x36d   : > { %3022 = vmatpush3.bf16.xpose.msk.msra.mxu1 %vm3646_vm2, %v3017_v40 }
 0x370   : > { %2906 = vmatmul.mubr.msk.f32.vlgmr.msra.gmra.mrb[8].mxu0 %vm615_vm1, %v709_v23 }
 0x374   : > { %2913 = vmatmul.mubr.msk.f32.vlgmr.msra.gmra.mrb[12].mxu1 %vm615_vm1, %v711_v14  ;;  %v3308_v14 = vmov 0.0  }
 0x375   : > { %2915 = vmatprep.subr.bf16.mxu0 %v3308_v14  ;;  %2921 = vmatprep.subr.bf16.mxu1 %v3308_v14 }
 0x376   : > { %2917 = vmatprep.mubr.msk.bf16.mxu0 %vm3309_vm3, %v3308_v14  ;;  %2923 = vmatprep.mubr.msk.bf16.mxu1 %vm3309_vm3, %v3308_v14 }
 0x378   : > { %v3716_v24 = vpop.permute.xlu0 %1613 }
 0x3e9   : > { %v2865_v44 = vpop.f32.mrb[4].mxu1 }
 0x3ea   : > { %v1621_v45 = vmul.f32 %v2865_v44, %v3716_v24  ;;  %v954_v53 = vpop.f32.mrb[5].mxu1  ;;  %v1618_v44 = vpop.permute.xlu1 %1617 }
 0x3eb   : > { %v1620_v46 = vmul.f32 %v3716_v24, %v954_v53  ;;  %v2879_v48 = vpop.f32.mrb[4].mxu0 }
 0x3ec   : > { %v1641_v26 = vadd.f32 %v1637_v15, %v1621_v45  ;;  %v1136_v30 = vpop.f32.mrb[5].mxu0  ;;  %v1625_v57 = vmul.f32 %v2879_v48, %v3716_v24  ;;  %v1639_v45 = vld [vmem:[%s4139_s5 + $0x18] sm:$0xff] }
 0x3ed   : > { %v1640_v52 = vadd.f32 %v3725_v17, %v1620_v46  ;;  %v1624_v28 = vmul.f32 %v3716_v24, %v1136_v30 }
 0x3ee   : > { %v3736_v56 = vadd.f32 %v1657_v49, %v1641_v26  ;;  %v1645_v4 = vadd.f32 %v1637_v15, %v1625_v57 }
 0x3ef   : > { %v1644_v59 = vadd.f32 %v3725_v17, %v1624_v28  ;;  %v3744_v60 = vadd.f32 %v1656_v51, %v1640_v52 }
 0x3f0   : > { %v1683_v62 = vsel %vm615_vm1, %v3736_v56, -inf  ;;  %v3780_v61 = vadd.f32 %v3774_v43, %v1645_v4 }
 0x3f1   : > { %1684 = vmax.xlane.f32.xlu1 %v1683_v62  ;;  %v2872_v63 = vpop.f32.mrb[6].mxu1  ;;  %v1680_v29 = vsel %vm615_vm1, %v3744_v60, -inf  ;;  %v3751_v0 = vadd.f32 %v3741_v58, %v1644_v59  ;;  %v1662_v62 = vld [vmem:[%s4140_s6 + $0x30] sm:$0xff] }
 0x3f2   : > { %v1623_v50 = vmul.f32 %v2872_v63, %v3716_v24  ;;  %1681 = vmax.xlane.f32.xlu0 %v1680_v29  ;;  %v1045_v55 = vpop.f32.mrb[7].mxu1  ;;  %v1695_v40 = vsel %vm615_vm1, %v3780_v61, -inf }
 0x3f3   : > { %v1622_v25 = vmul.f32 %v3716_v24, %v1045_v55  ;;  %v1692_v37 = vsel %vm615_vm1, %v3751_v0, -inf }
 0x3f4   : > { %v1643_v2 = vadd.f32 %v1637_v15, %v1623_v50 }
 0x3f5   : > { %v1642_v33 = vadd.f32 %v3725_v17, %v1622_v25  ;;  %1693 = vmax.xlane.f32.xlu1 %v1692_v37 }
 0x3f6   : > { %v3765_v36 = vadd.f32 %v1659_v1, %v1643_v2 }
 0x3f7   : > { %v3769_v27 = vadd.f32 %v1658_v3, %v1642_v33 }
 0x3f8   : > { %v1689_v54 = vsel %vm615_vm1, %v3765_v36, -inf }
 0x3f9   : > { %1690 = vmax.xlane.f32.xlu0 %v1689_v54  ;;  %v2886_v5 = vpop.f32.mrb[8].mxu1  ;;  %v1686_v9 = vsel %vm615_vm1, %v3769_v27, -inf }
 0x3fa   : > { %v1627_v6 = vmul.f32 %v2886_v5, %v3716_v24  ;;  %v1227_v42 = vpop.f32.mrb[9].mxu1 }
 0x3fb   : > { %v1626_v28 = vmul.f32 %v3716_v24, %v1227_v42 }
 0x3fc   : > { %v1647_v7 = vadd.f32 %v1637_v15, %v1627_v6 }
 0x3fd   : > { %1687 = vmax.xlane.f32.xlu0 %v1686_v9  ;;  %v1646_v59 = vadd.f32 %v3725_v17, %v1626_v28 }
 0x3fe   : > { %v3787_v12 = vadd.f32 %v1663_v11, %v1647_v7 }
 0x3ff   : > { %v3811_v63 = vadd.f32 %v1662_v62, %v1646_v59 }
 0x400   : > { %v1701_v23 = vsel %vm615_vm1, %v3787_v12, -inf }
 0x401   : > { %1696 = vmax.xlane.f32.xlu0 %v1695_v40  ;;  %v1698_v29 = vsel %vm615_vm1, %v3811_v63, -inf  ;;  %v1866_v40 = vpack.c.bf16 %v3429_v21, %v3425_v20 }
 0x405   : > { %1702 = vmax.xlane.f32.xlu0 %v1701_v23 }
 0x406   : > { %1873 = vrot.lane.b32.xlu1 %v1864_v13, %s3307_s22 }
 0x40e   : > { %v2893_v15 = vpop.f32.mrb[6].mxu0 }
 0x40f   : > { %v1318_v53 = vpop.f32.mrb[7].mxu0  ;;  %v1629_v18 = vmul.f32 %v2893_v15, %v1618_v44  ;;  %v1867_v15 = vpack.c.bf16 %v3423_v19, %v3431_v22  ;;  %v1868_v22 = vpack.c.bf16 %v3495_v35, %v3485_v32 }
 0x410   : > { %v1628_v46 = vmul.f32 %v1618_v44, %v1318_v53 }
 0x411   : > { %v1649_v48 = vadd.f32 %v1639_v45, %v1629_v18 }
 0x412   : > { %v1648_v26 = vadd.f32 %v1638_v10, %v1628_v46 }
 0x413   : > { %v3802_v30 = vadd.f32 %v1657_v49, %v1649_v48 }
 0x414   : > { %v3804_v52 = vadd.f32 %v1656_v51, %v1648_v26  ;;  %v1869_v26 = vpack.c.bf16 %v3493_v34, %v3483_v31 }
 0x415   : > { %v1707_v33 = vsel %vm615_vm1, %v3802_v30, -inf }
 0x416   : > { %v1704_v4 = vsel %vm615_vm1, %v3804_v52, -inf }
 0x42a   : > { %1699 = vmax.xlane.f32.xlu1 %v1698_v29 }
 0x42c   : > { %v2900_v50 = vpop.f32.mrb[10].mxu1 }
 0x42d   : > { %v1631_v55 = vmul.f32 %v2900_v50, %v1618_v44  ;;  %v1409_v49 = vpop.f32.mrb[11].mxu1 }
 0x42e   : > { %v1630_v25 = vmul.f32 %v1618_v44, %v1409_v49 }
 0x42f   : > { %v1651_v51 = vadd.f32 %v1639_v45, %v1631_v55 }
 0x430   : > { %v1650_v37 = vadd.f32 %v1638_v10, %v1630_v25 }
 0x431   : > { %v3815_v57 = vadd.f32 %v1659_v1, %v1651_v51 }
 0x432   : > { %v3817_v24 = vadd.f32 %v1658_v3, %v1650_v37 }
 0x433   : > { %v1713_v17 = vsel %vm615_vm1, %v3815_v57, -inf }
 0x434   : > { %1714 = vmax.xlane.f32.xlu0 %v1713_v17  ;;  %v1710_v2 = vsel %vm615_vm1, %v3817_v24, -inf }
 0x435   : > { %1711 = vmax.xlane.f32.xlu1 %v1710_v2 }
 0x438   : > { %1708 = vmax.xlane.f32.xlu0 %v1707_v33 }
 0x439   : > { %1705 = vmax.xlane.f32.xlu1 %v1704_v4 }
 0x443   : > { %v2907_v1 = vpop.f32.mrb[8].mxu0 }
 0x444   : > { %v1500_v54 = vpop.f32.mrb[9].mxu0  ;;  %v1633_v5 = vmul.f32 %v2907_v1, %v1618_v44 }
 0x445   : > { %v1632_v3 = vmul.f32 %v1618_v44, %v1500_v54 }
 0x446   : > { %v1653_v23 = vadd.f32 %v1639_v45, %v1633_v5 }
 0x447   : > { %v1652_v6 = vadd.f32 %v1638_v10, %v1632_v3  ;;  %v2914_v42 = vpop.f32.mrb[12].mxu1 }
 0x448   : > { %v1635_v7 = vmul.f32 %v2914_v42, %v1618_v44  ;;  %v1591_v9 = vpop.f32.mrb[13].mxu1  ;;  %v3838_v46 = vadd.f32 %v3774_v43, %v1653_v23 }
 0x449   : > { %v1634_v21 = vmul.f32 %v1618_v44, %v1591_v9  ;;  %v3853_v48 = vadd.f32 %v3741_v58, %v1652_v6 }
 0x44a   : > { %v1655_v13 = vadd.f32 %v1639_v45, %v1635_v7  ;;  %1969 = vrot.lane.b32.xlu1 %v1866_v40, %s3307_s22  ;;  %v1719_v20 = vsel %vm615_vm1, %v3838_v46, -inf  ;;  %v1865_v45 = vpack.c.bf16 %v3417_v16, %v3411_v8 }
 0x44b   : > { %v1654_v19 = vadd.f32 %v1638_v10, %v1634_v21  ;;  %v1716_v8 = vsel %vm615_vm1, %v3853_v48, -inf }
 0x44c   : > { %v3832_v53 = vadd.f32 %v1663_v11, %v1655_v13 }
 0x44d   : > { %v3848_v11 = vadd.f32 %v1662_v62, %v1654_v19 }
 0x44e   : > { %2017 = vrot.lane.b32.xlu1 %v1867_v15, %s3307_s22  ;;  %v1725_v18 = vsel %vm615_vm1, %v3832_v53, -inf }
 0x44f   : > { %1726 = vmax.xlane.f32.xlu0 %v1725_v18  ;;  %v1722_v43 = vsel %vm615_vm1, %v3848_v11, -inf }
 0x453   : > { %1720 = vmax.xlane.f32.xlu0 %v1719_v20 }
 0x469   : > { %1921 = vrot.lane.b32.xlu0 %v1865_v45, %s3307_s22 }
 0x46d   : > { %2065 = vrot.lane.b32.xlu0 %v1868_v22, %s3307_s22 }
 0x472   : > { %1723 = vmax.xlane.f32.xlu1 %v1722_v43 }
 0x476   : > { %1717 = vmax.xlane.f32.xlu1 %v1716_v8 }
 0x47e   : > { %v1685_v16 = vpop.xlane.xlu1 %1684 }
 0x47f   : > { %v1729_v44 = vsub.f32 %v3736_v56, %v1685_v16  ;;  %v1682_v32 = vpop.xlane.xlu0 %1681 }
 0x480   : > { %v1728_v51 = vsub.f32 %v3744_v60, %v1682_v32 }
 0x481   : > { %v1746_v10 = vmul.f32 1.442695, %v1729_v44 }
 0x482   : > { %v1694_v35 = vpop.xlane.xlu1 %1693  ;;  %v1744_v17 = vmul.f32 1.442695, %v1728_v51 }
 0x483   : > { %3196 = vpow2.f32 %v1746_v10 }
 0x486   : > { %v1874_v28 = vpop.permute.xlu1 %1873  ;;  %v1691_v59 = vpop.xlane.xlu0 %1690 }
 0x487   : > { %2916 = vmatpush3.bf16.msra.mxu0 %v1874_v28  ;;  %2113 = vrot.lane.b32.xlu1 %v1869_v26, %s3307_s22  ;;  %v1731_v29 = vsub.f32 %v3765_v36, %v1691_v59  ;;  %v1732_v36 = vsub.f32 %v3751_v0, %v1694_v35 }
 0x488   : > { %2927 = vmatprep.subr.bf16.mxu0 %v3308_v14 }
 0x489   : > { %v1750_v31 = vmul.f32 1.442695, %v1731_v29  ;;  %v1752_v33 = vmul.f32 1.442695, %v1732_v36 }
 0x48a   : > { %v1688_v58 = vpop.xlane.xlu0 %1687 }
 0x48d   : > { %v3862_v62 = vpop.eup %3196 }
 0x48e   : > { %v1697_v56 = vpop.xlane.xlu0 %1696  ;;  %v1779_v50 = vsel %vm615_vm1, %v3862_v62, 0.0 }
 0x48f   : > { %v1733_v55 = vsub.f32 %v3780_v61, %v1697_v56  ;;  %1780 = vadd.xlane.f32.xlu0 %v1779_v50  ;;  %v1730_v61 = vsub.f32 %v3769_v27, %v1688_v58 }
 0x491   : > { %v1754_v34 = vmul.f32 1.442695, %v1733_v55  ;;  %v1748_v60 = vmul.f32 1.442695, %v1730_v61 }
 0x492   : > { %v1703_v49 = vpop.xlane.xlu0 %1702 }
 0x493   : > { %3198 = vpow2.f32 %v1754_v34  ;;  %v1735_v25 = vsub.f32 %v3787_v12, %v1703_v49 }
 0x494   : > { %3200 = vpow2.f32 %v1750_v31 }
 0x495   : > { %v1758_v37 = vmul.f32 1.442695, %v1735_v25 }
 0x497   : > { %3202 = vpow2.f32 %v1758_v37 }
 0x498   : > { %3204 = vpow2.f32 %v1744_v17 }
 0x499   : > { %3206 = vpow2.f32 %v1752_v33 }
 0x49a   : > { %3208 = vpow2.f32 %v1748_v60 }
 0x49d   : > { %v3871_v2 = vpop.eup %3198 }
 0x49e   : > { %v1791_v4 = vsel %vm615_vm1, %v3871_v2, 0.0  ;;  %v3876_v1 = vpop.eup %3200 }
 0x49f   : > { %1792 = vadd.xlane.f32.xlu0 %v1791_v4  ;;  %v1785_v12 = vsel %vm615_vm1, %v3876_v1, 0.0  ;;  %v1870_v4 = vpack.c.bf16 %v3533_v47, %v3511_v39 }
 0x4a1   : > { %v3880_v54 = vpop.eup %3202 }
 0x4a2   : > { %v1797_v0 = vsel %vm615_vm1, %v3880_v54, 0.0  ;;  %v3884_v3 = vpop.eup %3204 }
 0x4a3   : > { %1786 = vadd.xlane.f32.xlu0 %v1785_v12  ;;  %v1776_v27 = vsel %vm615_vm1, %v3884_v3, 0.0  ;;  %v3888_v5 = vpop.eup %3206 }
 0x4a4   : > { %v1788_v6 = vsel %vm615_vm1, %v3888_v5, 0.0  ;;  %v3892_v42 = vpop.eup %3208 }
 0x4a5   : > { %v1782_v7 = vsel %vm615_vm1, %v3892_v42, 0.0 }
 0x4a7   : > { %1798 = vadd.xlane.f32.xlu0 %v1797_v0 }
 0x4ab   : > { %1777 = vadd.xlane.f32.xlu1 %v1776_v27 }
 0x4af   : > { %1789 = vadd.xlane.f32.xlu1 %v1788_v6 }
 0x4b3   : > { %1783 = vadd.xlane.f32.xlu1 %v1782_v7 }
 0x4b7   : > { %v1700_v9 = vpop.xlane.xlu1 %1699 }
 0x4b8   : > { %v1734_v40 = vsub.f32 %v3811_v63, %v1700_v9 }
 0x4ba   : > { %v1756_v23 = vmul.f32 1.442695, %v1734_v40 }
 0x4bc   : > { %3210 = vpow2.f32 %v1756_v23 }
 0x4c1   : > { %v1715_v13 = vpop.xlane.xlu0 %1714 }
 0x4c2   : > { %v1739_v15 = vsub.f32 %v3815_v57, %v1715_v13  ;;  %v1712_v18 = vpop.xlane.xlu1 %1711 }
 0x4c3   : > { %v1738_v20 = vsub.f32 %v3817_v24, %v1712_v18 }
 0x4c4   : > { %v1766_v21 = vmul.f32 1.442695, %v1739_v15 }
 0x4c5   : > { %v1764_v45 = vmul.f32 1.442695, %v1738_v20  ;;  %v1709_v19 = vpop.xlane.xlu0 %1708 }
 0x4c6   : > { %v3899_v22 = vpop.eup %3210  ;;  %3212 = vpow2.f32 %v1766_v21  ;;  %v1737_v43 = vsub.f32 %v3802_v30, %v1709_v19  ;;  %v1706_v8 = vpop.xlane.xlu1 %1705 }
 0x4c7   : > { %3214 = vpow2.f32 %v1764_v45  ;;  %v1736_v63 = vsub.f32 %v3804_v52, %v1706_v8  ;;  %v1794_v16 = vsel %vm615_vm1, %v3899_v22, 0.0 }
 0x4c8   : > { %v1762_v44 = vmul.f32 1.442695, %v1737_v43  ;;  %1795 = vadd.xlane.f32.xlu1 %v1794_v16 }
 0x4c9   : > { %v1760_v57 = vmul.f32 1.442695, %v1736_v63 }
 0x4ca   : > { %3216 = vpow2.f32 %v1762_v44  ;;  %v1970_v51 = vpop.permute.xlu1 %1969 }
 0x4cb   : > { %3218 = vpow2.f32 %v1760_v57 }
 0x4d0   : > { %v3909_v30 = vpop.eup %3212 }
 0x4d1   : > { %v3911_v24 = vpop.eup %3214  ;;  %v1809_v52 = vsel %vm615_vm1, %v3909_v30, 0.0 }
 0x4d2   : > { %1810 = vadd.xlane.f32.xlu0 %v1809_v52  ;;  %v1806_v10 = vsel %vm615_vm1, %v3911_v24, 0.0 }
 0x4d3   : > { %1807 = vadd.xlane.f32.xlu1 %v1806_v10 }
 0x4d4   : > { %v3917_v32 = vpop.eup %3216 }
 0x4d5   : > { %v3919_v35 = vpop.eup %3218  ;;  %v1803_v26 = vsel %vm615_vm1, %v3917_v32, 0.0 }
 0x4d6   : > { %1804 = vadd.xlane.f32.xlu0 %v1803_v26  ;;  %v1800_v28 = vsel %vm615_vm1, %v3919_v35, 0.0 }
 0x4d7   : > { %1801 = vadd.xlane.f32.xlu1 %v1800_v28 }
 0x4dc   : > { %v1727_v59 = vpop.xlane.xlu0 %1726 }
 0x4dd   : > { %v1743_v58 = vsub.f32 %v3832_v53, %v1727_v59 }
 0x4df   : > { %v1774_v29 = vmul.f32 1.442695, %v1743_v58 }
 0x4e0   : > { %v1721_v56 = vpop.xlane.xlu0 %1720 }
 0x4e1   : > { %3220 = vpow2.f32 %v1774_v29  ;;  %v1741_v50 = vsub.f32 %v3838_v46, %v1721_v56  ;;  %v2018_v46 = vpop.permute.xlu1 %2017 }
 0x4e3   : > { %v1770_v55 = vmul.f32 1.442695, %v1741_v50 }
 0x4e4   : > { %v1922_v31 = vpop.permute.xlu0 %1921 }
 0x4e5   : > { %3222 = vpow2.f32 %v1770_v55  ;;  %2922 = vmatpush3.bf16.msra.mxu1 %v1922_v31 }
 0x4e6   : > { %2933 = vmatprep.subr.bf16.mxu1 %v3308_v14 }
 0x4e8   : > { %v2066_v39 = vpop.permute.xlu0 %2065 }
 0x4eb   : > { %v3928_v34 = vpop.eup %3220 }
 0x4ec   : > { %v1821_v49 = vsel %vm615_vm1, %v3928_v34, 0.0 }
 0x4ed   : > { %1822 = vadd.xlane.f32.xlu0 %v1821_v49 }
 0x4ef   : > { %v3932_v25 = vpop.eup %3222 }
 0x4f0   : > { %v1815_v53 = vsel %vm615_vm1, %v3932_v25, 0.0 }
 0x4f1   : > { %1816 = vadd.xlane.f32.xlu0 %v1815_v53 }
 0x4ff   : > { %v1724_v37 = vpop.xlane.xlu1 %1723 }
 0x500   : > { %v1742_v17 = vsub.f32 %v3848_v11, %v1724_v37 }
 0x502   : > { %v1772_v36 = vmul.f32 1.442695, %v1742_v17 }
 0x503   : > { %v1718_v33 = vpop.xlane.xlu1 %1717 }
 0x504   : > { %3224 = vpow2.f32 %v1772_v36  ;;  %v1740_v61 = vsub.f32 %v3853_v48, %v1718_v33  ;;  %v1871_v48 = vpack.c.bf16 %v3509_v38, %v3519_v41 }
 0x506   : > { %v1768_v60 = vmul.f32 1.442695, %v1740_v61 }
 0x507   : > { %2161 = vrot.lane.b32.xlu0 %v1870_v4, %s3307_s22  ;;  %v2114_v6 = vpop.permute.xlu1 %2113 }
 0x508   : > { %3226 = vpow2.f32 %v1768_v60 }
 0x50e   : > { %v3941_v12 = vpop.eup %3224 }
 0x50f   : > { %v1818_v0 = vsel %vm615_vm1, %v3941_v12, 0.0 }
 0x510   : > { %1819 = vadd.xlane.f32.xlu1 %v1818_v0 }
 0x512   : > { %v3945_v27 = vpop.eup %3226 }
 0x513   : > { %v1812_v11 = vsel %vm615_vm1, %v3945_v27, 0.0 }
 0x514   : > { %1813 = vadd.xlane.f32.xlu1 %v1812_v11 }
 0x51c   : > { %v1781_v47 = vpop.xlane.xlu0 %1780 }
 0x51d   : > { %3228 = vrcp.f32 %v1781_v47 }
 0x525   : > { %2209 = vrot.lane.b32.xlu1 %v1871_v48, %s3307_s22 }
 0x527   : > { %v3229_v15 = vpop.eup %3228 }
 0x528   : > { %v1841_v38 = vmul.f32 %v3229_v15, %v3862_v62 }
 0x52c   : > { %v1793_v7 = vpop.xlane.xlu0 %1792 }
 0x530   : > { %v1787_v40 = vpop.xlane.xlu0 %1786 }
 0x534   : > { %v1799_v57 = vpop.xlane.xlu0 %1798 }
 0x538   : > { %v1778_v9 = vpop.xlane.xlu1 %1777 }
 0x539   : > { %3230 = vrcp.f32 %v1778_v9 }
 0x53c   : > { %v1790_v23 = vpop.xlane.xlu1 %1789 }
 0x53d   : > { %3232 = vrcp.f32 %v1790_v23 }
 0x53e   : > { %3234 = vrcp.f32 %v1793_v7 }
 0x53f   : > { %3236 = vrcp.f32 %v1787_v40 }
 0x540   : > { %v1784_v13 = vpop.xlane.xlu1 %1783 }
 0x541   : > { %3238 = vrcp.f32 %v1784_v13 }
 0x542   : > { %3240 = vrcp.f32 %v1799_v57 }
 0x543   : > { %v3231_v18 = vpop.eup %3230 }
 0x544   : > { %v1840_v41 = vmul.f32 %v3231_v18, %v3884_v3 }
 0x546   : > { %v1856_v20 = vpack.c.bf16 %v1841_v38, %v1840_v41 }
 0x547   : > { %v3233_v21 = vpop.eup %3232 }
 0x548   : > { %v3235_v45 = vpop.eup %3234  ;;  %2918 = vmatmul.mubr.msk.bf16.vlgmr.msra.gmra.mrb[12].mxu0 %vm615_vm1, %v1856_v20  ;;  %v1844_v43 = vmul.f32 %v3233_v21, %v3888_v5  ;;  %v3126_v20 = vld [vmem:[%s4137_s3] sm:$0xff]   ;;  %v3127_v21 = vld [vmem:[%s4137_s3 + $0x8] sm:$0xff]  }
 0x549   : > { %v3237_v19 = vpop.eup %3236  ;;  %2928 = vmatpush3.bf16.msra.mxu0 %v1970_v51  ;;  %2929 = vmatprep.mubr.msk.bf16.mxu0 %vm3309_vm3, %v3308_v14  ;;  %v1845_v63 = vmul.f32 %v3235_v45, %v3871_v2 }
 0x54a   : > { %2939 = vmatprep.subr.bf16.mxu0 %v3308_v14  ;;  %v1843_v62 = vmul.f32 %v3237_v19, %v3876_v1 }
 0x54b   : > { %v3239_v8 = vpop.eup %3238  ;;  %v1858_v44 = vpack.c.bf16 %v1845_v63, %v1844_v43 }
 0x54c   : > { %v1842_v3 = vmul.f32 %v3239_v8, %v3892_v42  ;;  %v3241_v1 = vpop.eup %3240 }
 0x54d   : > { %v1847_v10 = vmul.f32 %v3241_v1, %v3880_v54 }
 0x54e   : > { %v1857_v16 = vpack.c.bf16 %v1843_v62, %v1842_v3 }
 0x550   : > { %2924 = vmatmul.mubr.msk.bf16.vlgmr.msra.gmra.mrb[16].mxu1 %vm615_vm1, %v1857_v16  ;;  %2930 = vmatmul.mubr.msk.bf16.vlgmr.msra.gmra.mrb[16].mxu0 %vm615_vm1, %v1858_v44 }
 0x551   : > { %2934 = vmatpush3.bf16.msra.mxu1 %v2018_v46  ;;  %2940 = vmatpush3.bf16.msra.mxu0 %v2066_v39 }
 0x552   : > { %2935 = vmatprep.mubr.msk.bf16.mxu1 %vm3309_vm3, %v3308_v14  ;;  %2945 = vmatprep.subr.bf16.mxu1 %v3308_v14 }
 0x553   : > { %2941 = vmatprep.mubr.msk.bf16.mxu0 %vm3309_vm3, %v3308_v14  ;;  %2951 = vmatprep.subr.bf16.mxu0 %v3308_v14 }
 0x555   : > { %v1796_v2 = vpop.xlane.xlu1 %1795 }
 0x556   : > { %3242 = vrcp.f32 %v1796_v2 }
 0x55f   : > { %v1811_v5 = vpop.xlane.xlu0 %1810 }
 0x560   : > { %v3243_v42 = vpop.eup %3242  ;;  %3244 = vrcp.f32 %v1811_v5  ;;  %v1808_v52 = vpop.xlane.xlu1 %1807 }
 0x561   : > { %v1846_v26 = vmul.f32 %v3243_v42, %v3899_v22  ;;  %3246 = vrcp.f32 %v1808_v52 }
 0x563   : > { %v1805_v28 = vpop.xlane.xlu0 %1804  ;;  %v1859_v59 = vpack.c.bf16 %v1847_v10, %v1846_v26 }
 0x564   : > { %3248 = vrcp.f32 %v1805_v28  ;;  %v1802_v58 = vpop.xlane.xlu1 %1801 }
 0x565   : > { %3250 = vrcp.f32 %v1802_v58  ;;  %2936 = vmatmul.mubr.msk.bf16.vlgmr.msra.gmra.mrb[20].mxu1 %vm615_vm1, %v1859_v59 }
 0x566   : > { %2946 = vmatpush3.bf16.msra.mxu1 %v2114_v6  ;;  %2947 = vmatprep.mubr.msk.bf16.mxu1 %vm3309_vm3, %v3308_v14 }
 0x567   : > { %2957 = vmatprep.subr.bf16.mxu1 %v3308_v14 }
 0x56a   : > { %v3245_v29 = vpop.eup %3244 }
 0x56b   : > { %v3247_v56 = vpop.eup %3246  ;;  %v1851_v54 = vmul.f32 %v3245_v29, %v3909_v30 }
 0x56c   : > { %v1850_v22 = vmul.f32 %v3247_v56, %v3911_v24 }
 0x56e   : > { %v3249_v50 = vpop.eup %3248  ;;  %v1861_v55 = vpack.c.bf16 %v1851_v54, %v1850_v22 }
 0x56f   : > { %v3251_v31 = vpop.eup %3250  ;;  %v1849_v49 = vmul.f32 %v3249_v50, %v3917_v32 }
 0x570   : > { %v1848_v53 = vmul.f32 %v3251_v31, %v3919_v35  ;;  %2948 = vmatmul.mubr.msk.bf16.vlgmr.msra.gmra.mrb[24].mxu1 %vm615_vm1, %v1861_v55 }
 0x571   : > { %2959 = vmatprep.mubr.msk.bf16.mxu1 %vm3309_vm3, %v3308_v14 }
 0x572   : > { %v1860_v51 = vpack.c.bf16 %v1849_v49, %v1848_v53 }
 0x574   : > { %2942 = vmatmul.mubr.msk.bf16.vlgmr.msra.gmra.mrb[20].mxu0 %vm615_vm1, %v1860_v51 }
 0x575   : > { %2953 = vmatprep.mubr.msk.bf16.mxu0 %vm3309_vm3, %v3308_v14 }
 0x57a   : > { %v1823_v30 = vpop.xlane.xlu0 %1822 }
 0x57b   : > { %3252 = vrcp.f32 %v1823_v30 }
 0x57e   : > { %v1817_v24 = vpop.xlane.xlu0 %1816 }
 0x582   : > { %v2162_v46 = vpop.permute.xlu0 %2161 }
 0x583   : > { %2952 = vmatpush3.bf16.msra.mxu0 %v2162_v46 }
 0x584   : > { %2963 = vmatprep.subr.bf16.mxu0 %v3126_v20 }
 0x585   : > { %v3253_v17 = vpop.eup %3252 }
 0x586   : > { %v1855_v33 = vmul.f32 %v3253_v17, %v3928_v34 }
 0x59d   : > { %v1820_v37 = vpop.xlane.xlu1 %1819 }
 0x59e   : > { %3254 = vrcp.f32 %v1820_v37 }
 0x59f   : > { %3256 = vrcp.f32 %v1817_v24 }
 0x5a1   : > { %v1814_v32 = vpop.xlane.xlu1 %1813 }
 0x5a2   : > { %3258 = vrcp.f32 %v1814_v32 }
 0x5a5   : > { %v2210_v35 = vpop.permute.xlu1 %2209 }
 0x5a6   : > { %2958 = vmatpush3.bf16.msra.mxu1 %v2210_v35 }
 0x5a8   : > { %v3255_v36 = vpop.eup %3254 }
 0x5a9   : > { %v1854_v61 = vmul.f32 %v3255_v36, %v3941_v12  ;;  %v3257_v4 = vpop.eup %3256 }
 0x5aa   : > { %v1853_v0 = vmul.f32 %v3257_v4, %v3932_v25 }
 0x5ab   : > { %v1863_v14 = vpack.c.bf16 %v1855_v33, %v1854_v61 }
 0x5ac   : > { %v3259_v60 = vpop.eup %3258 }
 0x5ad   : > { %v1852_v11 = vmul.f32 %v3259_v60, %v3945_v27  ;;  %2960 = vmatmul.mubr.msk.bf16.vlgmr.msra.gmra.mrb[28].mxu1 %vm615_vm1, %v1863_v14 }
 0x5af   : > { %v1862_v48 = vpack.c.bf16 %v1853_v0, %v1852_v11  ;;  %v2758_v11 = vld [vmem:[%s4138_s4] ss:$0 sm:$0xff] }
 0x5b1   : > { %2954 = vmatmul.mubr.msk.bf16.vlgmr.msra.gmra.mrb[24].mxu0 %vm615_vm1, %v1862_v48 }
 0x5b2   : > { %2964 = vmatpush3.bf16.msra.mxu0 %v3126_v20 }
 0x5b3   : > { %2965 = vmatprep.subr.bf16.mxu0 %v3127_v21 }
 0x5b6   : > { %2966 = vmatpush3.bf16.msra.mxu0 %v3127_v21 }
 0x61b   : > { %v1913_v39 = vpop.f32.mrb[12].mxu0 }
 0x61c   : > { %v2919_v47 = vpop.f32.mrb[13].mxu0 }
 0x61d   : > { %v1916_v6 = vpop.f32.mrb[14].mxu0 }
 0x61e   : > { %v2920_v7 = vpop.f32.mrb[15].mxu0 }
 0x623   : > { %v1961_v9 = vpop.f32.mrb[16].mxu1  ;;  %v3992_v34 = vpop.f32.mrb[16].mxu0 }
 0x624   : > { %v2925_v12 = vpop.f32.mrb[17].mxu1  ;;  %v2931_v40 = vpop.f32.mrb[17].mxu0 }
 0x625   : > { %v1964_v23 = vpop.f32.mrb[18].mxu1  ;;  %v2012_v13 = vpop.f32.mrb[18].mxu0 }
 0x626   : > { %v2926_v15 = vpop.f32.mrb[19].mxu1  ;;  %v2932_v25 = vpop.f32.mrb[19].mxu0 }
 0x638   : > { %v2057_v18 = vpop.f32.mrb[20].mxu1 }
 0x639   : > { %v2937_v27 = vpop.f32.mrb[21].mxu1 }
 0x63a   : > { %v2060_v38 = vpop.f32.mrb[22].mxu1 }
 0x63b   : > { %v2938_v41 = vpop.f32.mrb[23].mxu1 }
 0x643   : > { %v2153_v45 = vpop.f32.mrb[24].mxu1 }
 0x644   : > { %v2949_v19 = vpop.f32.mrb[25].mxu1 }
 0x645   : > { %v2156_v43 = vpop.f32.mrb[26].mxu1 }
 0x646   : > { %v3105_v8 = vpack.i.bf16 %v2156_v43, %v2153_v45  ;;  %v2950_v63 = vpop.f32.mrb[27].mxu1 }
 0x647   : > { %v2105_v62 = vpop.f32.mrb[20].mxu0 }
 0x648   : > { %3106 = vrot.lane.b32.xlu1 %v3105_v8, %s3310_s18  ;;  %v2943_v3 = vpop.f32.mrb[21].mxu0 }
 0x649   : > { %v2108_v16 = vpop.f32.mrb[22].mxu0 }
 0x64a   : > { %v3100_v44 = vpack.i.bf16 %v2108_v16, %v2105_v62  ;;  %v2944_v57 = vpop.f32.mrb[23].mxu0 }
 0x64c   : > { %3101 = vrot.lane.b32.xlu0 %v3100_v44, %s3310_s18 }
 0x680   : > { %v2249_v2 = vpop.f32.mrb[28].mxu1 }
 0x681   : > { %v2961_v1 = vpop.f32.mrb[29].mxu1 }
 0x682   : > { %v2252_v5 = vpop.f32.mrb[30].mxu1 }
 0x683   : > { %v3115_v42 = vpack.i.bf16 %v2252_v5, %v2249_v2  ;;  %v2962_v52 = vpop.f32.mrb[31].mxu1 }
 0x684   : > { %v2201_v10 = vpop.f32.mrb[24].mxu0 }
 0x685   : > { %v2955_v26 = vpop.f32.mrb[25].mxu0  ;;  %3116 = vrot.lane.b32.xlu1 %v3115_v42, %s3310_s18 }
 0x686   : > { %v2204_v28 = vpop.f32.mrb[26].mxu0 }
 0x687   : > { %v3110_v59 = vpack.i.bf16 %v2204_v28, %v2201_v10  ;;  %v2956_v58 = vpop.f32.mrb[27].mxu0 }
 0x689   : > { %3111 = vrot.lane.b32.xlu0 %v3110_v59, %s3310_s18 }
 0x6ba   : > { %v3107_v29 = vpop.permute.xlu1 %3106 }
 0x6bb   : > { %v3109_v56 = vunpack.i.h.bf16 %v3107_v29  ;;  %v3108_v54 = vunpack.i.l.bf16 %v3107_v29 }
 0x6bd   : > { %v2291_v22 = vsel %vm615_vm1, %v1964_v23, %v3109_v56  ;;  %v2290_v50 = vsel %vm615_vm1, %v1961_v9, %v3108_v54 }
 0x6be   : > { %v2297_v55 = vpack.c.bf16 %v2291_v22, %v2290_v50  ;;  %v3102_v31 = vpop.permute.xlu0 %3101 }
 0x6bf   : > { %v3104_v49 = vunpack.i.h.bf16 %v3102_v31  ;;  %v3103_v53 = vunpack.i.l.bf16 %v3102_v31 }
 0x6c1   : > { %v2289_v51 = vsel %vm615_vm1, %v1916_v6, %v3104_v49  ;;  %v2288_v30 = vsel %vm615_vm1, %v1913_v39, %v3103_v53 }
 0x6c2   : > { %v2296_v24 = vpack.c.bf16 %v2289_v51, %v2288_v30 }
 0x6c4   : > { %2967 = vmatprep.mubr.msk.bf16.mxu0 %vm489_vm0, %v2296_v24 }
 0x6c5   : > { %2968 = vmatmul.mubr.msk.bf16.vlgmr.msra.gmra.mrb[28].mxu0 %vm489_vm0, %v2297_v55 }
 0x6f7   : > { %v3117_v46 = vpop.permute.xlu1 %3116 }
 0x6f8   : > { %v3119_v37 = vunpack.i.h.bf16 %v3117_v46  ;;  %v3118_v32 = vunpack.i.l.bf16 %v3117_v46 }
 0x6fa   : > { %v2295_v35 = vsel %vm615_vm1, %v2060_v38, %v3119_v37  ;;  %v2294_v17 = vsel %vm615_vm1, %v2057_v18, %v3118_v32 }
 0x6fb   : > { %v2299_v36 = vpack.c.bf16 %v2295_v35, %v2294_v17  ;;  %v3112_v33 = vpop.permute.xlu0 %3111 }
 0x6fc   : > { %v3114_v61 = vunpack.i.h.bf16 %v3112_v33  ;;  %v3113_v4 = vunpack.i.l.bf16 %v3112_v33 }
 0x6fe   : > { %v2293_v14 = vsel %vm615_vm1, %v2012_v13, %v3114_v61  ;;  %v2292_v60 = vsel %vm615_vm1, %v3992_v34, %v3113_v4 }
 0x6ff   : > { %v2298_v0 = vpack.c.bf16 %v2293_v14, %v2292_v60 }
 0x701   : > { %2971 = vmatprep.mubr.msk.bf16.mxu0 %vm489_vm0, %v2298_v0 }
 0x702   : > { %2972 = vmatmul.mubr.msk.bf16.gmra.mrb[32].mxu0 %vm489_vm0, %v2299_v36 }
 0x798   : > { %v2969_v48 = vpop.f32.mrb[28].mxu0 }
 0x799   : > { %v2378_v39 = vadd.f32 %v2969_v48, %v2758_v11  ;;  %v2369_v47 = vpop.f32.mrb[29].mxu0 }
 0x79a   : > { %v2970_v6 = vpop.f32.mrb[30].mxu0  ;;  %v2370_v7 = vadd.f32 %v2758_v11, %v2369_v47 }
 0x79b   : > { %v2372_v9 = vpop.f32.mrb[31].mxu0  ;;  %v2406_v12 = vsel %vm489_vm0, %v2378_v39, 0.0  ;;  %v2381_v23 = vadd.f32 %v2970_v6, %v2758_v11 }
 0x79c   : > { %v2373_v40 = vadd.f32 %v2758_v11, %v2372_v9  ;;  %2407 = vadd.xlane.f32.xlu0 %v2406_v12  ;;  %v2400_v13 = vsel %vm489_vm0, %v2370_v7, 0.0 }
 0x79d   : > { %v2409_v15 = vsel %vm489_vm0, %v2381_v23, 0.0 }
 0x79e   : > { %v2403_v34 = vsel %vm489_vm0, %v2373_v40, 0.0 }
 0x79f   : > { %2404 = vadd.xlane.f32.xlu1 %v2403_v34 }
 0x7a0   : > { %2401 = vadd.xlane.f32.xlu0 %v2400_v13 }
 0x7a4   : > { %2410 = vadd.xlane.f32.xlu0 %v2409_v15 }
 0x7d5   : > { %v2973_v25 = vpop.f32.mrb[32].mxu0 }
 0x7d6   : > { %v2394_v18 = vadd.f32 %v2973_v25, %v2758_v11  ;;  %v2385_v27 = vpop.f32.mrb[33].mxu0  ;;  %v4067_v25 = vld [vmem:[%s4141_s7] ss:$0 sm:$0xff] }
 0x7d7   : > { %v2386_v38 = vadd.f32 %v2758_v11, %v2385_v27  ;;  %v2974_v41 = vpop.f32.mrb[34].mxu0 }
 0x7d8   : > { %v2397_v20 = vadd.f32 %v2974_v41, %v2758_v11  ;;  %v2388_v21 = vpop.f32.mrb[35].mxu0  ;;  %v2418_v8 = vsel %vm489_vm0, %v2394_v18, 0.0  ;;  %v3276_v41 = vld [vmem:[%s3398_s24 + $0x8] sm:$0xff]  }
 0x7d9   : > { %v2389_v45 = vadd.f32 %v2758_v11, %v2388_v21  ;;  %v2412_v19 = vsel %vm489_vm0, %v2386_v38, 0.0 }
 0x7da   : > { %2413 = vadd.xlane.f32.xlu1 %v2412_v19  ;;  %v2421_v63 = vsel %vm489_vm0, %v2397_v20, 0.0 }
 0x7db   : > { %v2415_v43 = vsel %vm489_vm0, %v2389_v45, 0.0 }
 0x7dc   : > { %2416 = vadd.xlane.f32.xlu0 %v2415_v43 }
 0x7de   : > { %2419 = vadd.xlane.f32.xlu1 %v2418_v8  ;;  %v3277_v8 = vld [vmem:[%s3398_s24] sm:$0xff]  }
 0x7e0   : > { %2422 = vadd.xlane.f32.xlu0 %v2421_v63  ;;  %v438_v63 = vunpack.c.l.bf16 %v3277_v8 }
 0x829   : > { %v2408_v62 = vpop.xlane.xlu0 %2407 }
 0x82a   : > { %v2427_v3 = vmul.f32 0.03125, %v2408_v62 }
 0x82c   : > { %v4024_v16 = vsub.f32 %v2378_v39, %v2427_v3  ;;  %v2405_v44 = vpop.xlane.xlu1 %2404 }
 0x82d   : > { %v2402_v57 = vpop.xlane.xlu0 %2401  ;;  %v2426_v5 = vmul.f32 0.03125, %v2405_v44 }
 0x82e   : > { %v2425_v2 = vmul.f32 0.03125, %v2402_v57  ;;  %v2443_v1 = vmul.f32 %v4024_v16, %v4024_v16 }
 0x82f   : > { %v4033_v59 = vsub.f32 %v2373_v40, %v2426_v5 }
 0x830   : > { %v4028_v42 = vsub.f32 %v2370_v7, %v2425_v2  ;;  %v2455_v52 = vsel %vm489_vm0, %v2443_v1, 0.0  ;;  %v441_v1 = vunpack.c.h.bf16 %v3276_v41 }
 0x831   : > { %2456 = vadd.xlane.f32.xlu1 %v2455_v52  ;;  %v2411_v10 = vpop.xlane.xlu0 %2410  ;;  %v2442_v22 = vmul.f32 %v4033_v59, %v4033_v59 }
 0x832   : > { %v2428_v26 = vmul.f32 0.03125, %v2411_v10  ;;  %v2441_v28 = vmul.f32 %v4028_v42, %v4028_v42 }
 0x833   : > { %v2452_v50 = vsel %vm489_vm0, %v2442_v22, 0.0 }
 0x834   : > { %v4035_v58 = vsub.f32 %v2381_v23, %v2428_v26  ;;  %v2449_v29 = vsel %vm489_vm0, %v2441_v28, 0.0 }
 0x835   : > { %2450 = vadd.xlane.f32.xlu1 %v2449_v29  ;;  %v439_v29 = vunpack.c.h.bf16 %v3277_v8 }
 0x836   : > { %v2444_v56 = vmul.f32 %v4035_v58, %v4035_v58 }
 0x838   : > { %v2458_v54 = vsel %vm489_vm0, %v2444_v56, 0.0 }
 0x839   : > { %2459 = vadd.xlane.f32.xlu0 %v2458_v54 }
 0x83d   : > { %2453 = vadd.xlane.f32.xlu0 %v2452_v50 }
 0x867   : > { %v2414_v55 = vpop.xlane.xlu1 %2413 }
 0x868   : > { %v2429_v31 = vmul.f32 0.03125, %v2414_v55 }
 0x869   : > { %v2417_v49 = vpop.xlane.xlu0 %2416 }
 0x86a   : > { %v4044_v53 = vsub.f32 %v2386_v38, %v2429_v31  ;;  %v2430_v51 = vmul.f32 0.03125, %v2417_v49  ;;  %v4073_v38 = vld [vmem:[%s4142_s8] ss:$0 sm:$0xff] }
 0x86b   : > { %v2420_v30 = vpop.xlane.xlu1 %2419 }
 0x86c   : > { %v4046_v24 = vsub.f32 %v2389_v45, %v2430_v51  ;;  %v2431_v46 = vmul.f32 0.03125, %v2420_v30  ;;  %v2445_v37 = vmul.f32 %v4044_v53, %v4044_v53 }
 0x86d   : > { %v2423_v32 = vpop.xlane.xlu0 %2422 }
 0x86e   : > { %v4050_v35 = vsub.f32 %v2394_v18, %v2431_v46  ;;  %v2432_v17 = vmul.f32 0.03125, %v2423_v32  ;;  %v2461_v36 = vsel %vm489_vm0, %v2445_v37, 0.0  ;;  %v2446_v33 = vmul.f32 %v4046_v24, %v4046_v24 }
 0x86f   : > { %2462 = vadd.xlane.f32.xlu1 %v2461_v36 }
 0x870   : > { %v4055_v61 = vsub.f32 %v2397_v20, %v2432_v17  ;;  %v2464_v4 = vsel %vm489_vm0, %v2446_v33, 0.0  ;;  %v2447_v14 = vmul.f32 %v4050_v35, %v4050_v35  ;;  %v440_v20 = vunpack.c.l.bf16 %v3276_v41 }
 0x871   : > { %2465 = vadd.xlane.f32.xlu0 %v2464_v4 }
 0x872   : > { %v2467_v60 = vsel %vm489_vm0, %v2447_v14, 0.0  ;;  %v2448_v0 = vmul.f32 %v4055_v61, %v4055_v61 }
 0x873   : > { %2468 = vadd.xlane.f32.xlu1 %v2467_v60 }
 0x874   : > { %v2470_v11 = vsel %vm489_vm0, %v2448_v0, 0.0 }
 0x875   : > { %2471 = vadd.xlane.f32.xlu0 %v2470_v11  ;;  %v3278_v11 = vld [vmem:[%s3398_s24 + $0x10] sm:$0xff]  }
 0x8be   : > { %v2457_v48 = vpop.xlane.xlu1 %2456 }
 0x8bf   : > { %v2475_v39 = vmul.f32 0.03125, %v2457_v48  ;;  %v442_v48 = vunpack.c.l.bf16 %v3278_v11 }
 0x8c1   : > { %v2483_v47 = vadd.f32 1e-05, %v2475_v39 }
 0x8c2   : > { %v2451_v6 = vpop.xlane.xlu1 %2450 }
 0x8c3   : > { %3260 = vrsqrt.f32 %v2483_v47  ;;  %v2473_v7 = vmul.f32 0.03125, %v2451_v6 }
 0x8c5   : > { %v2481_v9 = vadd.f32 1e-05, %v2473_v7  ;;  %v443_v7 = vunpack.c.h.bf16 %v3278_v11 }
 0x8c6   : > { %v2460_v12 = vpop.xlane.xlu0 %2459 }
 0x8c7   : > { %3262 = vrsqrt.f32 %v2481_v9  ;;  %v2476_v40 = vmul.f32 0.03125, %v2460_v12 }
 0x8c9   : > { %v2484_v34 = vadd.f32 1e-05, %v2476_v40 }
 0x8ca   : > { %v2454_v23 = vpop.xlane.xlu0 %2453 }
 0x8cb   : > { %3264 = vrsqrt.f32 %v2484_v34  ;;  %v2474_v13 = vmul.f32 0.03125, %v2454_v23  ;;  %v3279_v23 = vld [vmem:[%s3398_s24 + $0x18] sm:$0xff]  }
 0x8cd   : > { %v3261_v15 = vpop.eup %3260  ;;  %v2482_v18 = vadd.f32 1e-05, %v2474_v13 }
 0x8ce   : > { %v2499_v27 = vmul.f32 %v3261_v15, %v4024_v16 }
 0x8cf   : > { %3266 = vrsqrt.f32 %v2482_v18 }
 0x8d0   : > { %v2514_v21 = vmul.f32 %v4067_v25, %v2499_v27  ;;  %v445_v27 = vunpack.c.h.bf16 %v3279_v23 }
 0x8d1   : > { %v3263_v45 = vpop.eup %3262 }
 0x8d2   : > { %v2529_v19 = vadd.f32 %v4073_v38, %v2514_v21  ;;  %v2497_v43 = vmul.f32 %v3263_v45, %v4028_v42 }
 0x8d4   : > { %v2537_v62 = vadd.f32 %v2529_v19, %v440_v20  ;;  %v2512_v3 = vmul.f32 %v4067_v25, %v2497_v43 }
 0x8d5   : > { %v3265_v16 = vpop.eup %3264 }
 0x8d6   : > { %v2781_v44 = vpack.c.bf16 %v2537_v62, %v2537_v62  ;;  %v2527_v57 = vadd.f32 %v4073_v38, %v2512_v3  ;;  %v2500_v2 = vmul.f32 %v3265_v16, %v4035_v58 }
 0x8d8   : > { %2578 = vst.msk [vmem:[%s4086_s29 + $0x8] sm:$0xf] %vm2575_vm4, %v2781_v44  ;;  %v2535_v5 = vadd.f32 %v2527_v57, %v438_v63  ;;  %v2515_v42 = vmul.f32 %v4067_v25, %v2500_v2 }
 0x8d9   : > { %v3267_v52 = vpop.eup %3266 }
 0x8da   : > { %v2779_v10 = vpack.c.bf16 %v2535_v5, %v2535_v5  ;;  %v2530_v26 = vadd.f32 %v4073_v38, %v2515_v42  ;;  %v2498_v28 = vmul.f32 %v3267_v52, %v4033_v59 }
 0x8dc   : > { %2576 = vst.msk [vmem:[%s4086_s29] sm:$0xf] %vm2575_vm4, %v2779_v10  ;;  %v2538_v56 = vadd.f32 %v2530_v26, %v441_v1  ;;  %v2513_v54 = vmul.f32 %v4067_v25, %v2498_v28 }
 0x8de   : > { %v2782_v58 = vpack.c.bf16 %v2538_v56, %v2538_v56  ;;  %v2528_v22 = vadd.f32 %v4073_v38, %v2513_v54 }
 0x8e0   : > { %2579 = vst.msk [vmem:[%s4086_s29 + $0xc] sm:$0xf] %vm2575_vm4, %v2782_v58  ;;  %v2536_v50 = vadd.f32 %v2528_v22, %v439_v29 }
 0x8e2   : > { %v2780_v55 = vpack.c.bf16 %v2536_v50, %v2536_v50 }
 0x8e4   : > { %2577 = vst.msk [vmem:[%s4086_s29 + $0x4] sm:$0xf] %vm2575_vm4, %v2780_v55 }
 0x8fc   : > { %v2463_v31 = vpop.xlane.xlu1 %2462 }
 0x8fd   : > { %v2477_v49 = vmul.f32 0.03125, %v2463_v31 }
 0x8fe   : > { %v2466_v51 = vpop.xlane.xlu0 %2465 }
 0x8ff   : > { %v2485_v30 = vadd.f32 1e-05, %v2477_v49  ;;  %v2478_v59 = vmul.f32 0.03125, %v2466_v51 }
 0x900   : > { %v2469_v46 = vpop.xlane.xlu1 %2468 }
 0x901   : > { %3268 = vrsqrt.f32 %v2485_v30  ;;  %v2486_v37 = vadd.f32 1e-05, %v2478_v59  ;;  %v2479_v32 = vmul.f32 0.03125, %v2469_v46 }
 0x902   : > { %v2472_v17 = vpop.xlane.xlu0 %2471 }
 0x903   : > { %3270 = vrsqrt.f32 %v2486_v37  ;;  %v2487_v36 = vadd.f32 1e-05, %v2479_v32  ;;  %v2480_v33 = vmul.f32 0.03125, %v2472_v17 }
 0x905   : > { %3272 = vrsqrt.f32 %v2487_v36  ;;  %v2488_v4 = vadd.f32 1e-05, %v2480_v33 }
 0x907   : > { %3274 = vrsqrt.f32 %v2488_v4 }
 0x90b   : > { %v3269_v14 = vpop.eup %3268 }
 0x90c   : > { %v2501_v60 = vmul.f32 %v3269_v14, %v4044_v53  ;;  %v444_v53 = vunpack.c.l.bf16 %v3279_v23 }
 0x90d   : > { %v3271_v0 = vpop.eup %3270 }
 0x90e   : > { %v2516_v39 = vmul.f32 %v4067_v25, %v2501_v60  ;;  %v2502_v47 = vmul.f32 %v3271_v0, %v4046_v24 }
 0x90f   : > { %v3273_v6 = vpop.eup %3272 }
 0x910   : > { %v2531_v9 = vadd.f32 %v4073_v38, %v2516_v39  ;;  %v2517_v12 = vmul.f32 %v4067_v25, %v2502_v47  ;;  %v2503_v40 = vmul.f32 %v3273_v6, %v4050_v35 }
 0x911   : > { %v3275_v34 = vpop.eup %3274 }
 0x912   : > { %v2539_v13 = vadd.f32 %v2531_v9, %v442_v48  ;;  %v2532_v15 = vadd.f32 %v4073_v38, %v2517_v12  ;;  %v2518_v18 = vmul.f32 %v4067_v25, %v2503_v40  ;;  %v2504_v24 = vmul.f32 %v3275_v34, %v4055_v61 }
 0x914   : > { %v2783_v41 = vpack.c.bf16 %v2539_v13, %v2539_v13  ;;  %v2540_v20 = vadd.f32 %v2532_v15, %v443_v7  ;;  %v2533_v21 = vadd.f32 %v4073_v38, %v2518_v18  ;;  %v2519_v35 = vmul.f32 %v4067_v25, %v2504_v24 }
 0x916   : > { %2580 = vst.msk [vmem:[%s4086_s29 + $0x10] sm:$0xf] %vm2575_vm4, %v2783_v41  ;;  %v2784_v45 = vpack.c.bf16 %v2540_v20, %v2540_v20  ;;  %v2541_v19 = vadd.f32 %v2533_v21, %v444_v53  ;;  %v2534_v43 = vadd.f32 %v4073_v38, %v2519_v35 }
 0x918   : > { %2581 = vst.msk [vmem:[%s4086_s29 + $0x14] sm:$0xf] %vm2575_vm4, %v2784_v45  ;;  %v2785_v8 = vpack.c.bf16 %v2541_v19, %v2541_v19  ;;  %v2542_v63 = vadd.f32 %v2534_v43, %v445_v27 }
 0x91a   : > { %2582 = vst.msk [vmem:[%s4086_s29 + $0x18] sm:$0xf] %vm2575_vm4, %v2785_v8  ;;  %v2786_v61 = vpack.c.bf16 %v2542_v63, %v2542_v63 }
 0x91c   : > { %2583 = vst.msk [vmem:[%s4086_s29 + $0x1c] sm:$0xf] %vm2575_vm4, %v2786_v61 }
 0x91d PF: > { %s20_s15 = sadd.s32 1, %s3302_s15   ;;  %s4147_s13 = smov %s3298_s14 }
 0x91e   : > { %p17_p5 = scmp.ge.s32.totalorder %s20_s15, 4   ;;  %s4148_s14 = smov %s4150_s16 }
 0x920   :  { %19 = sbr.rel (!%p17_p5) target bundleno = 2 (0x2), region = 93 }

// kernel: _lambda_.13
= control target key start
LH: loop header
LB: loop body
LE: loop exit
PB: predicated region body
PF: predicated region fallthrough
CT: control target
= control target key end

     0   :  { %vm122_vm0 = vcmask 261120   ;;  %vm899_vm1 = vcmask 257024   ;;  %s1705_s1 = inlined_call_operand.vmem [shape: bf16[32,128], index: 1, kind: input, shape index: {}]   ;;  %s1706_s0 = inlined_call_operand.vmem [shape: bf16[128,32], index: 0, kind: input, shape index: {}]   ;;  %s1707_s3 = inlined_call_operand.vmem [shape: bf16[128,32], index: 3, kind: input, shape index: {}]   ;;  %s1708_s2 = inlined_call_operand.vmem [shape: f32[1,128], index: 2, kind: input, shape index: {}]   ;;  %s1709_s4 = inlined_call_operand.vmem [shape: f32[1,32], index: 4, kind: input, shape index: {}]   ;;  %s1710_s5 = inlined_call_operand.vmem [shape: f32[1,32], index: 5, kind: input, shape index: {}]   ;;  %s1711_s6 = inlined_call_operand.vmem [shape: f32[1,32], index: 6, kind: input, shape index: {}]   ;;  %s1712_s7 = inlined_call_operand.vmem [shape: bf16[128,32], index: 7, kind: output, shape index: {}]  }
   0x1   :  { %v1076_v0 = vld [vmem:[%s1705_s1] sm:$0xff]   ;;  %v1077_v1 = vld [vmem:[%s1705_s1 + $0x8] sm:$0xff]   ;;  %v31_v4 = vld [vmem:[%s1706_s0 + $0x10] sm:$0xff]  }
   0x2   :  { %1008 = vmatprep.subr.bf16.mxu0 %v1076_v0  ;;  %v1222_v2 = vld [vmem:[%s1706_s0] sm:$0xff]   ;;  %v1227_v3 = vld [vmem:[%s1706_s0 + $0x8] sm:$0xff]   ;;  %v33_v5 = vld [vmem:[%s1706_s0 + $0x18] sm:$0xff]  }
   0x3   :  { %1009 = vmatpush3.bf16.msra.mxu0 %v1076_v0  ;;  %1012 = vmatprep.mubr.msk.bf16.mxu0 %vm122_vm0, %v1222_v2  ;;  %v35_v6 = vld [vmem:[%s1706_s0 + $0x20] sm:$0xff]   ;;  %v37_v7 = vld [vmem:[%s1706_s0 + $0x28] sm:$0xff]   ;;  %v39_v8 = vld [vmem:[%s1706_s0 + $0x30] sm:$0xff]  }
   0x4   :  { %1010 = vmatprep.subr.bf16.mxu0 %v1077_v1  ;;  %v41_v9 = vld [vmem:[%s1706_s0 + $0x38] sm:$0xff]   ;;  %v1086_v10 = vld [vmem:[%s1707_s3] sm:$0xff]   ;;  %v1087_v11 = vld [vmem:[%s1707_s3 + $0x8] sm:$0xff]  }
   0x5   :  { %1060 = vmatprep.subr.bf16.mxu1 %v1086_v10  ;;  %v1088_v12 = vld [vmem:[%s1707_s3 + $0x10] sm:$0xff]   ;;  %v1089_v13 = vld [vmem:[%s1707_s3 + $0x18] sm:$0xff]   ;;  %v1090_v14 = vld [vmem:[%s1707_s3 + $0x20] sm:$0xff]  }
   0x6   :  { %1068 = vmatpush3.bf16.msra.mxu1 %v1086_v10  ;;  %v1091_v15 = vld [vmem:[%s1707_s3 + $0x28] sm:$0xff]   ;;  %v1092_v16 = vld [vmem:[%s1707_s3 + $0x30] sm:$0xff]   ;;  %v1093_v17 = vld [vmem:[%s1707_s3 + $0x38] sm:$0xff]  }
   0x7   :  { %1011 = vmatpush3.bf16.msra.mxu0 %v1077_v1  ;;  %1061 = vmatprep.subr.bf16.mxu1 %v1087_v11  ;;  %v1284_v18 = vld [vmem:[%s1708_s2] ss:$0 sm:$0xff] }
   0x8   :  { %1028 = vmatprep.subr.bf16.mxu0 %v1086_v10 }
   0xa   :  { %1013 = vmatmul.mubr.msk.bf16.vlgmr.msra.gmra.mrb[0].mxu0 %vm122_vm0, %v1227_v3  ;;  %1069 = vmatpush3.bf16.msra.mxu1 %v1087_v11 }
   0xb   :  { %1016 = vmatprep.mubr.msk.bf16.mxu0 %vm122_vm0, %v31_v4  ;;  %1029 = vmatpush3.bf16.msra.mxu0 %v1086_v10 }
   0xc   :  { %1030 = vmatprep.subr.bf16.mxu0 %v1087_v11  ;;  %1062 = vmatprep.subr.bf16.mxu1 %v1088_v12 }
   0xe   :  { %1070 = vmatpush3.bf16.msra.mxu1 %v1088_v12 }
   0xf   :  { %1031 = vmatpush3.bf16.msra.mxu0 %v1087_v11  ;;  %1063 = vmatprep.subr.bf16.mxu1 %v1089_v13 }
  0x10   :  { %1032 = vmatprep.subr.bf16.mxu0 %v1088_v12 }
  0x12   :  { %1017 = vmatmul.mubr.msk.bf16.gmra.mrb[4].mxu0 %vm122_vm0, %v33_v5  ;;  %1071 = vmatpush3.bf16.msra.mxu1 %v1089_v13 }
  0x13   :  { %1020 = vmatprep.mubr.msk.bf16.mxu0 %vm122_vm0, %v35_v6  ;;  %1033 = vmatpush3.bf16.msra.mxu0 %v1088_v12 }
  0x14   :  { %1034 = vmatprep.subr.bf16.mxu0 %v1089_v13  ;;  %1064 = vmatprep.subr.bf16.mxu1 %v1090_v14 }
  0x16   :  { %1072 = vmatpush3.bf16.msra.mxu1 %v1090_v14 }
  0x17   :  { %1035 = vmatpush3.bf16.msra.mxu0 %v1089_v13  ;;  %1065 = vmatprep.subr.bf16.mxu1 %v1091_v15 }
  0x18   :  { %1036 = vmatprep.subr.bf16.mxu0 %v1090_v14 }
  0x1a   :  { %1021 = vmatmul.mubr.msk.bf16.gmra.mrb[8].mxu0 %vm122_vm0, %v37_v7  ;;  %1073 = vmatpush3.bf16.msra.mxu1 %v1091_v15 }
  0x1b   :  { %1024 = vmatprep.mubr.msk.bf16.mxu0 %vm122_vm0, %v39_v8  ;;  %1037 = vmatpush3.bf16.msra.mxu0 %v1090_v14 }
  0x1c   :  { %1038 = vmatprep.subr.bf16.mxu0 %v1091_v15  ;;  %1066 = vmatprep.subr.bf16.mxu1 %v1092_v16 }
  0x1e   :  { %1074 = vmatpush3.bf16.msra.mxu1 %v1092_v16 }
  0x1f   :  { %1039 = vmatpush3.bf16.msra.mxu0 %v1091_v15  ;;  %1067 = vmatprep.subr.bf16.mxu1 %v1093_v17 }
  0x20   :  { %1040 = vmatprep.subr.bf16.mxu0 %v1092_v16 }
  0x22   :  { %1025 = vmatmul.mubr.msk.bf16.gmra.mrb[12].mxu0 %vm122_vm0, %v41_v9  ;;  %1075 = vmatpush3.bf16.msra.mxu1 %v1093_v17 }
  0x23   :  { %1041 = vmatpush3.bf16.msra.mxu0 %v1092_v16 }
  0x24   :  { %1042 = vmatprep.subr.bf16.mxu0 %v1093_v17 }
  0x27   :  { %1043 = vmatpush3.bf16.msra.mxu0 %v1093_v17 }
  0xdd   :  { %v1014_v19 = vpop.f32.mrb[0].mxu0 }
  0xde   :  { %v190_v20 = vadd.f32 %v1014_v19, %v1284_v18  ;;  %v181_v21 = vpop.f32.mrb[1].mxu0 }
  0xdf   :  { %v182_v22 = vadd.f32 %v1284_v18, %v181_v21  ;;  %v1015_v23 = vpop.f32.mrb[2].mxu0 }
  0xe0   :  { %v262_v24 = vmul.f32 0.044715, %v190_v20  ;;  %v1289_v25 = vadd.f32 %v1015_v23, %v1284_v18  ;;  %v184_v26 = vpop.f32.mrb[3].mxu0  ;;  %v246_v1 = vmul.f32 0.5, %v190_v20 }
  0xe1   :  { %v260_v27 = vmul.f32 0.044715, %v182_v22  ;;  %v1292_v28 = vadd.f32 %v1284_v18, %v184_v26  ;;  %v244_v10 = vmul.f32 0.5, %v182_v22 }
  0xe2   :  { %v278_v29 = vmul.f32 %v262_v24, %v190_v20  ;;  %v263_v30 = vmul.f32 0.044715, %v1289_v25 }
  0xe3   :  { %v276_v31 = vmul.f32 %v260_v27, %v182_v22  ;;  %v261_v32 = vmul.f32 0.044715, %v1292_v28 }
  0xe4   :  { %v294_v33 = vmul.f32 %v278_v29, %v190_v20  ;;  %v279_v34 = vmul.f32 %v263_v30, %v1289_v25 }
  0xe5   :  { %v292_v35 = vmul.f32 %v276_v31, %v182_v22  ;;  %v277_v36 = vmul.f32 %v261_v32, %v1292_v28  ;;  %v1018_v37 = vpop.f32.mrb[4].mxu0 }
  0xe6   :  { %v310_v38 = vadd.f32 %v294_v33, %v190_v20  ;;  %v295_v39 = vmul.f32 %v279_v34, %v1289_v25  ;;  %v1300_v40 = vadd.f32 %v1018_v37, %v1284_v18  ;;  %v197_v41 = vpop.f32.mrb[5].mxu0  ;;  %v247_v33 = vmul.f32 0.5, %v1289_v25 }
  0xe7   :  { %v293_v42 = vmul.f32 %v277_v36, %v1292_v28  ;;  %v198_v43 = vadd.f32 %v1284_v18, %v197_v41  ;;  %v1019_v44 = vpop.f32.mrb[6].mxu0  ;;  %v308_v45 = vadd.f32 %v292_v35, %v182_v22  ;;  %v245_v34 = vmul.f32 0.5, %v1292_v28 }
  0xe8   :  { %v326_v46 = vmul.f32 0.7978846, %v310_v38  ;;  %v311_v47 = vadd.f32 %v295_v39, %v1289_v25  ;;  %v266_v48 = vmul.f32 0.044715, %v1300_v40  ;;  %v1307_v49 = vadd.f32 %v1019_v44, %v1284_v18  ;;  %v200_v50 = vpop.f32.mrb[7].mxu0 }
  0xe9   :  { %v264_v51 = vmul.f32 0.044715, %v198_v43  ;;  %v1310_v52 = vadd.f32 %v1284_v18, %v200_v50  ;;  %v309_v53 = vadd.f32 %v293_v42, %v1292_v28  ;;  %v324_v54 = vmul.f32 0.7978846, %v308_v45 }
  0xea   :  { %1102 = vtanh.f32 %v326_v46  ;;  %v327_v55 = vmul.f32 0.7978846, %v311_v47  ;;  %v282_v56 = vmul.f32 %v266_v48, %v1300_v40  ;;  %v267_v57 = vmul.f32 0.044715, %v1307_v49 }
  0xeb   :  { %v265_v58 = vmul.f32 0.044715, %v1310_v52  ;;  %v325_v59 = vmul.f32 0.7978846, %v309_v53  ;;  %1104 = vtanh.f32 %v324_v54  ;;  %v280_v63 = vmul.f32 %v264_v51, %v198_v43 }
  0xec   :  { %1106 = vtanh.f32 %v327_v55  ;;  %v298_v60 = vmul.f32 %v282_v56, %v1300_v40  ;;  %v283_v61 = vmul.f32 %v267_v57, %v1307_v49  ;;  %v1344_v35 = vmul.f32 0.5, %v198_v43 }
  0xed   :  { %v1022_v62 = vpop.f32.mrb[8].mxu0  ;;  %1108 = vtanh.f32 %v325_v59  ;;  %v281_v0 = vmul.f32 %v265_v58, %v1310_v52  ;;  %v296_v11 = vmul.f32 %v280_v63, %v198_v43 }
  0xee   :  { %v299_v4 = vmul.f32 %v283_v61, %v1307_v49  ;;  %v1321_v5 = vadd.f32 %v1022_v62, %v1284_v18  ;;  %v213_v6 = vpop.f32.mrb[9].mxu0  ;;  %v314_v7 = vadd.f32 %v298_v60, %v1300_v40 }
  0xef   :  { %v1325_v8 = vadd.f32 %v1284_v18, %v213_v6  ;;  %v1023_v9 = vpop.f32.mrb[10].mxu0  ;;  %v297_v12 = vmul.f32 %v281_v0, %v1310_v52  ;;  %v312_v21 = vadd.f32 %v296_v11, %v198_v43 }
  0xf0   :  { %v270_v13 = vmul.f32 0.044715, %v1321_v5  ;;  %v1330_v14 = vadd.f32 %v1023_v9, %v1284_v18  ;;  %v216_v15 = vpop.f32.mrb[11].mxu0  ;;  %v315_v16 = vadd.f32 %v299_v4, %v1307_v49  ;;  %v330_v17 = vmul.f32 0.7978846, %v314_v7 }
  0xf1   :  { %v268_v19 = vmul.f32 0.044715, %v1325_v8  ;;  %v1335_v20 = vadd.f32 %v1284_v18, %v216_v15  ;;  %v313_v22 = vadd.f32 %v297_v12, %v1310_v52  ;;  %v328_v30 = vmul.f32 0.7978846, %v312_v21 }
  0xf2   :  { %v286_v23 = vmul.f32 %v270_v13, %v1321_v5  ;;  %v271_v24 = vmul.f32 0.044715, %v1330_v14  ;;  %v331_v26 = vmul.f32 0.7978846, %v315_v16  ;;  %1110 = vtanh.f32 %v330_v17 }
  0xf3   :  { %v284_v27 = vmul.f32 %v268_v19, %v1325_v8  ;;  %v269_v29 = vmul.f32 0.044715, %v1335_v20  ;;  %v329_v31 = vmul.f32 0.7978846, %v313_v22  ;;  %v249_v22 = vmul.f32 0.5, %v1310_v52 }
  0xf4   :  { %v1103_v32 = vpop.eup %1102  ;;  %1112 = vtanh.f32 %v331_v26  ;;  %v302_v37 = vmul.f32 %v286_v23, %v1321_v5  ;;  %v287_v43 = vmul.f32 %v271_v24, %v1330_v14  ;;  %v250_v23 = vmul.f32 0.5, %v1300_v40 }
  0xf5   :  { %v1105_v36 = vpop.eup %1104  ;;  %v285_v38 = vmul.f32 %v269_v29, %v1335_v20  ;;  %v1026_v39 = vpop.f32.mrb[12].mxu0  ;;  %v358_v41 = vadd.f32 1.0, %v1103_v32  ;;  %1114 = vtanh.f32 %v328_v30  ;;  %v300_v44 = vmul.f32 %v284_v27, %v1325_v8 }
  0xf6   :  { %v1107_v42 = vpop.eup %1106  ;;  %v1350_v45 = vadd.f32 %v1026_v39, %v1284_v18  ;;  %v229_v25 = vpop.f32.mrb[13].mxu0  ;;  %v356_v46 = vadd.f32 1.0, %v1105_v36  ;;  %1116 = vtanh.f32 %v329_v31  ;;  %v251_v24 = vmul.f32 0.5, %v1307_v49 }
  0xf7   :  { %v1109_v28 = vpop.eup %1108  ;;  %v301_v47 = vmul.f32 %v285_v38, %v1335_v20  ;;  %v1355_v48 = vadd.f32 %v1284_v18, %v229_v25  ;;  %v1027_v50 = vpop.f32.mrb[14].mxu0  ;;  %v359_v51 = vadd.f32 1.0, %v1107_v42  ;;  %v374_v57 = vmul.f32 %v358_v41, %v246_v1 }
  0xf8   :  { %v274_v53 = vmul.f32 0.044715, %v1350_v45  ;;  %v1359_v54 = vadd.f32 %v1027_v50, %v1284_v18  ;;  %v232_v55 = vpop.f32.mrb[15].mxu0  ;;  %v357_v56 = vadd.f32 1.0, %v1109_v28  ;;  %v372_v60 = vmul.f32 %v356_v46, %v244_v10 }
  0xf9   :  { %v272_v58 = vmul.f32 0.044715, %v1355_v48  ;;  %v1363_v59 = vadd.f32 %v1284_v18, %v232_v55  ;;  %v375_v61 = vmul.f32 %v359_v51, %v247_v33  ;;  %v316_v4 = vadd.f32 %v300_v44, %v1325_v8 }
  0xfa   :  { %v290_v62 = vmul.f32 %v274_v53, %v1350_v45  ;;  %v275_v63 = vmul.f32 0.044715, %v1359_v54  ;;  %v373_v0 = vmul.f32 %v357_v56, %v245_v34  ;;  %v317_v1 = vadd.f32 %v301_v47, %v1335_v20 }
  0xfb   :  { %v288_v6 = vmul.f32 %v272_v58, %v1355_v48  ;;  %v273_v7 = vmul.f32 0.044715, %v1363_v59  ;;  %v389_v9 = vpack.c.bf16 %v375_v61, %v374_v57  ;;  %v303_v18 = vmul.f32 %v287_v43, %v1330_v14 }
  0xfc   :  { %v1111_v11 = vpop.eup %1110  ;;  %v291_v10 = vmul.f32 %v275_v63, %v1359_v54  ;;  %v388_v12 = vpack.c.bf16 %v373_v0, %v372_v60  ;;  %v332_v13 = vmul.f32 0.7978846, %v316_v4  ;;  %v333_v19 = vmul.f32 0.7978846, %v317_v1 }
  0xfd   :  { %v304_v15 = vmul.f32 %v288_v6, %v1355_v48  ;;  %v289_v16 = vmul.f32 %v273_v7, %v1363_v59  ;;  %v362_v17 = vadd.f32 1.0, %v1111_v11  ;;  %v306_v27 = vmul.f32 %v290_v62, %v1350_v45 }
  0xfe   :  { %v1113_v21 = vpop.eup %1112  ;;  %1044 = vmatprep.mubr.bf16.mxu0 %v388_v12  ;;  %1118 = vtanh.f32 %v332_v13  ;;  %v307_v32 = vmul.f32 %v291_v10, %v1359_v54  ;;  %v318_v34 = vadd.f32 %v302_v37, %v1321_v5  ;;  %v319_v52 = vadd.f32 %v303_v18, %v1330_v14 }
  0xff   :  { %v1115_v26 = vpop.eup %1114  ;;  %v305_v29 = vmul.f32 %v289_v16, %v1363_v59  ;;  %1045 = vmatmul.mubr.bf16.vlgmr.msra.gmra.mrb[16].mxu0 %v389_v9  ;;  %v363_v30 = vadd.f32 1.0, %v1113_v21  ;;  %1120 = vtanh.f32 %v333_v19  ;;  %v378_v36 = vmul.f32 %v362_v17, %v250_v23 }
 0x100   :  { %v1117_v31 = vpop.eup %1116  ;;  %v360_v33 = vadd.f32 1.0, %v1115_v26  ;;  %v320_v38 = vadd.f32 %v304_v15, %v1355_v48  ;;  %v334_v39 = vmul.f32 0.7978846, %v318_v34  ;;  %v335_v41 = vmul.f32 0.7978846, %v319_v52 }
 0x101   :  { %v361_v40 = vadd.f32 1.0, %v1117_v31  ;;  %v379_v49 = vmul.f32 %v363_v30, %v251_v24  ;;  %v321_v42 = vadd.f32 %v305_v29, %v1363_v59  ;;  %v322_v37 = vadd.f32 %v306_v27, %v1350_v45 }
 0x102   :  { %v376_v44 = vmul.f32 %v360_v33, %v1344_v35  ;;  %v336_v28 = vmul.f32 0.7978846, %v320_v38  ;;  %1122 = vtanh.f32 %v334_v39  ;;  %v323_v50 = vadd.f32 %v307_v32, %v1359_v54 }
 0x103   :  { %v377_v25 = vmul.f32 %v361_v40, %v249_v22  ;;  %v391_v46 = vpack.c.bf16 %v379_v49, %v378_v36  ;;  %v337_v43 = vmul.f32 0.7978846, %v321_v42  ;;  %1124 = vtanh.f32 %v335_v41 }
 0x104   :  { %1126 = vtanh.f32 %v336_v28  ;;  %v338_v51 = vmul.f32 0.7978846, %v322_v37  ;;  %v339_v53 = vmul.f32 0.7978846, %v323_v50  ;;  %v252_v57 = vmul.f32 0.5, %v1325_v8 }
 0x105   :  { %v390_v47 = vpack.c.bf16 %v377_v25, %v376_v44  ;;  %1128 = vtanh.f32 %v337_v43  ;;  %v253_v58 = vmul.f32 0.5, %v1335_v20  ;;  %v254_v9 = vmul.f32 0.5, %v1321_v5 }
 0x106   :  { %1130 = vtanh.f32 %v338_v51  ;;  %v255_v1 = vmul.f32 0.5, %v1330_v14  ;;  %v256_v10 = vmul.f32 0.5, %v1355_v48  ;;  %v257_v15 = vmul.f32 0.5, %v1363_v59  ;;  %v939_v59 = vld [vmem:[%s1709_s4] ss:$0 sm:$0xff] }
 0x107   :  { %1048 = vmatprep.mubr.bf16.mxu1 %v390_v47  ;;  %1132 = vtanh.f32 %v339_v53  ;;  %v258_v19 = vmul.f32 0.5, %v1350_v45  ;;  %v259_v21 = vmul.f32 0.5, %v1359_v54 }
 0x108   :  { %v1119_v55 = vpop.eup %1118  ;;  %1049 = vmatmul.mubr.bf16.vlgmr.msra.gmra.mrb[0].mxu1 %v391_v46 }
 0x109   :  { %v1121_v35 = vpop.eup %1120  ;;  %v364_v56 = vadd.f32 1.0, %v1119_v55 }
 0x10a   :  { %v365_v60 = vadd.f32 1.0, %v1121_v35 }
 0x10b   :  { %v380_v61 = vmul.f32 %v364_v56, %v252_v57 }
 0x10c   :  { %v381_v62 = vmul.f32 %v365_v60, %v253_v58  ;;  %v1123_v63 = vpop.eup %1122 }
 0x10d   :  { %v1125_v4 = vpop.eup %1124  ;;  %v366_v6 = vadd.f32 1.0, %v1123_v63 }
 0x10e   :  { %v392_v0 = vpack.c.bf16 %v381_v62, %v380_v61  ;;  %v1127_v7 = vpop.eup %1126  ;;  %v367_v11 = vadd.f32 1.0, %v1125_v4 }
 0x10f   :  { %v1129_v18 = vpop.eup %1128  ;;  %v368_v8 = vadd.f32 1.0, %v1127_v7  ;;  %v382_v20 = vmul.f32 %v366_v6, %v254_v9 }
 0x110   :  { %1052 = vmatprep.mubr.bf16.mxu1 %v392_v0  ;;  %v1131_v12 = vpop.eup %1130  ;;  %v383_v13 = vmul.f32 %v367_v11, %v255_v1  ;;  %v369_v16 = vadd.f32 1.0, %v1129_v18 }
 0x111   :  { %v1133_v17 = vpop.eup %1132  ;;  %v370_v22 = vadd.f32 1.0, %v1131_v12  ;;  %v384_v23 = vmul.f32 %v368_v8, %v256_v10 }
 0x112   :  { %v393_v5 = vpack.c.bf16 %v383_v13, %v382_v20  ;;  %v385_v14 = vmul.f32 %v369_v16, %v257_v15  ;;  %v371_v24 = vadd.f32 1.0, %v1133_v17 }
 0x113   :  { %v386_v48 = vmul.f32 %v370_v22, %v258_v19 }
 0x114   :  { %1053 = vmatmul.mubr.bf16.gmra.mrb[4].mxu1 %v393_v5  ;;  %v394_v26 = vpack.c.bf16 %v385_v14, %v384_v23  ;;  %v387_v27 = vmul.f32 %v371_v24, %v259_v21 }
 0x116   :  { %1056 = vmatprep.mubr.bf16.mxu1 %v394_v26  ;;  %v395_v29 = vpack.c.bf16 %v387_v27, %v386_v48 }
 0x11c   :  { %1057 = vmatmul.mubr.bf16.gmra.mrb[8].mxu1 %v395_v29 }
 0x1d2   :  { %v1046_v30 = vpop.f32.mrb[16].mxu0 }
 0x1d3   :  { %v1399_v45 = vadd.f32 %v1046_v30, %v939_v59  ;;  %v501_v54 = vpop.f32.mrb[17].mxu0 }
 0x1d4   :  { %v1401_v31 = vadd.f32 %v939_v59, %v501_v54  ;;  %v1047_v32 = vpop.f32.mrb[18].mxu0 }
 0x1d5   :  { %v1403_v33 = vadd.f32 %v1047_v32, %v939_v59  ;;  %v504_v34 = vpop.f32.mrb[19].mxu0  ;;  %v570_v52 = vsel %vm122_vm0, %v1399_v45, 0.0 }
 0x1d6   :  { %v1407_v40 = vadd.f32 %v939_v59, %v504_v34  ;;  %571 = vadd.xlane.f32.xlu1 %v570_v52  ;;  %v564_v36 = vsel %vm122_vm0, %v1401_v31, 0.0 }
 0x1d7   :  { %565 = vadd.xlane.f32.xlu0 %v564_v36  ;;  %v573_v49 = vsel %vm122_vm0, %v1403_v33, 0.0 }
 0x1d8   :  { %v567_v38 = vsel %vm122_vm0, %v1407_v40, 0.0 }
 0x1da   :  { %574 = vadd.xlane.f32.xlu1 %v573_v49 }
 0x1db   :  { %v1050_v39 = vpop.f32.mrb[0].mxu1  ;;  %568 = vadd.xlane.f32.xlu0 %v567_v38 }
 0x1dc   :  { %v1415_v41 = vadd.f32 %v1050_v39, %v939_v59  ;;  %v517_v42 = vpop.f32.mrb[1].mxu1 }
 0x1dd   :  { %v1051_v44 = vpop.f32.mrb[2].mxu1  ;;  %v1417_v25 = vadd.f32 %v939_v59, %v517_v42 }
 0x1de   :  { %v1419_v46 = vadd.f32 %v1051_v44, %v939_v59  ;;  %v520_v28 = vpop.f32.mrb[3].mxu1  ;;  %v582_v43 = vsel %vm122_vm0, %v1415_v41, 0.0 }
 0x1df   :  { %583 = vadd.xlane.f32.xlu0 %v582_v43  ;;  %v1423_v37 = vadd.f32 %v939_v59, %v520_v28  ;;  %v576_v50 = vsel %vm122_vm0, %v1417_v25, 0.0 }
 0x1e0   :  { %v585_v47 = vsel %vm122_vm0, %v1419_v46, 0.0 }
 0x1e1   :  { %586 = vadd.xlane.f32.xlu1 %v585_v47  ;;  %v579_v51 = vsel %vm122_vm0, %v1423_v37, 0.0 }
 0x1e3   :  { %577 = vadd.xlane.f32.xlu0 %v576_v50 }
 0x1e5   :  { %580 = vadd.xlane.f32.xlu1 %v579_v51 }
 0x1e7   :  { %v1054_v53 = vpop.f32.mrb[4].mxu1 }
 0x1e8   :  { %v1431_v55 = vadd.f32 %v1054_v53, %v939_v59  ;;  %v533_v35 = vpop.f32.mrb[5].mxu1 }
 0x1e9   :  { %v1055_v56 = vpop.f32.mrb[6].mxu1  ;;  %v1433_v57 = vadd.f32 %v939_v59, %v533_v35 }
 0x1ea   :  { %v1435_v58 = vadd.f32 %v1055_v56, %v939_v59  ;;  %v536_v60 = vpop.f32.mrb[7].mxu1  ;;  %v594_v61 = vsel %vm122_vm0, %v1431_v55, 0.0 }
 0x1eb   :  { %595 = vadd.xlane.f32.xlu0 %v594_v61  ;;  %v1439_v62 = vadd.f32 %v939_v59, %v536_v60  ;;  %v588_v0 = vsel %vm122_vm0, %v1433_v57, 0.0 }
 0x1ec   :  { %v597_v63 = vsel %vm122_vm0, %v1435_v58, 0.0 }
 0x1ed   :  { %598 = vadd.xlane.f32.xlu1 %v597_v63  ;;  %v591_v7 = vsel %vm122_vm0, %v1439_v62, 0.0 }
 0x1ef   :  { %v1058_v4 = vpop.f32.mrb[8].mxu1  ;;  %589 = vadd.xlane.f32.xlu0 %v588_v0 }
 0x1f0   :  { %v549_v6 = vpop.f32.mrb[9].mxu1  ;;  %v1449_v18 = vadd.f32 %v1058_v4, %v939_v59 }
 0x1f1   :  { %v1447_v9 = vadd.f32 %v939_v59, %v549_v6  ;;  %v1059_v1 = vpop.f32.mrb[10].mxu1  ;;  %592 = vadd.xlane.f32.xlu1 %v591_v7 }
 0x1f2   :  { %v552_v11 = vpop.f32.mrb[11].mxu1  ;;  %v1455_v12 = vadd.f32 %v1059_v1, %v939_v59  ;;  %v606_v13 = vsel %vm122_vm0, %v1449_v18, 0.0 }
 0x1f3   :  { %v1451_v10 = vadd.f32 %v939_v59, %v552_v11  ;;  %v600_v8 = vsel %vm122_vm0, %v1447_v9, 0.0 }
 0x1f4   :  { %601 = vadd.xlane.f32.xlu0 %v600_v8  ;;  %v609_v15 = vsel %vm122_vm0, %v1455_v12, 0.0 }
 0x1f5   :  { %v603_v20 = vsel %vm122_vm0, %v1451_v10, 0.0 }
 0x1f6   :  { %604 = vadd.xlane.f32.xlu1 %v603_v20 }
 0x1f8   :  { %607 = vadd.xlane.f32.xlu0 %v606_v13 }
 0x1fa   :  { %610 = vadd.xlane.f32.xlu1 %v609_v15 }
 0x263   :  { %v572_v16 = vpop.xlane.xlu1 %571 }
 0x264   :  { %v615_v17 = vmul.f32 0.03125, %v572_v16  ;;  %v566_v19 = vpop.xlane.xlu0 %565 }
 0x265   :  { %v613_v21 = vmul.f32 0.03125, %v566_v19 }
 0x266   :  { %v1464_v22 = vsub.f32 %v1399_v45, %v615_v17 }
 0x267   :  { %v1467_v5 = vsub.f32 %v1401_v31, %v613_v21  ;;  %v575_v23 = vpop.xlane.xlu1 %574 }
 0x268   :  { %v616_v14 = vmul.f32 0.03125, %v575_v23  ;;  %v569_v24 = vpop.xlane.xlu0 %568  ;;  %v647_v26 = vmul.f32 %v1464_v22, %v1464_v22 }
 0x269   :  { %v614_v48 = vmul.f32 0.03125, %v569_v24  ;;  %v645_v59 = vmul.f32 %v1467_v5, %v1467_v5 }
 0x26a   :  { %v1472_v27 = vsub.f32 %v1403_v33, %v616_v14  ;;  %v667_v29 = vsel %vm122_vm0, %v647_v26, 0.0 }
 0x26b   :  { %v1478_v30 = vsub.f32 %v1407_v40, %v614_v48  ;;  %668 = vadd.xlane.f32.xlu0 %v667_v29  ;;  %v661_v33 = vsel %vm122_vm0, %v645_v59, 0.0 }
 0x26c   :  { %v584_v45 = vpop.xlane.xlu0 %583  ;;  %v648_v54 = vmul.f32 %v1472_v27, %v1472_v27 }
 0x26d   :  { %v619_v31 = vmul.f32 0.03125, %v584_v45  ;;  %v646_v52 = vmul.f32 %v1478_v30, %v1478_v30 }
 0x26e   :  { %v587_v32 = vpop.xlane.xlu1 %586  ;;  %v670_v34 = vsel %vm122_vm0, %v648_v54, 0.0 }
 0x26f   :  { %v1487_v36 = vsub.f32 %v1415_v41, %v619_v31  ;;  %v620_v49 = vmul.f32 0.03125, %v587_v32  ;;  %671 = vadd.xlane.f32.xlu1 %v670_v34  ;;  %662 = vadd.xlane.f32.xlu0 %v661_v33  ;;  %v664_v28 = vsel %vm122_vm0, %v646_v52, 0.0 }
 0x270   :  { %v578_v40 = vpop.xlane.xlu0 %577 }
 0x271   :  { %v1490_v38 = vsub.f32 %v1419_v46, %v620_v49  ;;  %v617_v39 = vmul.f32 0.03125, %v578_v40  ;;  %v651_v42 = vmul.f32 %v1487_v36, %v1487_v36 }
 0x272   :  { %v581_v44 = vpop.xlane.xlu1 %580 }
 0x273   :  { %v1496_v43 = vsub.f32 %v1417_v25, %v617_v39  ;;  %v618_v47 = vmul.f32 0.03125, %v581_v44  ;;  %665 = vadd.xlane.f32.xlu1 %v664_v28  ;;  %v679_v41 = vsel %vm122_vm0, %v651_v42, 0.0  ;;  %v652_v50 = vmul.f32 %v1490_v38, %v1490_v38 }
 0x274   :  { %680 = vadd.xlane.f32.xlu0 %v679_v41 }
 0x275   :  { %v1502_v46 = vsub.f32 %v1423_v37, %v618_v47  ;;  %v649_v51 = vmul.f32 %v1496_v43, %v1496_v43  ;;  %v682_v53 = vsel %vm122_vm0, %v652_v50, 0.0 }
 0x277   :  { %683 = vadd.xlane.f32.xlu1 %v682_v53  ;;  %v673_v25 = vsel %vm122_vm0, %v649_v51, 0.0  ;;  %v650_v35 = vmul.f32 %v1502_v46, %v1502_v46 }
 0x278   :  { %674 = vadd.xlane.f32.xlu0 %v673_v25  ;;  %v596_v56 = vpop.xlane.xlu0 %595 }
 0x279   :  { %v676_v60 = vsel %vm122_vm0, %v650_v35, 0.0  ;;  %v623_v61 = vmul.f32 0.03125, %v596_v56 }
 0x27a   :  { %v599_v63 = vpop.xlane.xlu1 %598 }
 0x27b   :  { %677 = vadd.xlane.f32.xlu1 %v676_v60  ;;  %v1512_v37 = vsub.f32 %v1431_v55, %v623_v61  ;;  %v624_v0 = vmul.f32 0.03125, %v599_v63 }
 0x27c   :  { %v590_v4 = vpop.xlane.xlu0 %589 }
 0x27d   :  { %v1515_v6 = vsub.f32 %v1435_v58, %v624_v0  ;;  %v621_v7 = vmul.f32 0.03125, %v590_v4  ;;  %v655_v1 = vmul.f32 %v1512_v37, %v1512_v37 }
 0x27e   :  { %v593_v11 = vpop.xlane.xlu1 %592 }
 0x27f   :  { %v1520_v8 = vsub.f32 %v1433_v57, %v621_v7  ;;  %v622_v20 = vmul.f32 0.03125, %v593_v11  ;;  %v691_v13 = vsel %vm122_vm0, %v655_v1, 0.0  ;;  %v656_v55 = vmul.f32 %v1515_v6, %v1515_v6  ;;  %v1562_v1 = vld [vmem:[%s1710_s5] ss:$0 sm:$0xff] }
 0x280   :  { %692 = vadd.xlane.f32.xlu0 %v691_v13 }
 0x281   :  { %v1526_v15 = vsub.f32 %v1439_v62, %v622_v20  ;;  %v602_v58 = vpop.xlane.xlu0 %601  ;;  %v694_v16 = vsel %vm122_vm0, %v656_v55, 0.0  ;;  %v653_v17 = vmul.f32 %v1520_v8, %v1520_v8 }
 0x282   :  { %v625_v19 = vmul.f32 0.03125, %v602_v58  ;;  %695 = vadd.xlane.f32.xlu1 %v694_v16  ;;  %v1568_v58 = vld [vmem:[%s1711_s6] ss:$0 sm:$0xff] }
 0x283   :  { %v605_v57 = vpop.xlane.xlu1 %604  ;;  %v685_v21 = vsel %vm122_vm0, %v653_v17, 0.0  ;;  %v654_v23 = vmul.f32 %v1526_v15, %v1526_v15  ;;  %v45_v17 = vunpack.c.l.bf16 %v1227_v3 }
 0x284   :  { %v1535_v14 = vsub.f32 %v1447_v9, %v625_v19  ;;  %v626_v24 = vmul.f32 0.03125, %v605_v57  ;;  %686 = vadd.xlane.f32.xlu0 %v685_v21 }
 0x285   :  { %v608_v62 = vpop.xlane.xlu0 %607  ;;  %v688_v26 = vsel %vm122_vm0, %v654_v23, 0.0 }
 0x286   :  { %v1539_v48 = vsub.f32 %v1451_v10, %v626_v24  ;;  %v627_v29 = vmul.f32 0.03125, %v608_v62  ;;  %689 = vadd.xlane.f32.xlu1 %v688_v26  ;;  %v657_v59 = vmul.f32 %v1535_v14, %v1535_v14  ;;  %v46_v26 = vunpack.c.h.bf16 %v1227_v3  ;;  %v1166_v3 = vld [vmem:[%s1706_s0] sm:$0xff]  }
 0x287   :  { %v611_v45 = vpop.xlane.xlu1 %610 }
 0x288   :  { %v1544_v54 = vsub.f32 %v1449_v18, %v627_v29  ;;  %v628_v31 = vmul.f32 0.03125, %v611_v45  ;;  %v697_v9 = vsel %vm122_vm0, %v657_v59, 0.0  ;;  %v658_v32 = vmul.f32 %v1539_v48, %v1539_v48 }
 0x289   :  { %698 = vadd.xlane.f32.xlu0 %v697_v9 }
 0x28a   :  { %v1550_v34 = vsub.f32 %v1455_v12, %v628_v31  ;;  %v700_v10 = vsel %vm122_vm0, %v658_v32, 0.0  ;;  %v659_v33 = vmul.f32 %v1544_v54, %v1544_v54  ;;  %v43_v31 = vunpack.c.l.bf16 %v1222_v2 }
 0x28b   :  { %701 = vadd.xlane.f32.xlu1 %v700_v10 }
 0x28c   :  { %v703_v52 = vsel %vm122_vm0, %v659_v33, 0.0  ;;  %v660_v18 = vmul.f32 %v1550_v34, %v1550_v34 }
 0x28d   :  { %704 = vadd.xlane.f32.xlu0 %v703_v52 }
 0x28e   :  { %v706_v49 = vsel %vm122_vm0, %v660_v18, 0.0  ;;  %v44_v18 = vunpack.c.h.bf16 %v1166_v3 }
 0x28f   :  { %707 = vadd.xlane.f32.xlu1 %v706_v49 }
 0x2f8   :  { %v669_v40 = vpop.xlane.xlu0 %668 }
 0x2f9   :  { %v711_v39 = vmul.f32 0.03125, %v669_v40 }
 0x2fb   :  { %v727_v42 = vadd.f32 1e-05, %v711_v39 }
 0x2fc   :  { %v672_v12 = vpop.xlane.xlu1 %671  ;;  %v663_v44 = vpop.xlane.xlu0 %662 }
 0x2fd   :  { %1134 = vrsqrt.f32 %v727_v42  ;;  %v712_v28 = vmul.f32 0.03125, %v672_v12  ;;  %v709_v47 = vmul.f32 0.03125, %v663_v44 }
 0x2ff   :  { %v728_v41 = vadd.f32 1e-05, %v712_v28  ;;  %v725_v50 = vadd.f32 1e-05, %v709_v47  ;;  %v1167_v28 = vld [vmem:[%s1706_s0 + $0x18] sm:$0xff]  }
 0x300   :  { %v666_v51 = vpop.xlane.xlu1 %665  ;;  %v49_v47 = vunpack.c.l.bf16 %v1167_v28 }
 0x301   :  { %1136 = vrsqrt.f32 %v728_v41  ;;  %v710_v53 = vmul.f32 0.03125, %v666_v51  ;;  %v681_v25 = vpop.xlane.xlu0 %680  ;;  %v50_v41 = vunpack.c.h.bf16 %v1167_v28  ;;  %v1169_v28 = vld [vmem:[%s1706_s0 + $0x28] sm:$0xff]  }
 0x302   :  { %1138 = vrsqrt.f32 %v725_v50  ;;  %v715_v35 = vmul.f32 0.03125, %v681_v25 }
 0x303   :  { %v726_v56 = vadd.f32 1e-05, %v710_v53 }
 0x304   :  { %v731_v60 = vadd.f32 1e-05, %v715_v35  ;;  %v684_v61 = vpop.xlane.xlu1 %683 }
 0x305   :  { %1140 = vrsqrt.f32 %v726_v56  ;;  %v716_v63 = vmul.f32 0.03125, %v684_v61  ;;  %v675_v0 = vpop.xlane.xlu0 %674 }
 0x306   :  { %1142 = vrsqrt.f32 %v731_v60  ;;  %v713_v4 = vmul.f32 0.03125, %v675_v0 }
 0x307   :  { %v1135_v7 = vpop.eup %1134  ;;  %v732_v11 = vadd.f32 1e-05, %v716_v63 }
 0x308   :  { %v759_v20 = vmul.f32 %v1135_v7, %v1464_v22  ;;  %v729_v13 = vadd.f32 1e-05, %v713_v4  ;;  %v678_v55 = vpop.xlane.xlu1 %677 }
 0x309   :  { %1144 = vrsqrt.f32 %v732_v11  ;;  %v714_v16 = vmul.f32 0.03125, %v678_v55 }
 0x30a   :  { %v782_v19 = vmul.f32 %v1562_v1, %v759_v20  ;;  %1146 = vrsqrt.f32 %v729_v13 }
 0x30b   :  { %v1137_v57 = vpop.eup %1136  ;;  %v730_v21 = vadd.f32 1e-05, %v714_v16 }
 0x30c   :  { %v1139_v23 = vpop.eup %1138  ;;  %v805_v24 = vadd.f32 %v1568_v58, %v782_v19  ;;  %v760_v22 = vmul.f32 %v1137_v57, %v1472_v27 }
 0x30d   :  { %v757_v62 = vmul.f32 %v1139_v23, %v1467_v5  ;;  %1148 = vrsqrt.f32 %v730_v21  ;;  %v693_v32 = vpop.xlane.xlu0 %692 }
 0x30e   :  { %v821_v29 = vadd.f32 %v805_v24, %v45_v17  ;;  %v783_v59 = vmul.f32 %v1562_v1, %v760_v22  ;;  %v719_v5 = vmul.f32 0.03125, %v693_v32 }
 0x30f   :  { %v1141_v45 = vpop.eup %1140  ;;  %v780_v9 = vmul.f32 %v1562_v1, %v757_v62  ;;  %v696_v40 = vpop.xlane.xlu1 %695 }
 0x310   :  { %v1143_v10 = vpop.eup %1142  ;;  %v968_v33 = vpack.c.bf16 %v821_v29, %v821_v29  ;;  %v806_v52 = vadd.f32 %v1568_v58, %v783_v59  ;;  %v758_v27 = vmul.f32 %v1141_v45, %v1478_v30  ;;  %v735_v30 = vadd.f32 1e-05, %v719_v5 }
 0x311   :  { %v803_v49 = vadd.f32 %v1568_v58, %v780_v9  ;;  %v763_v2 = vmul.f32 %v1143_v10, %v1487_v36  ;;  %v720_v12 = vmul.f32 0.03125, %v696_v40  ;;  %v687_v51 = vpop.xlane.xlu0 %686 }
 0x312   :  { %902 = vst.msk [vmem:[%s1712_s7 + $0x8] sm:$0xf] %vm899_vm1, %v968_v33  ;;  %v822_v39 = vadd.f32 %v806_v52, %v46_v26  ;;  %v781_v42 = vmul.f32 %v1562_v1, %v758_v27  ;;  %1150 = vrsqrt.f32 %v735_v30  ;;  %v717_v20 = vmul.f32 0.03125, %v687_v51 }
 0x313   :  { %v1145_v44 = vpop.eup %1144  ;;  %v819_v50 = vadd.f32 %v803_v49, %v43_v31  ;;  %v786_v36 = vmul.f32 %v1562_v1, %v763_v2  ;;  %v736_v0 = vadd.f32 1e-05, %v720_v12  ;;  %v690_v4 = vpop.xlane.xlu1 %689 }
 0x314   :  { %v1147_v53 = vpop.eup %1146  ;;  %v969_v25 = vpack.c.bf16 %v822_v39, %v822_v39  ;;  %v804_v35 = vadd.f32 %v1568_v58, %v781_v42  ;;  %v764_v56 = vmul.f32 %v1145_v44, %v1490_v38  ;;  %v718_v13 = vmul.f32 0.03125, %v690_v4  ;;  %v1168_v38 = vld [vmem:[%s1706_s0 + $0x10] sm:$0xff]  }
 0x315   :  { %v966_v60 = vpack.c.bf16 %v819_v50, %v819_v50  ;;  %v809_v61 = vadd.f32 %v1568_v58, %v786_v36  ;;  %v761_v63 = vmul.f32 %v1147_v53, %v1496_v43  ;;  %v47_v16 = vunpack.c.l.bf16 %v1168_v38 }
 0x316   :  { %903 = vst.msk [vmem:[%s1712_s7 + $0xc] sm:$0xf] %vm899_vm1, %v969_v25  ;;  %v820_v7 = vadd.f32 %v804_v35, %v44_v18  ;;  %v787_v11 = vmul.f32 %v1562_v1, %v764_v56  ;;  %1152 = vrsqrt.f32 %v736_v0  ;;  %v733_v23 = vadd.f32 1e-05, %v717_v20  ;;  %v699_v24 = vpop.xlane.xlu0 %698 }
 0x317   :  { %v1149_v55 = vpop.eup %1148  ;;  %900 = vst.msk [vmem:[%s1712_s7] sm:$0xf] %vm899_vm1, %v966_v60  ;;  %v825_v43 = vadd.f32 %v809_v61, %v49_v47  ;;  %v784_v17 = vmul.f32 %v1562_v1, %v761_v63  ;;  %v734_v26 = vadd.f32 1e-05, %v718_v13  ;;  %v721_v29 = vmul.f32 0.03125, %v699_v24 }
 0x318   :  { %v967_v19 = vpack.c.bf16 %v820_v7, %v820_v7  ;;  %v810_v57 = vadd.f32 %v1568_v58, %v787_v11  ;;  %v762_v21 = vmul.f32 %v1149_v55, %v1502_v46  ;;  %v48_v59 = vunpack.c.h.bf16 %v1168_v38  ;;  %v702_v9 = vpop.xlane.xlu1 %701 }
 0x319   :  { %v972_v22 = vpack.c.bf16 %v825_v43, %v825_v43  ;;  %v807_v62 = vadd.f32 %v1568_v58, %v784_v17  ;;  %1154 = vrsqrt.f32 %v733_v23  ;;  %v737_v32 = vadd.f32 1e-05, %v721_v29 }
 0x31a   :  { %901 = vst.msk [vmem:[%s1712_s7 + $0x4] sm:$0xf] %vm899_vm1, %v967_v19  ;;  %v826_v45 = vadd.f32 %v810_v57, %v50_v41  ;;  %v785_v31 = vmul.f32 %v1562_v1, %v762_v21  ;;  %1156 = vrsqrt.f32 %v734_v26  ;;  %v722_v10 = vmul.f32 0.03125, %v702_v9  ;;  %v705_v27 = vpop.xlane.xlu0 %704 }
 0x31b   :  { %906 = vst.msk [vmem:[%s1712_s7 + $0x18] sm:$0xf] %vm899_vm1, %v972_v22  ;;  %v823_v46 = vadd.f32 %v807_v62, %v47_v16  ;;  %1158 = vrsqrt.f32 %v737_v32  ;;  %v723_v18 = vmul.f32 0.03125, %v705_v27  ;;  %v53_v47 = vunpack.c.l.bf16 %v1169_v28 }
 0x31c   :  { %v973_v33 = vpack.c.bf16 %v826_v45, %v826_v45  ;;  %v808_v52 = vadd.f32 %v1568_v58, %v785_v31  ;;  %v738_v3 = vadd.f32 1e-05, %v722_v10  ;;  %v1151_v49 = vpop.eup %1150  ;;  %v708_v40 = vpop.xlane.xlu1 %707  ;;  %v54_v53 = vunpack.c.h.bf16 %v1169_v28 }
 0x31d   :  { %v970_v5 = vpack.c.bf16 %v823_v46, %v823_v46  ;;  %v767_v39 = vmul.f32 %v1151_v49, %v1512_v37  ;;  %v739_v42 = vadd.f32 1e-05, %v723_v18  ;;  %v724_v30 = vmul.f32 0.03125, %v708_v40 }
 0x31e   :  { %907 = vst.msk [vmem:[%s1712_s7 + $0x1c] sm:$0xf] %vm899_vm1, %v973_v33  ;;  %v824_v2 = vadd.f32 %v808_v52, %v48_v59  ;;  %1160 = vrsqrt.f32 %v738_v3 }
 0x31f   :  { %904 = vst.msk [vmem:[%s1712_s7 + $0x10] sm:$0xf] %vm899_vm1, %v970_v5  ;;  %v790_v41 = vmul.f32 %v1562_v1, %v767_v39  ;;  %1162 = vrsqrt.f32 %v739_v42  ;;  %v740_v50 = vadd.f32 1e-05, %v724_v30 }
 0x320   :  { %v971_v12 = vpack.c.bf16 %v824_v2, %v824_v2  ;;  %v1153_v44 = vpop.eup %1152 }
 0x321   :  { %v768_v37 = vmul.f32 %v1153_v44, %v1515_v6  ;;  %v813_v36 = vadd.f32 %v1568_v58, %v790_v41  ;;  %1164 = vrsqrt.f32 %v740_v50  ;;  %v1170_v6 = vld [vmem:[%s1706_s0 + $0x20] sm:$0xff]  }
 0x322   :  { %905 = vst.msk [vmem:[%s1712_s7 + $0x14] sm:$0xf] %vm899_vm1, %v971_v12  ;;  %v51_v4 = vunpack.c.l.bf16 %v1170_v6  ;;  %v52_v20 = vunpack.c.h.bf16 %v1170_v6 }
 0x323   :  { %v1155_v51 = vpop.eup %1154  ;;  %v791_v25 = vmul.f32 %v1562_v1, %v768_v37  ;;  %v829_v56 = vadd.f32 %v813_v36, %v53_v47 }
 0x324   :  { %v1157_v35 = vpop.eup %1156  ;;  %v765_v60 = vmul.f32 %v1155_v51, %v1520_v8 }
 0x325   :  { %v814_v61 = vadd.f32 %v1568_v58, %v791_v25  ;;  %v766_v63 = vmul.f32 %v1157_v35, %v1526_v15  ;;  %v1159_v0 = vpop.eup %1158  ;;  %v976_v7 = vpack.c.bf16 %v829_v56, %v829_v56  ;;  %v1171_v15 = vld [vmem:[%s1706_s0 + $0x30] sm:$0xff]  }
 0x326   :  { %v788_v11 = vmul.f32 %v1562_v1, %v765_v60  ;;  %v769_v38 = vmul.f32 %v1159_v0, %v1535_v14  ;;  %v55_v16 = vunpack.c.l.bf16 %v1171_v15  ;;  %v56_v23 = vunpack.c.h.bf16 %v1171_v15 }
 0x327   :  { %v830_v13 = vadd.f32 %v814_v61, %v54_v53  ;;  %v789_v55 = vmul.f32 %v1562_v1, %v766_v63  ;;  %910 = vst.msk [vmem:[%s1712_s7 + $0x28] sm:$0xf] %vm899_vm1, %v976_v7 }
 0x328   :  { %v1161_v8 = vpop.eup %1160  ;;  %v811_v43 = vadd.f32 %v1568_v58, %v788_v11  ;;  %v792_v57 = vmul.f32 %v1562_v1, %v769_v38 }
 0x329   :  { %v977_v17 = vpack.c.bf16 %v830_v13, %v830_v13  ;;  %v812_v19 = vadd.f32 %v1568_v58, %v789_v55  ;;  %v770_v14 = vmul.f32 %v1161_v8, %v1539_v48  ;;  %v1163_v21 = vpop.eup %1162  ;;  %v1172_v48 = vld [vmem:[%s1706_s0 + $0x38] sm:$0xff]  }
 0x32a   :  { %v827_v24 = vadd.f32 %v811_v43, %v51_v4  ;;  %v815_v62 = vadd.f32 %v1568_v58, %v792_v57  ;;  %v771_v29 = vmul.f32 %v1163_v21, %v1544_v54  ;;  %v57_v45 = vunpack.c.l.bf16 %v1172_v48 }
 0x32b   :  { %911 = vst.msk [vmem:[%s1712_s7 + $0x2c] sm:$0xf] %vm899_vm1, %v977_v17  ;;  %v828_v22 = vadd.f32 %v812_v19, %v52_v20  ;;  %v793_v26 = vmul.f32 %v1562_v1, %v770_v14  ;;  %v1165_v59 = vpop.eup %1164  ;;  %v58_v5 = vunpack.c.h.bf16 %v1172_v48 }
 0x32c   :  { %v974_v31 = vpack.c.bf16 %v827_v24, %v827_v24  ;;  %v831_v46 = vadd.f32 %v815_v62, %v55_v16  ;;  %v794_v10 = vmul.f32 %v1562_v1, %v771_v29  ;;  %v772_v54 = vmul.f32 %v1165_v59, %v1550_v34 }
 0x32d   :  { %v975_v9 = vpack.c.bf16 %v828_v22, %v828_v22  ;;  %v816_v32 = vadd.f32 %v1568_v58, %v793_v26 }
 0x32e   :  { %908 = vst.msk [vmem:[%s1712_s7 + $0x20] sm:$0xf] %vm899_vm1, %v974_v31  ;;  %v978_v33 = vpack.c.bf16 %v831_v46, %v831_v46  ;;  %v817_v27 = vadd.f32 %v1568_v58, %v794_v10  ;;  %v795_v3 = vmul.f32 %v1562_v1, %v772_v54 }
 0x32f   :  { %909 = vst.msk [vmem:[%s1712_s7 + $0x24] sm:$0xf] %vm899_vm1, %v975_v9  ;;  %v832_v52 = vadd.f32 %v816_v32, %v56_v23 }
 0x330   :  { %912 = vst.msk [vmem:[%s1712_s7 + $0x30] sm:$0xf] %vm899_vm1, %v978_v33  ;;  %v833_v49 = vadd.f32 %v817_v27, %v57_v45  ;;  %v818_v34 = vadd.f32 %v1568_v58, %v795_v3 }
 0x331   :  { %v979_v18 = vpack.c.bf16 %v832_v52, %v832_v52 }
 0x332   :  { %v980_v2 = vpack.c.bf16 %v833_v49, %v833_v49  ;;  %v834_v40 = vadd.f32 %v818_v34, %v58_v5 }
 0x333   :  { %913 = vst.msk [vmem:[%s1712_s7 + $0x34] sm:$0xf] %vm899_vm1, %v979_v18 }
 0x334   :  { %914 = vst.msk [vmem:[%s1712_s7 + $0x38] sm:$0xf] %vm899_vm1, %v980_v2  ;;  %v981_v1 = vpack.c.bf16 %v834_v40, %v834_v40 }
 0x336   :  { %915 = vst.msk [vmem:[%s1712_s7 + $0x3c] sm:$0xf] %vm899_vm1, %v981_v1 }

// kernel: _lambda_.16
= control target key start
LH: loop header
LB: loop body
LE: loop exit
PB: predicated region body
PF: predicated region fallthrough
CT: control target
= control target key end

     0   :  { %vm157_vm0 = vcmask 523264   ;;  %vm249_vm1 = vcmask 519168   ;;  %s420_s1 = inlined_call_operand.vmem [shape: bf16[128,64], index: 1, kind: input, shape index: {}]   ;;  %s421_s0 = inlined_call_operand.vmem [shape: bf16[32,128], index: 0, kind: input, shape index: {}]   ;;  %s422_s2 = inlined_call_operand.vmem [shape: f32[1,64], index: 2, kind: input, shape index: {}]   ;;  %s423_s3 = inlined_call_operand.vmem [shape: f32[1,64], index: 3, kind: input, shape index: {}]   ;;  %s424_s4 = inlined_call_operand.vmem [shape: f32[1,64], index: 4, kind: input, shape index: {}]   ;;  %s425_s5 = inlined_call_operand.vmem [shape: bf16[32,64], index: 5, kind: output, shape index: {}]  }
   0x1   :  { %v309_v0 = vld [vmem:[%s420_s1] sm:$0xff]   ;;  %v310_v1 = vld [vmem:[%s420_s1 + $0x8] sm:$0xff]   ;;  %v311_v2 = vld [vmem:[%s420_s1 + $0x10] sm:$0xff]  }
   0x2   :  { %289 = vmatprep.subr.bf16.mxu0 %v309_v0  ;;  %v312_v3 = vld [vmem:[%s420_s1 + $0x18] sm:$0xff]   ;;  %v317_v4 = vld [vmem:[%s421_s0] sm:$0xff]   ;;  %v314_v6 = vld [vmem:[%s420_s1 + $0x28] sm:$0xff]  }
   0x3   :  { %290 = vmatpush3.bf16.msra.mxu0 %v309_v0  ;;  %305 = vmatprep.mubr.bf16.mxu0 %v317_v4  ;;  %v313_v5 = vld [vmem:[%s420_s1 + $0x20] sm:$0xff]   ;;  %v315_v7 = vld [vmem:[%s420_s1 + $0x30] sm:$0xff]   ;;  %v316_v8 = vld [vmem:[%s420_s1 + $0x38] sm:$0xff]  }
   0x4   :  { %291 = vmatprep.subr.bf16.mxu0 %v310_v1  ;;  %v318_v9 = vld [vmem:[%s421_s0 + $0x8] sm:$0xff]   ;;  %v258_v10 = vld [vmem:[%s422_s2] ss:$0 sm:$0xff] }
   0x5   :  { %v269_v56 = vld [vmem:[%s423_s3] ss:$0 sm:$0xff] }
   0x6   :  { %v270_v58 = vld [vmem:[%s424_s4] ss:$0 sm:$0xff] }
   0x7   :  { %292 = vmatpush3.bf16.msra.mxu0 %v310_v1 }
   0x8   :  { %293 = vmatprep.subr.bf16.mxu0 %v311_v2 }
   0xb   :  { %294 = vmatpush3.bf16.msra.mxu0 %v311_v2 }
   0xc   :  { %295 = vmatprep.subr.bf16.mxu0 %v312_v3 }
   0xf   :  { %296 = vmatpush3.bf16.msra.mxu0 %v312_v3 }
  0x10   :  { %297 = vmatprep.subr.bf16.mxu0 %v313_v5 }
  0x13   :  { %298 = vmatpush3.bf16.msra.mxu0 %v313_v5 }
  0x14   :  { %299 = vmatprep.subr.bf16.mxu0 %v314_v6 }
  0x17   :  { %300 = vmatpush3.bf16.msra.mxu0 %v314_v6 }
  0x18   :  { %301 = vmatprep.subr.bf16.mxu0 %v315_v7 }
  0x1b   :  { %302 = vmatpush3.bf16.msra.mxu0 %v315_v7 }
  0x1c   :  { %303 = vmatprep.subr.bf16.mxu0 %v316_v8 }
  0x1f   :  { %304 = vmatpush3.bf16.msra.mxu0 %v316_v8 }
  0x22   :  { %306 = vmatmul.mubr.bf16.vlgmr.msra.gmra.mrb[0].mxu0 %v318_v9 }
  0xf5   :  { %v307_v11 = vpop.f32.mrb[0].mxu0 }
  0xf6   :  { %v151_v12 = vadd.f32 %v307_v11, %v258_v10  ;;  %v142_v13 = vpop.f32.mrb[1].mxu0 }
  0xf7   :  { %v143_v14 = vadd.f32 %v258_v10, %v142_v13  ;;  %v308_v15 = vpop.f32.mrb[2].mxu0 }
  0xf8   :  { %v154_v16 = vadd.f32 %v308_v15, %v258_v10  ;;  %v145_v17 = vpop.f32.mrb[3].mxu0  ;;  %v164_v18 = vsel %vm157_vm0, %v151_v12, 0.0 }
  0xf9   :  { %v146_v19 = vadd.f32 %v258_v10, %v145_v17  ;;  %165 = vadd.xlane.f32.xlu1 %v164_v18  ;;  %v158_v20 = vsel %vm157_vm0, %v143_v14, 0.0 }
  0xfa   :  { %159 = vadd.xlane.f32.xlu0 %v158_v20  ;;  %v167_v21 = vsel %vm157_vm0, %v154_v16, 0.0 }
  0xfb   :  { %v161_v22 = vsel %vm157_vm0, %v146_v19, 0.0 }
  0xfd   :  { %168 = vadd.xlane.f32.xlu1 %v167_v21 }
  0xfe   :  { %162 = vadd.xlane.f32.xlu0 %v161_v22 }
 0x186   :  { %v166_v23 = vpop.xlane.xlu1 %165 }
 0x187   :  { %v173_v24 = vmul.f32 0.015625, %v166_v23  ;;  %v160_v25 = vpop.xlane.xlu0 %159 }
 0x188   :  { %v171_v26 = vmul.f32 0.015625, %v160_v25 }
 0x189   :  { %v177_v27 = vsub.f32 %v151_v12, %v173_v24 }
 0x18a   :  { %v175_v28 = vsub.f32 %v143_v14, %v171_v26  ;;  %v169_v29 = vpop.xlane.xlu1 %168 }
 0x18b   :  { %v174_v30 = vmul.f32 0.015625, %v169_v29  ;;  %v163_v31 = vpop.xlane.xlu0 %162  ;;  %v181_v37 = vmul.f32 %v177_v27, %v177_v27 }
 0x18c   :  { %v172_v32 = vmul.f32 0.015625, %v163_v31  ;;  %v179_v33 = vmul.f32 %v175_v28, %v175_v28 }
 0x18d   :  { %v178_v34 = vsub.f32 %v154_v16, %v174_v30  ;;  %v189_v39 = vsel %vm157_vm0, %v181_v37, 0.0 }
 0x18e   :  { %v176_v35 = vsub.f32 %v146_v19, %v172_v32  ;;  %v183_v36 = vsel %vm157_vm0, %v179_v33, 0.0 }
 0x18f   :  { %184 = vadd.xlane.f32.xlu0 %v183_v36  ;;  %v182_v41 = vmul.f32 %v178_v34, %v178_v34 }
 0x190   :  { %v180_v38 = vmul.f32 %v176_v35, %v176_v35 }
 0x191   :  { %v192_v42 = vsel %vm157_vm0, %v182_v41, 0.0 }
 0x192   :  { %v186_v40 = vsel %vm157_vm0, %v180_v38, 0.0 }
 0x193   :  { %190 = vadd.xlane.f32.xlu0 %v189_v39  ;;  %187 = vadd.xlane.f32.xlu1 %v186_v40 }
 0x197   :  { %193 = vadd.xlane.f32.xlu1 %v192_v42 }
 0x21c   :  { %v185_v43 = vpop.xlane.xlu0 %184 }
 0x21d   :  { %v195_v44 = vmul.f32 0.015625, %v185_v43 }
 0x21f   :  { %v199_v45 = vadd.f32 1e-05, %v195_v44 }
 0x220   :  { %v188_v46 = vpop.xlane.xlu1 %187  ;;  %v191_v47 = vpop.xlane.xlu0 %190 }
 0x221   :  { %319 = vrsqrt.f32 %v199_v45  ;;  %v196_v48 = vmul.f32 0.015625, %v188_v46  ;;  %v197_v49 = vmul.f32 0.015625, %v191_v47 }
 0x223   :  { %v200_v50 = vadd.f32 1e-05, %v196_v48  ;;  %v201_v51 = vadd.f32 1e-05, %v197_v49 }
 0x224   :  { %v194_v52 = vpop.xlane.xlu1 %193 }
 0x225   :  { %321 = vrsqrt.f32 %v200_v50  ;;  %v198_v53 = vmul.f32 0.015625, %v194_v52 }
 0x226   :  { %323 = vrsqrt.f32 %v201_v51 }
 0x227   :  { %v202_v54 = vadd.f32 1e-05, %v198_v53 }
 0x229   :  { %325 = vrsqrt.f32 %v202_v54 }
 0x22b   :  { %v320_v55 = vpop.eup %319 }
 0x22c   :  { %v207_v57 = vmul.f32 %v320_v55, %v175_v28 }
 0x22e   :  { %v218_v59 = vmul.f32 %v269_v56, %v207_v57 }
 0x22f   :  { %v322_v60 = vpop.eup %321 }
 0x230   :  { %v324_v61 = vpop.eup %323  ;;  %v229_v62 = vadd.f32 %v270_v58, %v218_v59  ;;  %v208_v63 = vmul.f32 %v322_v60, %v176_v35 }
 0x231   :  { %v209_v0 = vmul.f32 %v324_v61, %v177_v27 }
 0x232   :  { %v275_v1 = vpack.c.bf16 %v229_v62, %v229_v62  ;;  %v219_v2 = vmul.f32 %v269_v56, %v208_v63 }
 0x233   :  { %v326_v3 = vpop.eup %325  ;;  %v220_v4 = vmul.f32 %v269_v56, %v209_v0 }
 0x234   :  { %250 = vst.msk [vmem:[%s425_s5] sm:$0xf] %vm249_vm1, %v275_v1  ;;  %v230_v5 = vadd.f32 %v270_v58, %v219_v2  ;;  %v210_v6 = vmul.f32 %v326_v3, %v178_v34 }
 0x235   :  { %v231_v7 = vadd.f32 %v270_v58, %v220_v4 }
 0x236   :  { %v276_v8 = vpack.c.bf16 %v230_v5, %v230_v5  ;;  %v221_v9 = vmul.f32 %v269_v56, %v210_v6 }
 0x237   :  { %v277_v10 = vpack.c.bf16 %v231_v7, %v231_v7 }
 0x238   :  { %251 = vst.msk [vmem:[%s425_s5 + $0x4] sm:$0xf] %vm249_vm1, %v276_v8  ;;  %v232_v11 = vadd.f32 %v270_v58, %v221_v9 }
 0x239   :  { %252 = vst.msk [vmem:[%s425_s5 + $0x8] sm:$0xf] %vm249_vm1, %v277_v10 }
 0x23a   :  { %v278_v12 = vpack.c.bf16 %v232_v11, %v232_v11 }
 0x23c   :  { %253 = vst.msk [vmem:[%s425_s5 + $0xc] sm:$0xf] %vm249_vm1, %v278_v12 }

// kernel: _lambda_.21
= control target key start
LH: loop header
LB: loop body
LE: loop exit
PB: predicated region body
PF: predicated region fallthrough
CT: control target
= control target key end

     0   :  { %vm23_vm0 = vcmask 523264   ;;  %s224_s0 = inlined_call_operand.vmem [shape: bf16[32,64], index: 0, kind: input, shape index: {}]   ;;  %s225_s1 = inlined_call_operand.vmem [shape: f32[1,64], index: 1, kind: input, shape index: {}]   ;;  %s226_s2 = inlined_call_operand.vmem [shape: f32[1,64], index: 2, kind: input, shape index: {}]   ;;  %s227_s3 = inlined_call_operand.hbm [shape: f32[32,64], index: 3, kind: output, shape index: {}]  }
   0x1   :  { %v122_v0 = vld [vmem:[%s224_s0] sm:$0xff]   ;;  %v129_v1 = vld [vmem:[%s224_s0 + $0x8] sm:$0xff]  }
   0x2   :  { %8 = vsyncpa [#allocation3], 0  ;;  %v123_v2 = vunpack.c.l.bf16 %v122_v0  ;;  %v127_v3 = vunpack.c.l.bf16 %v129_v1  ;;  %v124_v4 = vunpack.c.h.bf16 %v122_v0  ;;  %v128_v5 = vunpack.c.h.bf16 %v129_v1  ;;  %v119_v43 = vld [vmem:[%s225_s1] ss:$0 sm:$0xff]  ;;  %s165_s1 = smov [#allocation2]  }
   0x3   :  { %v120_v45 = vld [vmem:[%s226_s2] ss:$0 sm:$0xff]  ;;  %s108_s19 = sshll.u32 %s165_s1, 4  ;;  %s109_s19 = int_to_ptr.vmem [resolvable:$true] %s108_s19 }
   0x4   :  { %v24_v6 = vsel %vm23_vm0, %v123_v2, 0.0  ;;  %v30_v7 = vsel %vm23_vm0, %v127_v3, 0.0  ;;  %v27_v8 = vsel %vm23_vm0, %v124_v4, 0.0  ;;  %v33_v9 = vsel %vm23_vm0, %v128_v5, 0.0  ;;  %s141_s2 = scalar_lea.vmem %s109_s19, 512  ;;  %p146_p1 = scmp.lt.s32.totalorder %s109_s19, %s109_s19 }
   0x5   :  { %25 = vadd.xlane.f32.xlu0 %v24_v6  ;;  %31 = vadd.xlane.f32.xlu1 %v30_v7  ;;  %p142_p0 = scmp.ne.s32.totalorder %s109_s19, %s141_s2  ;;  %p147_p2 = scmp.lt.s32.totalorder %s141_s2, %s141_s2 }
   0x7   :  { %p148_p3 = por %p147_p2, %p146_p1 }
   0x9   :  { %28 = vadd.xlane.f32.xlu0 %v27_v8  ;;  %34 = vadd.xlane.f32.xlu1 %v33_v9  ;;  %p149_p4 = pnand %p148_p3, %p142_p0 }
  0x92   :  { %v26_v10 = vpop.xlane.xlu0 %25  ;;  %v32_v11 = vpop.xlane.xlu1 %31 }
  0x93   :  { %v37_v12 = vmul.f32 0.015625, %v26_v10  ;;  %v39_v13 = vmul.f32 0.015625, %v32_v11 }
  0x95   :  { %v41_v14 = vsub.f32 %v123_v2, %v37_v12  ;;  %v43_v15 = vsub.f32 %v127_v3, %v39_v13 }
  0x96   :  { %v29_v16 = vpop.xlane.xlu0 %28  ;;  %v35_v17 = vpop.xlane.xlu1 %34 }
  0x97   :  { %v38_v18 = vmul.f32 0.015625, %v29_v16  ;;  %v40_v19 = vmul.f32 0.015625, %v35_v17  ;;  %v45_v20 = vmul.f32 %v41_v14, %v41_v14  ;;  %v47_v21 = vmul.f32 %v43_v15, %v43_v15 }
  0x99   :  { %v42_v22 = vsub.f32 %v124_v4, %v38_v18  ;;  %v44_v23 = vsub.f32 %v128_v5, %v40_v19  ;;  %v49_v24 = vsel %vm23_vm0, %v45_v20, 0.0  ;;  %v55_v25 = vsel %vm23_vm0, %v47_v21, 0.0 }
  0x9a   :  { %50 = vadd.xlane.f32.xlu0 %v49_v24 }
  0x9b   :  { %v46_v26 = vmul.f32 %v42_v22, %v42_v22  ;;  %v48_v27 = vmul.f32 %v44_v23, %v44_v23 }
  0x9d   :  { %v52_v28 = vsel %vm23_vm0, %v46_v26, 0.0  ;;  %v58_v29 = vsel %vm23_vm0, %v48_v27, 0.0 }
  0x9e   :  { %56 = vadd.xlane.f32.xlu0 %v55_v25  ;;  %53 = vadd.xlane.f32.xlu1 %v52_v28 }
  0xa2   :  { %59 = vadd.xlane.f32.xlu1 %v58_v29 }
 0x127   :  { %v51_v30 = vpop.xlane.xlu0 %50 }
 0x128   :  { %v61_v31 = vmul.f32 0.015625, %v51_v30 }
 0x12a   :  { %v65_v32 = vadd.f32 1e-05, %v61_v31 }
 0x12b   :  { %v54_v33 = vpop.xlane.xlu1 %53  ;;  %v57_v34 = vpop.xlane.xlu0 %56 }
 0x12c   :  { %133 = vrsqrt.f32 %v65_v32  ;;  %v62_v35 = vmul.f32 0.015625, %v54_v33  ;;  %v63_v36 = vmul.f32 0.015625, %v57_v34 }
 0x12e   :  { %v66_v37 = vadd.f32 1e-05, %v62_v35  ;;  %v67_v38 = vadd.f32 1e-05, %v63_v36 }
 0x12f   :  { %v60_v39 = vpop.xlane.xlu1 %59 }
 0x130   :  { %135 = vrsqrt.f32 %v66_v37  ;;  %v64_v40 = vmul.f32 0.015625, %v60_v39 }
 0x131   :  { %137 = vrsqrt.f32 %v67_v38 }
 0x132   :  { %v68_v41 = vadd.f32 1e-05, %v64_v40 }
 0x134   :  { %139 = vrsqrt.f32 %v68_v41 }
 0x136   :  { %v134_v42 = vpop.eup %133 }
 0x137   :  { %v73_v44 = vmul.f32 %v134_v42, %v41_v14 }
 0x139   :  { %v84_v46 = vmul.f32 %v119_v43, %v73_v44 }
 0x13a   :  { %v136_v47 = vpop.eup %135 }
 0x13b   :  { %v138_v48 = vpop.eup %137  ;;  %v95_v49 = vadd.f32 %v120_v45, %v84_v46  ;;  %v74_v50 = vmul.f32 %v136_v47, %v42_v22 }
 0x13c   :  { %v75_v51 = vmul.f32 %v138_v48, %v43_v15 }
 0x13d   :  { %99 = vst.msk [vmem:[#allocation2] sm:$0xff] %vm23_vm0, %v95_v49  ;;  %v85_v52 = vmul.f32 %v119_v43, %v74_v50 }
 0x13e   :  { %v140_v53 = vpop.eup %139  ;;  %v86_v54 = vmul.f32 %v119_v43, %v75_v51 }
 0x13f   :  { %v96_v55 = vadd.f32 %v120_v45, %v85_v52  ;;  %v76_v56 = vmul.f32 %v140_v53, %v44_v23 }
 0x140   :  { %v97_v57 = vadd.f32 %v120_v45, %v86_v54 }
 0x141   :  { %100 = vst.msk [vmem:[#allocation2 + $0x8] sm:$0xff] %vm23_vm0, %v96_v55  ;;  %v87_v58 = vmul.f32 %v119_v43, %v76_v56 }
 0x142   :  { %101 = vst.msk [vmem:[#allocation2 + $0x10] sm:$0xff] %vm23_vm0, %v97_v57 }
 0x143   :  { %v98_v59 = vadd.f32 %v120_v45, %v87_v58 }
 0x145   :  { %102 = vst.msk [vmem:[#allocation2 + $0x18] sm:$0xff] %vm23_vm0, %v98_v59 }
 0x146   :  { %152 = shalt.err (!%p149_p4)
}
 0x147   :  { %s153_s22 = scalar_lea.hbm %s227_s3, 512 }
 0x148   :  { %p154_p5 = scmp.ne.s32.totalorder %s227_s3, %s153_s22  ;;  %p157_p6 = scmp.lt.u32.totalorder %s153_s22, %s227_s3 }
 0x14a   :  { %p159_p7 = pnand %p157_p6, %p154_p5 }
 0x14c   :  { %162 = shalt.err (!%p159_p7)
}
 0x14d   :  { %s166_s27 = smov 128   ;;  %s167_s28 = smov 8  }
 0x14e   :  { %114 = dma.vmem_to_hbm [thread:$0]  %s109_s19, 512, %s227_s3, [#allocation3], %s166_s27, %s166_s27, %s167_s28  }
 0x14f   :  { %163 = dma.done.wait [#allocation3], 512  }
 0x150   :  { %164 = vsyncadd [#allocation3], 4294966784 }
 0x151   :  { %118 = vsyncpa [#allocation3], 1 }

// kernel: _lambda_.18
= control target key start
LH: loop header
LB: loop body
LE: loop exit
PB: predicated region body
PF: predicated region fallthrough
CT: control target
= control target key end

     0   :  { %v653_v1 = vmov 0   ;;  %vm105_vm0 = vcmask 523264   ;;  %v45_v27 = vlaneseq  ;;  %vm520_vm1 = vcmask 519168   ;;  %s862_s1 = inlined_call_operand.vmem [shape: bf16[64,256], index: 1, kind: input, shape index: {}]   ;;  %s863_s0 = inlined_call_operand.vmem [shape: bf16[32,64], index: 0, kind: input, shape index: {}]   ;;  %s864_s3 = inlined_call_operand.vmem [shape: bf16[256,64], index: 3, kind: input, shape index: {}]   ;;  %s865_s2 = inlined_call_operand.vmem [shape: f32[1,256], index: 2, kind: input, shape index: {}]   ;;  %s866_s4 = inlined_call_operand.vmem [shape: f32[1,64], index: 4, kind: input, shape index: {}]   ;;  %s867_s5 = inlined_call_operand.vmem [shape: f32[1,64], index: 5, kind: input, shape index: {}]   ;;  %s868_s6 = inlined_call_operand.vmem [shape: f32[1,64], index: 6, kind: input, shape index: {}]   ;;  %s869_s7 = inlined_call_operand.vmem [shape: bf16[32,64], index: 7, kind: output, shape index: {}]  }
   0x1   :  { %v597_v0 = vld [vmem:[%s862_s1 + $0x4] ss:$8 sps:$4 sm:$0xff]   ;;  %144 = vmatprep.mubr.bf16.mxu0 %v653_v1  ;;  %v599_v2 = vld [vmem:[%s862_s1] ss:$8 sps:$4 sm:$0xff]   ;;  %v600_v3 = vld [vmem:[%s862_s1 + $0x14] ss:$8 sps:$4 sm:$0xff]  }
   0x2   :  { %112 = vmatprep.subr.bf16.mxu0 %v597_v0  ;;  %v602_v4 = vld [vmem:[%s862_s1 + $0x10] ss:$8 sps:$4 sm:$0xff]   ;;  %v603_v5 = vld [vmem:[%s862_s1 + $0x24] ss:$8 sps:$4 sm:$0xff]   ;;  %v605_v6 = vld [vmem:[%s862_s1 + $0x20] ss:$8 sps:$4 sm:$0xff]  }
   0x3   :  { %113 = vmatpush1.bf16.msra.mxu0 %v599_v2  ;;  %v606_v7 = vld [vmem:[%s862_s1 + $0x34] ss:$8 sps:$4 sm:$0xff]   ;;  %v608_v8 = vld [vmem:[%s862_s1 + $0x30] ss:$8 sps:$4 sm:$0xff]   ;;  %v721_v9 = vld [vmem:[%s863_s0] sm:$0xff]   ;;  %v46_v28 = vshrl.u32 %v45_v27, 7 }
   0x4   :  { %114 = vmatprep.subr.bf16.mxu0 %v600_v3  ;;  %v728_v10 = vld [vmem:[%s863_s0 + $0x8] sm:$0xff]   ;;  %v611_v11 = vld [vmem:[%s864_s3 + $0x40] sm:$0xff]   ;;  %v615_v15 = vld [vmem:[%s864_s3 + $0x50] sm:$0xff]  }
   0x5   :  { %v612_v12 = vld [vmem:[%s864_s3] sm:$0xff]   ;;  %568 = vmatprep.subr.bf16.mxu1 %v611_v11  ;;  %v613_v13 = vld [vmem:[%s864_s3 + $0x48] sm:$0xff]   ;;  %v616_v16 = vld [vmem:[%s864_s3 + $0x10] sm:$0xff]   ;;  %v47_v29 = vsub.s32 0, %v46_v28  ;;  %v51_v31 = vsub.s32 1, %v46_v28 }
   0x6   :  { %569 = vmatpush3.bf16.msra.mxu1 %v612_v12  ;;  %v614_v14 = vld [vmem:[%s864_s3 + $0x8] sm:$0xff]   ;;  %v617_v17 = vld [vmem:[%s864_s3 + $0x58] sm:$0xff]   ;;  %v619_v19 = vld [vmem:[%s864_s3 + $0x60] sm:$0xff]  }
   0x7   :  { %115 = vmatpush1.bf16.msra.mxu0 %v602_v4  ;;  %570 = vmatprep.subr.bf16.mxu1 %v613_v13  ;;  %v618_v18 = vld [vmem:[%s864_s3 + $0x18] sm:$0xff]   ;;  %v620_v20 = vld [vmem:[%s864_s3 + $0x20] sm:$0xff]   ;;  %v621_v21 = vld [vmem:[%s864_s3 + $0x68] sm:$0xff]  }
   0x8   :  { %116 = vmatprep.subr.bf16.mxu0 %v603_v5  ;;  %v622_v22 = vld [vmem:[%s864_s3 + $0x28] sm:$0xff]   ;;  %v623_v23 = vld [vmem:[%s864_s3 + $0x70] sm:$0xff]   ;;  %v625_v25 = vld [vmem:[%s864_s3 + $0x78] sm:$0xff]  }
   0x9   :  { %v624_v24 = vld [vmem:[%s864_s3 + $0x30] sm:$0xff]   ;;  %v626_v26 = vld [vmem:[%s864_s3 + $0x38] sm:$0xff]   ;;  %v43_v30 = vld [vmem:[%s865_s2] sm:$0x3] }
   0xa   :  { %571 = vmatpush3.bf16.msra.mxu1 %v614_v14  ;;  %v48_v32 = vrot.slane %v43_v30, %v47_v29  ;;  %v52_v33 = vrot.slane %v43_v30, %v51_v31 }
   0xb   :  { %117 = vmatpush1.bf16.msra.mxu0 %v605_v6  ;;  %572 = vmatprep.subr.bf16.mxu1 %v615_v15 }
   0xc   :  { %118 = vmatprep.subr.bf16.mxu0 %v606_v7 }
   0xe   :  { %573 = vmatpush3.bf16.msra.mxu1 %v616_v16 }
   0xf   :  { %119 = vmatpush1.bf16.msra.mxu0 %v608_v8  ;;  %574 = vmatprep.subr.bf16.mxu1 %v617_v17 }
  0x12   :  { %539 = vmatmul.mubr.msk.bf16.vlgmr.msra.gmra.mrb[0].mxu0 %vm105_vm0, %v721_v9  ;;  %575 = vmatpush3.bf16.msra.mxu1 %v618_v18 }
  0x13   :  { %154 = vmatprep.mubr.bf16.mxu0 %v653_v1  ;;  %576 = vmatprep.subr.bf16.mxu1 %v619_v19 }
  0x16   :  { %577 = vmatpush3.bf16.msra.mxu1 %v620_v20 }
  0x17   :  { %578 = vmatprep.subr.bf16.mxu1 %v621_v21 }
  0x1a   :  { %540 = vmatmul.mubr.msk.bf16.gmra.mrb[4].mxu0 %vm105_vm0, %v728_v10  ;;  %579 = vmatpush3.bf16.msra.mxu1 %v622_v22 }
  0x1b   :  { %580 = vmatprep.subr.bf16.mxu1 %v623_v23 }
  0x1e   :  { %581 = vmatpush3.bf16.msra.mxu1 %v624_v24 }
  0x1f   :  { %582 = vmatprep.subr.bf16.mxu1 %v625_v25 }
  0x22   :  { %583 = vmatpush3.bf16.msra.mxu1 %v626_v26 }
  0xe5   :  { %v146_v34 = vpop.f32.mrb[0].mxu0 }
  0xe6   :  { %v783_v35 = vadd.f32 %v146_v34, %v48_v32  ;;  %v148_v36 = vpop.f32.mrb[1].mxu0 }
  0xe7   :  { %v785_v37 = vadd.f32 %v148_v36, %v52_v33  ;;  %v150_v38 = vpop.f32.mrb[2].mxu0 }
  0xe8   :  { %v173_v39 = vmul.f32 0.044715, %v783_v35  ;;  %v788_v40 = vadd.f32 %v150_v38, %v48_v32  ;;  %v152_v41 = vpop.f32.mrb[3].mxu0  ;;  %v165_v34 = vmul.f32 0.5, %v783_v35 }
  0xe9   :  { %v174_v42 = vmul.f32 0.044715, %v785_v37  ;;  %v791_v43 = vadd.f32 %v152_v41, %v52_v33 }
  0xea   :  { %v181_v44 = vmul.f32 %v173_v39, %v783_v35  ;;  %v175_v45 = vmul.f32 0.044715, %v788_v40  ;;  %v167_v36 = vmul.f32 0.5, %v788_v40  ;;  %v166_v39 = vmul.f32 0.5, %v785_v37 }
  0xeb   :  { %v176_v46 = vmul.f32 0.044715, %v791_v43  ;;  %v182_v47 = vmul.f32 %v174_v42, %v785_v37  ;;  %v168_v41 = vmul.f32 0.5, %v791_v43 }
  0xec   :  { %v189_v48 = vmul.f32 %v181_v44, %v783_v35  ;;  %v183_v49 = vmul.f32 %v175_v45, %v788_v40 }
  0xed   :  { %v156_v50 = vpop.f32.mrb[4].mxu0  ;;  %v184_v51 = vmul.f32 %v176_v46, %v791_v43  ;;  %v190_v52 = vmul.f32 %v182_v47, %v785_v37 }
  0xee   :  { %v191_v53 = vmul.f32 %v183_v49, %v788_v40  ;;  %v802_v54 = vadd.f32 %v156_v50, %v48_v32  ;;  %v158_v55 = vpop.f32.mrb[5].mxu0  ;;  %v197_v56 = vadd.f32 %v189_v48, %v783_v35 }
  0xef   :  { %v805_v57 = vadd.f32 %v158_v55, %v52_v33  ;;  %v160_v58 = vpop.f32.mrb[6].mxu0  ;;  %v192_v59 = vmul.f32 %v184_v51, %v791_v43  ;;  %v198_v60 = vadd.f32 %v190_v52, %v785_v37 }
  0xf0   :  { %v177_v61 = vmul.f32 0.044715, %v802_v54  ;;  %v161_v62 = vadd.f32 %v160_v58, %v48_v32  ;;  %v162_v63 = vpop.f32.mrb[7].mxu0  ;;  %v199_v0 = vadd.f32 %v191_v53, %v788_v40  ;;  %v205_v1 = vmul.f32 0.7978846, %v197_v56 }
  0xf1   :  { %v178_v2 = vmul.f32 0.044715, %v805_v57  ;;  %v163_v3 = vadd.f32 %v162_v63, %v52_v33  ;;  %v200_v4 = vadd.f32 %v192_v59, %v791_v43  ;;  %v206_v5 = vmul.f32 0.7978846, %v198_v60 }
  0xf2   :  { %v185_v6 = vmul.f32 %v177_v61, %v802_v54  ;;  %v179_v7 = vmul.f32 0.044715, %v161_v62  ;;  %v207_v8 = vmul.f32 0.7978846, %v199_v0  ;;  %629 = vtanh.f32 %v205_v1 }
  0xf3   :  { %v186_v11 = vmul.f32 %v178_v2, %v805_v57  ;;  %v180_v12 = vmul.f32 0.044715, %v163_v3  ;;  %v208_v13 = vmul.f32 0.7978846, %v200_v4  ;;  %631 = vtanh.f32 %v206_v5 }
  0xf4   :  { %v193_v14 = vmul.f32 %v185_v6, %v802_v54  ;;  %v187_v15 = vmul.f32 %v179_v7, %v161_v62  ;;  %633 = vtanh.f32 %v207_v8  ;;  %v169_v40 = vmul.f32 0.5, %v802_v54 }
  0xf5   :  { %v194_v16 = vmul.f32 %v186_v11, %v805_v57  ;;  %v188_v17 = vmul.f32 %v180_v12, %v163_v3  ;;  %635 = vtanh.f32 %v208_v13  ;;  %v171_v37 = vmul.f32 0.5, %v161_v62 }
  0xf6   :  { %v195_v18 = vmul.f32 %v187_v15, %v161_v62  ;;  %v201_v19 = vadd.f32 %v193_v14, %v802_v54  ;;  %v170_v43 = vmul.f32 0.5, %v805_v57  ;;  %v172_v58 = vmul.f32 0.5, %v163_v3  ;;  %v541_v54 = vld [vmem:[%s866_s4] ss:$0 sm:$0xff] }
  0xf7   :  { %v196_v20 = vmul.f32 %v188_v17, %v163_v3  ;;  %v202_v21 = vadd.f32 %v194_v16, %v805_v57 }
  0xf8   :  { %v203_v22 = vadd.f32 %v195_v18, %v161_v62  ;;  %v209_v23 = vmul.f32 0.7978846, %v201_v19 }
  0xf9   :  { %v204_v24 = vadd.f32 %v196_v20, %v163_v3  ;;  %v210_v25 = vmul.f32 0.7978846, %v202_v21 }
  0xfa   :  { %v211_v26 = vmul.f32 0.7978846, %v203_v22  ;;  %637 = vtanh.f32 %v209_v23 }
  0xfb   :  { %v212_v27 = vmul.f32 0.7978846, %v204_v24  ;;  %639 = vtanh.f32 %v210_v25 }
  0xfc   :  { %v630_v28 = vpop.eup %629  ;;  %641 = vtanh.f32 %v211_v26 }
  0xfd   :  { %v632_v29 = vpop.eup %631  ;;  %v221_v30 = vadd.f32 1.0, %v630_v28  ;;  %643 = vtanh.f32 %v212_v27 }
  0xfe   :  { %v634_v31 = vpop.eup %633  ;;  %v222_v32 = vadd.f32 1.0, %v632_v29 }
  0xff   :  { %v636_v33 = vpop.eup %635  ;;  %v223_v38 = vadd.f32 1.0, %v634_v31  ;;  %v229_v44 = vmul.f32 %v221_v30, %v165_v34 }
 0x100   :  { %v224_v42 = vadd.f32 1.0, %v636_v33  ;;  %v230_v46 = vmul.f32 %v222_v32, %v166_v39 }
 0x101   :  { %v231_v45 = vmul.f32 %v223_v38, %v167_v36 }
 0x102   :  { %v232_v47 = vmul.f32 %v224_v42, %v168_v41 }
 0x103   :  { %v237_v48 = vpack.c.bf16 %v231_v45, %v229_v44 }
 0x104   :  { %v638_v49 = vpop.eup %637  ;;  %v238_v50 = vpack.c.bf16 %v232_v47, %v230_v46 }
 0x105   :  { %v640_v51 = vpop.eup %639  ;;  %v225_v52 = vadd.f32 1.0, %v638_v49 }
 0x106   :  { %v642_v53 = vpop.eup %641  ;;  %408 = vmatprep.mubr.bf16.mxu1 %v238_v50  ;;  %v226_v35 = vadd.f32 1.0, %v640_v51 }
 0x107   :  { %v644_v55 = vpop.eup %643  ;;  %409 = vmatmul.mubr.bf16.vlgmr.msra.gmra.mrb[0].mxu1 %v237_v48  ;;  %v227_v56 = vadd.f32 1.0, %v642_v53  ;;  %v233_v60 = vmul.f32 %v225_v52, %v169_v40 }
 0x108   :  { %v228_v59 = vadd.f32 1.0, %v644_v55  ;;  %v234_v63 = vmul.f32 %v226_v35, %v170_v43  ;;  %v558_v43 = vld [vmem:[%s867_s5] ss:$0 sm:$0xff] }
 0x109   :  { %v235_v61 = vmul.f32 %v227_v56, %v171_v37 }
 0x10a   :  { %v236_v0 = vmul.f32 %v228_v59, %v172_v58 }
 0x10b   :  { %v239_v1 = vpack.c.bf16 %v235_v61, %v233_v60  ;;  %v559_v60 = vld [vmem:[%s868_s6] ss:$0 sm:$0xff]  ;;  %v31_v61 = vunpack.c.l.bf16 %v721_v9 }
 0x10c   :  { %v240_v2 = vpack.c.bf16 %v236_v0, %v234_v63 }
 0x10e   :  { %416 = vmatprep.mubr.bf16.mxu1 %v240_v2 }
 0x10f   :  { %417 = vmatmul.mubr.bf16.gmra.mrb[4].mxu1 %v239_v1 }
 0x1da   :  { %v584_v4 = vpop.f32.mrb[0].mxu1 }
 0x1db   :  { %v585_v5 = vpop.f32.mrb[1].mxu1 }
 0x1dc   :  { %v586_v62 = vadd.f32 %v585_v5, %v584_v4  ;;  %v587_v6 = vpop.f32.mrb[2].mxu1  ;;  %v32_v4 = vunpack.c.h.bf16 %v721_v9 }
 0x1dd   :  { %v588_v7 = vpop.f32.mrb[3].mxu1 }
 0x1de   :  { %v589_v57 = vadd.f32 %v588_v7, %v587_v6  ;;  %v411_v3 = vadd.f32 %v586_v62, %v541_v54 }
 0x1e0   :  { %v425_v8 = vsel %vm105_vm0, %v411_v3, 0.0  ;;  %v414_v11 = vadd.f32 %v589_v57, %v541_v54 }
 0x1e1   :  { %426 = vadd.xlane.f32.xlu0 %v425_v8 }
 0x1e2   :  { %v590_v12 = vpop.f32.mrb[4].mxu1  ;;  %v428_v16 = vsel %vm105_vm0, %v414_v11, 0.0 }
 0x1e3   :  { %v591_v13 = vpop.f32.mrb[5].mxu1 }
 0x1e4   :  { %v592_v14 = vadd.f32 %v591_v13, %v590_v12  ;;  %v593_v15 = vpop.f32.mrb[6].mxu1 }
 0x1e5   :  { %v594_v17 = vpop.f32.mrb[7].mxu1  ;;  %429 = vadd.xlane.f32.xlu0 %v428_v16 }
 0x1e6   :  { %v595_v18 = vadd.f32 %v594_v17, %v593_v15  ;;  %v419_v19 = vadd.f32 %v592_v14, %v541_v54  ;;  %v34_v15 = vunpack.c.h.bf16 %v728_v10 }
 0x1e8   :  { %v431_v20 = vsel %vm105_vm0, %v419_v19, 0.0  ;;  %v422_v21 = vadd.f32 %v595_v18, %v541_v54 }
 0x1e9   :  { %432 = vadd.xlane.f32.xlu1 %v431_v20 }
 0x1ea   :  { %v434_v22 = vsel %vm105_vm0, %v422_v21, 0.0 }
 0x1ed   :  { %435 = vadd.xlane.f32.xlu1 %v434_v22 }
 0x26e   :  { %v427_v23 = vpop.xlane.xlu0 %426 }
 0x26f   :  { %v438_v24 = vmul.f32 0.015625, %v427_v23 }
 0x271   :  { %v442_v25 = vsub.f32 %v411_v3, %v438_v24  ;;  %v33_v3 = vunpack.c.l.bf16 %v728_v10 }
 0x272   :  { %v430_v26 = vpop.xlane.xlu0 %429 }
 0x273   :  { %v439_v27 = vmul.f32 0.015625, %v430_v26  ;;  %v446_v28 = vmul.f32 %v442_v25, %v442_v25 }
 0x275   :  { %v443_v29 = vsub.f32 %v414_v11, %v439_v27  ;;  %v450_v30 = vsel %vm105_vm0, %v446_v28, 0.0 }
 0x276   :  { %v433_v31 = vpop.xlane.xlu1 %432  ;;  %451 = vadd.xlane.f32.xlu0 %v450_v30 }
 0x277   :  { %v440_v32 = vmul.f32 0.015625, %v433_v31  ;;  %v447_v33 = vmul.f32 %v443_v29, %v443_v29 }
 0x279   :  { %v444_v34 = vsub.f32 %v419_v19, %v440_v32  ;;  %v453_v36 = vsel %vm105_vm0, %v447_v33, 0.0 }
 0x27a   :  { %v436_v38 = vpop.xlane.xlu1 %435  ;;  %454 = vadd.xlane.f32.xlu1 %v453_v36 }
 0x27b   :  { %v441_v39 = vmul.f32 0.015625, %v436_v38  ;;  %v448_v41 = vmul.f32 %v444_v34, %v444_v34 }
 0x27d   :  { %v445_v42 = vsub.f32 %v422_v21, %v441_v39  ;;  %v456_v44 = vsel %vm105_vm0, %v448_v41, 0.0 }
 0x27e   :  { %457 = vadd.xlane.f32.xlu0 %v456_v44 }
 0x27f   :  { %v449_v45 = vmul.f32 %v445_v42, %v445_v42 }
 0x281   :  { %v459_v46 = vsel %vm105_vm0, %v449_v45, 0.0 }
 0x282   :  { %460 = vadd.xlane.f32.xlu1 %v459_v46 }
 0x303   :  { %v452_v47 = vpop.xlane.xlu0 %451 }
 0x304   :  { %v462_v48 = vmul.f32 0.015625, %v452_v47 }
 0x306   :  { %v466_v49 = vadd.f32 1e-05, %v462_v48 }
 0x307   :  { %v455_v50 = vpop.xlane.xlu1 %454 }
 0x308   :  { %645 = vrsqrt.f32 %v466_v49  ;;  %v463_v51 = vmul.f32 0.015625, %v455_v50 }
 0x30a   :  { %v467_v52 = vadd.f32 1e-05, %v463_v51 }
 0x30b   :  { %v458_v53 = vpop.xlane.xlu0 %457 }
 0x30c   :  { %647 = vrsqrt.f32 %v467_v52  ;;  %v464_v35 = vmul.f32 0.015625, %v458_v53 }
 0x30e   :  { %v468_v55 = vadd.f32 1e-05, %v464_v35 }
 0x30f   :  { %v461_v40 = vpop.xlane.xlu1 %460 }
 0x310   :  { %649 = vrsqrt.f32 %v468_v55  ;;  %v465_v37 = vmul.f32 0.015625, %v461_v40 }
 0x312   :  { %v646_v56 = vpop.eup %645  ;;  %v469_v58 = vadd.f32 1e-05, %v465_v37 }
 0x313   :  { %v474_v59 = vmul.f32 %v646_v56, %v442_v25 }
 0x314   :  { %651 = vrsqrt.f32 %v469_v58 }
 0x315   :  { %v485_v63 = vmul.f32 %v558_v43, %v474_v59 }
 0x316   :  { %v648_v0 = vpop.eup %647 }
 0x317   :  { %v496_v1 = vadd.f32 %v559_v60, %v485_v63  ;;  %v475_v2 = vmul.f32 %v648_v0, %v443_v29 }
 0x319   :  { %v500_v5 = vadd.f32 %v496_v1, %v31_v61  ;;  %v486_v54 = vmul.f32 %v558_v43, %v475_v2 }
 0x31a   :  { %v650_v62 = vpop.eup %649 }
 0x31b   :  { %v564_v6 = vpack.c.bf16 %v500_v5, %v500_v5  ;;  %v497_v7 = vadd.f32 %v559_v60, %v486_v54  ;;  %v476_v57 = vmul.f32 %v650_v62, %v444_v34 }
 0x31d   :  { %521 = vst.msk [vmem:[%s869_s7] sm:$0xf] %vm520_vm1, %v564_v6  ;;  %v501_v8 = vadd.f32 %v497_v7, %v32_v4  ;;  %v487_v11 = vmul.f32 %v558_v43, %v476_v57 }
 0x31e   :  { %v652_v12 = vpop.eup %651 }
 0x31f   :  { %v565_v13 = vpack.c.bf16 %v501_v8, %v501_v8  ;;  %v498_v14 = vadd.f32 %v559_v60, %v487_v11  ;;  %v477_v9 = vmul.f32 %v652_v12, %v445_v42 }
 0x321   :  { %522 = vst.msk [vmem:[%s869_s7 + $0x4] sm:$0xf] %vm520_vm1, %v565_v13  ;;  %v502_v16 = vadd.f32 %v498_v14, %v33_v3  ;;  %v488_v17 = vmul.f32 %v558_v43, %v477_v9 }
 0x323   :  { %v566_v18 = vpack.c.bf16 %v502_v16, %v502_v16  ;;  %v499_v19 = vadd.f32 %v559_v60, %v488_v17 }
 0x325   :  { %523 = vst.msk [vmem:[%s869_s7 + $0x8] sm:$0xf] %vm520_vm1, %v566_v18  ;;  %v503_v20 = vadd.f32 %v499_v19, %v34_v15 }
 0x327   :  { %v567_v21 = vpack.c.bf16 %v503_v20, %v503_v20 }
 0x329   :  { %524 = vst.msk [vmem:[%s869_s7 + $0xc] sm:$0xf] %vm520_vm1, %v567_v21 }

// kernel: _lambda_.17
= control target key start
LH: loop header
LB: loop body
LE: loop exit
PB: predicated region body
PF: predicated region fallthrough
CT: control target
= control target key end

     0   :  { %s2140_s13 = smov 0   ;;  %s2142_s14 = smov 0   ;;  %s2466_s0 = inlined_call_operand.vmem [shape: bf16[2,1,16,64], index: 0, kind: input, shape index: {}]   ;;  %s2467_s1 = inlined_call_operand.vmem [shape: bf16[64,192], index: 1, kind: input, shape index: {}]   ;;  %s2468_s2 = inlined_call_operand.vmem [shape: f32[1,192], index: 2, kind: input, shape index: {}]   ;;  %s2469_s3 = inlined_call_operand.vmem [shape: bf16[64,64], index: 3, kind: input, shape index: {}]   ;;  %s2470_s4 = inlined_call_operand.vmem [shape: f32[1,64], index: 4, kind: input, shape index: {}]   ;;  %s2471_s5 = inlined_call_operand.vmem [shape: f32[4,16,16], index: 5, kind: input, shape index: {}]   ;;  %s2472_s6 = inlined_call_operand.vmem [shape: f32[1,16,16], index: 6, kind: input, shape index: {}]   ;;  %s2473_s7 = inlined_call_operand.vmem [shape: f32[1,64], index: 7, kind: input, shape index: {}]   ;;  %s2474_s8 = inlined_call_operand.vmem [shape: f32[1,64], index: 8, kind: input, shape index: {}]   ;;  %s2475_s9 = inlined_call_operand.vmem [shape: f32[4,1,1], index: 9, kind: input, shape index: {}]   ;;  %s2476_s10 = inlined_call_operand.vmem [shape: bf16[2,1,16,64], index: 10, kind: output, shape index: {}]  }
   0x1   :  { %s2144_s15 = smov 0  }
   0x2 LB: > { %s32_s16 = sadd.s32 1, %s2069_s14  ;;  %p1707_p0 = scmp.ge.s32.totalorder %s2073_s15, 1  ;;  %s2073_s15 = sphi %s2144_s15, %s20_s15   ;;  %s2069_s14 = sphi %s2142_s14, %s2480_s14   ;;  %s2065_s13 = sphi %s2140_s13, %s2479_s13  }
   0x3   : > { %p34_p1 = scmp.ge.s32.totalorder %s32_s16, 2  ;;  %p342_p2 = scmp.lt.s32.totalorder %s2073_s15, 3 }
   0x5   : > { %s2482_s16 = smov (%p34_p1, %s32_s16), 0  ;;  %p343_p3 = pnand %p1707_p0, %p342_p2 }
   0x6   : > { %v1965_v0 = vld [vmem:[%s2467_s1 + $0x4] ss:$8 sps:$4 sm:$0xff] (!%p343_p3)   ;;  %p393_p4 = scmp.lt.s32.totalorder (!%p343_p3), %s2065_s13, 1  ;;  %v1967_v1 = vld [vmem:[%s2467_s1] ss:$8 sps:$4 sm:$0xff] (!%p343_p3)   ;;  %v2075_v2 = vmov (!%p343_p3), 0   ;;  %v431_v10 = vlaneseq (!%p343_p3) }
   0x7   : > { %346 = sbr.rel (%p343_p3) target bundleno = 2178 (0x882), region = 60  ;;  %522 = vmatprep.mubr.bf16.mxu0 (!%p343_p3), %v2075_v2  ;;  %1933 = vset.pattern.permute.xlu0 (!%p343_p3), %v2075_v2  ;;  %v1968_v3 = vld [vmem:[%s2467_s1 + $0x14] ss:$8 sps:$4 sm:$0xff] (!%p343_p3)   ;;  %v1970_v4 = vld [vmem:[%s2467_s1 + $0x10] ss:$8 sps:$4 sm:$0xff] (!%p343_p3)   ;;  %vm486_vm0 = vcmask (!%p343_p3), 523264  }
   0x8   : > { %490 = vmatprep.subr.bf16.mxu0 (!%p343_p3), %v1965_v0  ;;  %1934 = vset.pattern.permute.xlu1 (!%p343_p3), %v2075_v2  ;;  %v1971_v5 = vld [vmem:[%s2467_s1 + $0x24] ss:$8 sps:$4 sm:$0xff] (!%p343_p3)   ;;  %v1973_v6 = vld [vmem:[%s2467_s1 + $0x20] ss:$8 sps:$4 sm:$0xff] (!%p343_p3)   ;;  %v1974_v7 = vld [vmem:[%s2467_s1 + $0x34] ss:$8 sps:$4 sm:$0xff] (!%p343_p3)  }
   0x9   : > { %491 = vmatpush1.bf16.msra.mxu0 (!%p343_p3), %v1967_v1  ;;  %v1976_v8 = vld [vmem:[%s2467_s1 + $0x30] ss:$8 sps:$4 sm:$0xff] (!%p343_p3)   ;;  %v432_v11 = vshrl.u32 (!%p343_p3), %v431_v10, 7  ;;  %v429_v13 = vld [vmem:[%s2468_s2] sm:$0x3] (!%p343_p3)  ;;  %s2076_s23 = smov (!%p343_p3), 96  }
   0xa   : > { %492 = vmatprep.subr.bf16.mxu0 (!%p343_p3), %v1968_v3  ;;  %s2077_s24 = smov (!%p343_p3), 112   ;;  %s2078_s25 = smov (!%p343_p3), 80   ;;  %vm581_vm1 = vcmask (!%p343_p3), 130048   ;;  %vm2081_vm3 = vmmov (!%p343_p3), 0   ;;  %vm1446_vm4 = vcmask (!%p343_p3), 261120   ;;  %vm1449_vm5 = vcmask (!%p343_p3), 392192  }
   0xb   : > { %v433_v12 = vsub.s32 (!%p343_p3), 0, %v432_v11  ;;  %v437_v14 = vsub.s32 (!%p343_p3), 1, %v432_v11  ;;  %s2079_s26 = smov (!%p343_p3), 64   ;;  %vm2305_vm2 = vmpackc.low (!%p343_p3), %vm581_vm1, %vm581_vm1  ;;  %s2082_s21 = smov (!%p343_p3), 32   ;;  %vm1591_vm6 = vcmask (!%p343_p3), 519168  }
   0xc   : > { %s2083_s22 = smov (!%p343_p3), 16  }
   0xd   : > { %493 = vmatpush1.bf16.msra.mxu0 (!%p343_p3), %v1970_v4  ;;  %v434_v15 = vrot.slane (!%p343_p3), %v429_v13, %v433_v12  ;;  %v438_v17 = vrot.slane (!%p343_p3), %v429_v13, %v437_v14 }
   0xe   : > { %s2484_s13 = smov (!%p393_p4, %s2065_s13), 1  ;;  %494 = vmatprep.subr.bf16.mxu0 %v1971_v5 }
   0xf   : > { %s1758_s29 = sshll.u32 %s2484_s13, 3 }
  0x10   : > { %s401_s18 = scalar_lea.vmem %s2466_s0, %s1758_s29  ;;  %s415_s17 = scalar_lea.vmem %s2476_s10, %s1758_s29 }
  0x11   : > { %495 = vmatpush1.bf16.msra.mxu0 %v1973_v6  ;;  %v2190_v9 = vld [vmem:[%s401_s18] sm:$0xff]  }
  0x12   : > { %496 = vmatprep.subr.bf16.mxu0 %v1974_v7 }
  0x15   : > { %497 = vmatpush1.bf16.msra.mxu0 %v1976_v8 }
  0x18   : > { %1721 = vmatmul.mubr.msk.bf16.vlgmr.msra.gmra.mrb[0].mxu0 %vm486_vm0, %v2190_v9 }
  0xeb   : > { %v524_v16 = vpop.f32.mrb[0].mxu0 }
  0xec   : > { %v2197_v18 = vadd.f32 %v524_v16, %v434_v15  ;;  %v526_v19 = vpop.f32.mrb[1].mxu0 }
  0xed   : > { %v528_v20 = vpop.f32.mrb[2].mxu0  ;;  %v2203_v22 = vadd.f32 %v526_v19, %v438_v17 }
  0xee   : > { %v530_v21 = vpop.f32.mrb[3].mxu0  ;;  %541 = vrot.lane.b32.xlu1 %v2197_v18, %s2076_s23  ;;  %535 = vrot.lane.b32.xlu0 %v2197_v18, %s2077_s24  ;;  %v2207_v24 = vadd.f32 %v528_v20, %v434_v15  ;;  %v573_v28 = vmul.f32 %v2197_v18, %v2197_v18 }
  0xef   : > { %v2205_v23 = vadd.f32 %v530_v21, %v438_v17 }
  0xf0   : > { %v574_v27 = vmul.f32 %v2207_v24, %v2207_v24  ;;  %v582_v57 = vsel %vm581_vm1, %v573_v28, 0.0 }
  0xf1   : > { %v1240_v25 = vpack.c.bf16 %v2205_v23, %v2203_v22  ;;  %v2213_v26 = vpack.i.bf16 %v2205_v23, %v2203_v22  ;;  %v1139_v22 = vld [vmem:[%s2472_s6 + $0x8] sm:$0xff] }
  0xf2   : > { %543 = vrot.lane.b32.xlu1 %v2207_v24, %s2076_s23  ;;  %537 = vrot.lane.b32.xlu0 %v2207_v24, %s2077_s24  ;;  %v585_v58 = vsel %vm581_vm1, %v574_v27, 0.0 }
  0xf6   : > { %549 = vrot.lane.b32.xlu1 %v2207_v24, %s2078_s25  ;;  %547 = vrot.lane.b32.xlu0 %v2197_v18, %s2078_s25 }
  0xfa   : > { %640 = vrot.lane.b32.xlu1 %v574_v27, %s2079_s26  ;;  %638 = vrot.lane.b32.xlu0 %v573_v28, %s2079_s26 }
 0x160   : > { %v2229_v29 = vpop.permute.xlu1 %541  ;;  %v2231_v30 = vpop.permute.xlu0 %535 }
 0x161   : > { %v575_v31 = vmul.f32 %v2231_v30, %v2231_v30  ;;  %v577_v34 = vmul.f32 %v2229_v29, %v2229_v29 }
 0x163   : > { %642 = vrot.lane.b32.xlu0 %v575_v31, %s2079_s26  ;;  %v588_v59 = vsel %vm581_vm1, %v575_v31, 0.0  ;;  %v594_v61 = vsel %vm581_vm1, %v577_v34, 0.0 }
 0x164   : > { %v2236_v32 = vpop.permute.xlu1 %543  ;;  %v2238_v33 = vpop.permute.xlu0 %537 }
 0x165   : > { %v576_v35 = vmul.f32 %v2238_v33, %v2238_v33  ;;  %v578_v37 = vmul.f32 %v2236_v32, %v2236_v32 }
 0x167   : > { %644 = vrot.lane.b32.xlu1 %v576_v35, %s2079_s26  ;;  %646 = vrot.lane.b32.xlu0 %v577_v34, %s2079_s26  ;;  %v591_v60 = vsel %vm581_vm1, %v576_v35, 0.0  ;;  %v597_v62 = vsel %vm581_vm1, %v578_v37, 0.0 }
 0x168   : > { %v2246_v36 = vpop.permute.xlu0 %547  ;;  %v2252_v39 = vpop.permute.xlu1 %549 }
 0x169   : > { %v579_v38 = vmul.f32 %v2246_v36, %v2246_v36  ;;  %v580_v40 = vmul.f32 %v2252_v39, %v2252_v39 }
 0x16b   : > { %648 = vrot.lane.b32.xlu1 %v578_v37, %s2079_s26  ;;  %650 = vrot.lane.b32.xlu0 %v579_v38, %s2079_s26  ;;  %v600_v63 = vsel %vm581_vm1, %v579_v38, 0.0  ;;  %v603_v0 = vsel %vm581_vm1, %v580_v40, 0.0 }
 0x16c   : > { %v639_v41 = vpop.permute.xlu0 %638  ;;  %v641_v43 = vpop.permute.xlu1 %640 }
 0x16d   : > { %v662_v42 = vsel %vm581_vm1, %v639_v41, 0.0  ;;  %v665_v44 = vsel %vm581_vm1, %v641_v43, 0.0 }
 0x16f   : > { %652 = vrot.lane.b32.xlu1 %v580_v40, %s2079_s26 }
 0x18a   : > { %663 = vadd.xlane.f32.xlu0 %v662_v42 }
 0x193   : > { %666 = vadd.xlane.f32.xlu1 %v665_v44 }
 0x1d5   : > { %v643_v45 = vpop.permute.xlu0 %642 }
 0x1d6   : > { %v668_v46 = vsel %vm581_vm1, %v643_v45, 0.0 }
 0x1d7   : > { %669 = vadd.xlane.f32.xlu0 %v668_v46 }
 0x1d9   : > { %v645_v47 = vpop.permute.xlu1 %644  ;;  %v647_v48 = vpop.permute.xlu0 %646 }
 0x1da   : > { %v671_v49 = vsel %vm581_vm1, %v645_v47, 0.0  ;;  %v674_v50 = vsel %vm581_vm1, %v647_v48, 0.0 }
 0x1db   : > { %672 = vadd.xlane.f32.xlu0 %v671_v49  ;;  %675 = vadd.xlane.f32.xlu1 %v674_v50 }
 0x1dd   : > { %v649_v51 = vpop.permute.xlu1 %648  ;;  %v651_v52 = vpop.permute.xlu0 %650 }
 0x1de   : > { %v677_v53 = vsel %vm581_vm1, %v649_v51, 0.0  ;;  %v680_v54 = vsel %vm581_vm1, %v651_v52, 0.0 }
 0x1df   : > { %678 = vadd.xlane.f32.xlu0 %v677_v53  ;;  %681 = vadd.xlane.f32.xlu1 %v680_v54 }
 0x1e1   : > { %v653_v55 = vpop.permute.xlu1 %652 }
 0x1e2   : > { %v683_v56 = vsel %vm581_vm1, %v653_v55, 0.0 }
 0x1e3   : > { %684 = vadd.xlane.f32.xlu0 %v683_v56  ;;  %583 = vadd.xlane.f32.xlu1 %v582_v57  ;;  %v1738_v57 = vld [vmem:[%s2475_s9] ss:$0 sm:$0xff] }
 0x1e7   : > { %586 = vadd.xlane.f32.xlu0 %v585_v58  ;;  %589 = vadd.xlane.f32.xlu1 %v588_v59  ;;  %v1739_v58 = vld [vmem:[%s2475_s9 + $0x1] ss:$0 sm:$0xff]  ;;  %v1741_v59 = vld [vmem:[%s2475_s9 + $0x3] ss:$0 sm:$0xff] }
 0x1eb   : > { %592 = vadd.xlane.f32.xlu0 %v591_v60  ;;  %595 = vadd.xlane.f32.xlu1 %v594_v61  ;;  %v1740_v61 = vld [vmem:[%s2475_s9 + $0x2] ss:$0 sm:$0xff] }
 0x1ef   : > { %598 = vadd.xlane.f32.xlu0 %v597_v62  ;;  %601 = vadd.xlane.f32.xlu1 %v600_v63 }
 0x1f3   : > { %604 = vadd.xlane.f32.xlu0 %v603_v0 }
 0x217   : > { %v664_v1 = vpop.xlane.xlu0 %663 }
 0x218   : > { %v686_v2 = vmax.f32 %v664_v1, 1e-24 }
 0x21a   : > { %1983 = vrsqrt.f32 %v686_v2 }
 0x220   : > { %v667_v3 = vpop.xlane.xlu1 %666 }
 0x221   : > { %v687_v4 = vmax.f32 %v667_v3, 1e-24 }
 0x223   : > { %1985 = vrsqrt.f32 %v687_v4 }
 0x224   : > { %v1984_v5 = vpop.eup %1983 }
 0x225   : > { %v702_v7 = vmul.f32 %v1984_v5, %v2197_v18 }
 0x22d   : > { %v1986_v6 = vpop.eup %1985 }
 0x22e   : > { %v703_v8 = vmul.f32 %v1986_v6, %v2207_v24 }
 0x230   : > { %v1913_v10 = vpack.i.bf16 %v703_v8, %v702_v7 }
 0x232   : > { %1914 = vrot.lane.b32.xlu1 %v1913_v10, %s2079_s26 }
 0x264   : > { %v670_v11 = vpop.xlane.xlu0 %669 }
 0x265   : > { %v688_v12 = vmax.f32 %v670_v11, 1e-24 }
 0x267   : > { %1987 = vrsqrt.f32 %v688_v12 }
 0x268   : > { %v676_v13 = vpop.xlane.xlu1 %675  ;;  %v673_v14 = vpop.xlane.xlu0 %672 }
 0x269   : > { %v689_v15 = vmax.f32 %v673_v14, 1e-24  ;;  %v690_v16 = vmax.f32 %v676_v13, 1e-24 }
 0x26b   : > { %1989 = vrsqrt.f32 %v689_v15 }
 0x26c   : > { %v682_v17 = vpop.xlane.xlu1 %681  ;;  %v679_v19 = vpop.xlane.xlu0 %678  ;;  %1991 = vrsqrt.f32 %v690_v16 }
 0x26d   : > { %v692_v20 = vmax.f32 %v682_v17, 1e-24  ;;  %v691_v21 = vmax.f32 %v679_v19, 1e-24 }
 0x26f   : > { %1993 = vrsqrt.f32 %v691_v21 }
 0x270   : > { %v685_v27 = vpop.xlane.xlu0 %684  ;;  %v584_v28 = vpop.xlane.xlu1 %583  ;;  %1995 = vrsqrt.f32 %v692_v20 }
 0x271   : > { %v693_v31 = vmax.f32 %v685_v27, 1e-24  ;;  %v606_v34 = vmax.f32 %v584_v28, 1e-24  ;;  %v1988_v35 = vpop.eup %1987 }
 0x272   : > { %v704_v40 = vmul.f32 %v1988_v35, %v2231_v30 }
 0x273   : > { %1997 = vrsqrt.f32 %v693_v31 }
 0x274   : > { %1999 = vrsqrt.f32 %v606_v34  ;;  %v590_v37 = vpop.xlane.xlu1 %589  ;;  %v587_v62 = vpop.xlane.xlu0 %586 }
 0x275   : > { %v1990_v38 = vpop.eup %1989  ;;  %v607_v63 = vmax.f32 %v587_v62, 1e-24  ;;  %v608_v0 = vmax.f32 %v590_v37, 1e-24 }
 0x276   : > { %v705_v41 = vmul.f32 %v1990_v38, %v2238_v33  ;;  %v1992_v42 = vpop.eup %1991 }
 0x277   : > { %v706_v48 = vmul.f32 %v1992_v42, %v2229_v29 }
 0x278   : > { %v596_v43 = vpop.xlane.xlu1 %595  ;;  %v1918_v45 = vpack.i.bf16 %v705_v41, %v704_v40  ;;  %v593_v11 = vpop.xlane.xlu0 %592 }
 0x279   : > { %v610_v44 = vmax.f32 %v596_v43, 1e-24  ;;  %v1994_v46 = vpop.eup %1993  ;;  %v609_v13 = vmax.f32 %v593_v11, 1e-24  ;;  %v2080_v43 = vmov 0.0  }
 0x27a   : > { %v1996_v47 = vpop.eup %1995  ;;  %1919 = vrot.lane.b32.xlu0 %v1918_v45, %s2079_s26  ;;  %v707_v49 = vmul.f32 %v1994_v46, %v2236_v32 }
 0x27b   : > { %2001 = vrsqrt.f32 %v610_v44  ;;  %v708_v53 = vmul.f32 %v1996_v47, %v2246_v36 }
 0x27c   : > { %v1923_v51 = vpack.i.bf16 %v707_v49, %v706_v48  ;;  %v602_v1 = vpop.xlane.xlu1 %601  ;;  %2003 = vrsqrt.f32 %v607_v63  ;;  %v599_v12 = vpop.xlane.xlu0 %598 }
 0x27d   : > { %v1998_v50 = vpop.eup %1997  ;;  %2005 = vrsqrt.f32 %v608_v0  ;;  %v612_v14 = vmax.f32 %v602_v1, 1e-24  ;;  %v611_v16 = vmax.f32 %v599_v12, 1e-24 }
 0x27e   : > { %v2000_v52 = vpop.eup %1999  ;;  %v709_v54 = vmul.f32 %v1998_v50, %v2252_v39  ;;  %1924 = vrot.lane.b32.xlu1 %v1923_v51, %s2079_s26  ;;  %1099 = vperm.xlu0 %1933, %v1738_v57   ;;  %2007 = vrsqrt.f32 %v609_v13 }
 0x27f   : > { %v622_v55 = vmul.f32 %v2000_v52, %v2197_v18  ;;  %2009 = vrsqrt.f32 %v612_v14 }
 0x280   : > { %v1928_v56 = vpack.i.bf16 %v709_v54, %v708_v53  ;;  %v605_v15 = vpop.xlane.xlu0 %604  ;;  %2011 = vrsqrt.f32 %v611_v16 }
 0x281   : > { %1795 = vmatprep.mubr.msk.f32.mxu1 %vm581_vm1, %v622_v55  ;;  %v613_v21 = vmax.f32 %v605_v15, 1e-24  ;;  %v1129_v15 = vld [vmem:[%s2471_s5 + $0x38] sm:$0xff] }
 0x282   : > { %1929 = vrot.lane.b32.xlu1 %v1928_v56, %s2079_s26  ;;  %1111 = vperm.xlu0 %1933, %v1741_v59   ;;  %v1125_v59 = vld [vmem:[%s2471_s5 + $0x18] sm:$0xff]  ;;  %s2084_s26 = smov 48  }
 0x283   : > { %2013 = vrsqrt.f32 %v613_v21 }
 0x285   : > { %v2002_v60 = vpop.eup %2001 }
 0x286   : > { %v626_v18 = vmul.f32 %v2002_v60, %v2229_v29  ;;  %1103 = vperm.xlu1 %1934, %v1739_v58   ;;  %v2004_v6 = vpop.eup %2003 }
 0x287   : > { %v2006_v7 = vpop.eup %2005  ;;  %v623_v8 = vmul.f32 %v2004_v6, %v2207_v24 }
 0x288   : > { %1809 = vmatprep.mubr.msk.f32.mxu0 %vm581_vm1, %v626_v18  ;;  %v624_v10 = vmul.f32 %v2006_v7, %v2231_v30  ;;  %v2008_v34 = vpop.eup %2007 }
 0x289   : > { %v2010_v37 = vpop.eup %2009  ;;  %v625_v42 = vmul.f32 %v2008_v34, %v2238_v33 }
 0x28a   : > { %1107 = vperm.xlu1 %1934, %v1740_v61   ;;  %v2012_v44 = vpop.eup %2011  ;;  %v628_v45 = vmul.f32 %v2010_v37, %v2246_v36  ;;  %v1124_v61 = vld [vmem:[%s2471_s5 + $0x10] sm:$0xff] }
 0x28b   : > { %v627_v46 = vmul.f32 %v2012_v44, %v2236_v32  ;;  %v1123_v32 = vld [vmem:[%s2471_s5 + $0x8] sm:$0xff] }
 0x28d   : > { %v2014_v33 = vpop.eup %2013 }
 0x28e   : > { %v629_v47 = vmul.f32 %v2014_v33, %v2252_v39  ;;  %v1122_v39 = vld [vmem:[%s2471_s5] sm:$0xff] }
 0x2a4   : > { %v1915_v2 = vpop.permute.xlu1 %1914 }
 0x2a5   : > { %v1917_v3 = vunpack.i.h.bf16 %v1915_v2  ;;  %v1916_v4 = vunpack.i.l.bf16 %v1915_v2 }
 0x2a7   : > { %v1855_v5 = vpack.c.bf16 %v1917_v3, %v1916_v4  ;;  %v1127_v3 = vld [vmem:[%s2471_s5 + $0x28] sm:$0xff] }
 0x2a9   : > { %1857 = vmatprep.subr.msk.bf16.mxu1 %vm2305_vm2, %v1855_v5 }
 0x2aa   : > { %1860 = vmatpush3.bf16.xpose.msk.msra.mxu1 %vm2305_vm2, %v1855_v5  ;;  %v1126_v5 = vld [vmem:[%s2471_s5 + $0x20] sm:$0xff] }
 0x2b1   : > { %1796 = vmatmul.mubr.msk.f32.vlgmr.msra.gmra.mrb[0].mxu1 %vm581_vm1, %v623_v8 }
 0x2b2   : > { %1802 = vmatprep.mubr.msk.f32.mxu1 %vm581_vm1, %v624_v10 }
 0x2ec   : > { %v1920_v17 = vpop.permute.xlu0 %1919 }
 0x2ed   : > { %v1922_v19 = vunpack.i.h.bf16 %v1920_v17  ;;  %v1921_v20 = vunpack.i.l.bf16 %v1920_v17 }
 0x2ef   : > { %v1861_v24 = vpack.c.bf16 %v1922_v19, %v1921_v20  ;;  %v1128_v20 = vld [vmem:[%s2471_s5 + $0x30] sm:$0xff] }
 0x2f0   : > { %v1925_v27 = vpop.permute.xlu1 %1924 }
 0x2f1   : > { %v1927_v30 = vunpack.i.h.bf16 %v1925_v27  ;;  %v1926_v28 = vunpack.i.l.bf16 %v1925_v27  ;;  %1863 = vmatprep.subr.msk.bf16.mxu1 %vm2305_vm2, %v1861_v24 }
 0x2f2   : > { %1866 = vmatpush3.bf16.xpose.msk.msra.mxu1 %vm2305_vm2, %v1861_v24 }
 0x2f3   : > { %v1867_v31 = vpack.c.bf16 %v1927_v30, %v1926_v28 }
 0x2f4   : > { %v1930_v35 = vpop.permute.xlu1 %1929 }
 0x2f5   : > { %v1932_v38 = vunpack.i.h.bf16 %v1930_v35  ;;  %v1931_v40 = vunpack.i.l.bf16 %v1930_v35  ;;  %1869 = vmatprep.subr.msk.bf16.mxu0 %vm2305_vm2, %v1867_v31 }
 0x2f6   : > { %1872 = vmatpush3.bf16.xpose.msk.msra.mxu0 %vm2305_vm2, %v1867_v31 }
 0x2f7   : > { %v1873_v41 = vpack.c.bf16 %v1932_v38, %v1931_v40  ;;  %1831 = vmatprep.subr.bf16.mxu0 %v2080_v43 }
 0x2f9   : > { %1803 = vmatmul.mubr.msk.f32.vlgmr.msra.gmra.mrb[2].mxu1 %vm581_vm1, %v625_v42  ;;  %1875 = vmatprep.subr.msk.bf16.mxu1 %vm2305_vm2, %v1873_v41 }
 0x2fa   : > { %1878 = vmatpush3.bf16.xpose.msk.msra.mxu1 %vm2305_vm2, %v1873_v41  ;;  %1816 = vmatprep.mubr.msk.f32.mxu1 %vm581_vm1, %v628_v45 }
 0x2fb   : > { %1819 = vmatprep.subr.bf16.mxu1 %v2080_v43 }
 0x2fd   : > { %1810 = vmatmul.mubr.msk.f32.vlgmr.msra.gmra.mrb[4].mxu0 %vm581_vm1, %v627_v46  ;;  %v1100_v36 = vpop.permute.xlu0 %1099 }
 0x2fe   : > { %1833 = vmatprep.mubr.msk.bf16.mxu0 %vm2081_vm3, %v2080_v43 }
 0x301   : > { %1817 = vmatmul.mubr.msk.f32.vlgmr.msra.gmra.mrb[4].mxu1 %vm581_vm1, %v629_v47  ;;  %v1112_v12 = vpop.permute.xlu0 %1111 }
 0x302   : > { %1820 = vmatpush3.bf16.msra.mxu1 %v1240_v25  ;;  %v1138_v25 = vld [vmem:[%s2472_s6] sm:$0xff]  ;;  %1821 = vmatprep.mubr.msk.bf16.mxu1 %vm2081_vm3, %v2080_v43 }
 0x303   : > { %1825 = vmatprep.subr.bf16.mxu1 %v2080_v43 }
 0x305   : > { %v1104_v57 = vpop.permute.xlu1 %1103 }
 0x309   : > { %v1108_v0 = vpop.permute.xlu1 %1107 }
 0x384   : > { %v1797_v48 = vpop.f32.mrb[0].mxu1 }
 0x385   : > { %v1115_v49 = vmul.f32 %v1797_v48, %v1100_v36  ;;  %v792_v50 = vpop.f32.mrb[1].mxu1 }
 0x386   : > { %v1114_v51 = vmul.f32 %v1100_v36, %v792_v50 }
 0x387   : > { %v1131_v23 = vadd.f32 %v1123_v32, %v1115_v49 }
 0x388   : > { %v1130_v52 = vadd.f32 %v1122_v39, %v1114_v51 }
 0x389   : > { %v1141_v53 = vadd.f32 %v1139_v22, %v1131_v23 }
 0x38a   : > { %v1140_v54 = vadd.f32 %v1138_v25, %v1130_v52 }
 0x38b   : > { %v1151_v55 = vsel %vm581_vm1, %v1141_v53, -inf }
 0x38c   : > { %1152 = vmax.xlane.f32.xlu0 %v1151_v55  ;;  %v1148_v56 = vsel %vm581_vm1, %v1140_v54, -inf }
 0x38d   : > { %1149 = vmax.xlane.f32.xlu1 %v1148_v56 }
 0x3cc   : > { %v1804_v58 = vpop.f32.mrb[2].mxu1 }
 0x3cd   : > { %v1117_v60 = vmul.f32 %v1804_v58, %v1104_v57  ;;  %v883_v18 = vpop.f32.mrb[3].mxu1 }
 0x3ce   : > { %v1116_v62 = vmul.f32 %v1104_v57, %v883_v18 }
 0x3cf   : > { %v1133_v63 = vadd.f32 %v1125_v59, %v1117_v60 }
 0x3d0   : > { %v1132_v1 = vadd.f32 %v1124_v61, %v1116_v62  ;;  %v1811_v2 = vpop.f32.mrb[4].mxu0 }
 0x3d1   : > { %v1119_v4 = vmul.f32 %v1811_v2, %v1108_v0  ;;  %v974_v29 = vpop.f32.mrb[5].mxu0  ;;  %v1143_v6 = vadd.f32 %v1139_v22, %v1133_v63 }
 0x3d2   : > { %v1118_v7 = vmul.f32 %v1108_v0, %v974_v29  ;;  %v1142_v8 = vadd.f32 %v1138_v25, %v1132_v1 }
 0x3d3   : > { %v1135_v10 = vadd.f32 %v1127_v3, %v1119_v4  ;;  %v1157_v11 = vsel %vm581_vm1, %v1143_v6, -inf }
 0x3d4   : > { %v1134_v13 = vadd.f32 %v1126_v5, %v1118_v7  ;;  %1158 = vmax.xlane.f32.xlu1 %v1157_v11  ;;  %v1818_v14 = vpop.f32.mrb[4].mxu1  ;;  %v1154_v16 = vsel %vm581_vm1, %v1142_v8, -inf }
 0x3d5   : > { %v1121_v17 = vmul.f32 %v1818_v14, %v1112_v12  ;;  %1155 = vmax.xlane.f32.xlu0 %v1154_v16  ;;  %v1065_v19 = vpop.f32.mrb[5].mxu1  ;;  %v1145_v21 = vadd.f32 %v1139_v22, %v1135_v10 }
 0x3d6   : > { %v1120_v24 = vmul.f32 %v1112_v12, %v1065_v19  ;;  %v1144_v27 = vadd.f32 %v1138_v25, %v1134_v13 }
 0x3d7   : > { %v1137_v30 = vadd.f32 %v1129_v15, %v1121_v17  ;;  %v1163_v28 = vsel %vm581_vm1, %v1145_v21, -inf }
 0x3d8   : > { %v1136_v31 = vadd.f32 %v1128_v20, %v1120_v24  ;;  %1164 = vmax.xlane.f32.xlu1 %v1163_v28  ;;  %v1160_v34 = vsel %vm581_vm1, %v1144_v27, -inf }
 0x3d9   : > { %1161 = vmax.xlane.f32.xlu0 %v1160_v34  ;;  %v1147_v35 = vadd.f32 %v1139_v22, %v1137_v30 }
 0x3da   : > { %v1146_v37 = vadd.f32 %v1138_v25, %v1136_v31 }
 0x3db   : > { %v1169_v38 = vsel %vm581_vm1, %v1147_v35, -inf }
 0x3dc   : > { %1170 = vmax.xlane.f32.xlu1 %v1169_v38  ;;  %v1166_v40 = vsel %vm581_vm1, %v1146_v37, -inf }
 0x3dd   : > { %1167 = vmax.xlane.f32.xlu0 %v1166_v40 }
 0x419   : > { %v1153_v41 = vpop.xlane.xlu0 %1152 }
 0x41a   : > { %v1173_v42 = vsub.f32 %v1141_v53, %v1153_v41  ;;  %v1150_v44 = vpop.xlane.xlu1 %1149 }
 0x41b   : > { %v1172_v45 = vsub.f32 %v1140_v54, %v1150_v44 }
 0x41c   : > { %v1182_v46 = vmul.f32 1.442695, %v1173_v42 }
 0x41d   : > { %v1180_v33 = vmul.f32 1.442695, %v1172_v45 }
 0x41e   : > { %2015 = vpow2.f32 %v1182_v46 }
 0x41f   : > { %2017 = vpow2.f32 %v1180_v33 }
 0x428   : > { %v2016_v47 = vpop.eup %2015 }
 0x429   : > { %v2018_v36 = vpop.eup %2017  ;;  %v1199_v48 = vsel %vm581_vm1, %v2016_v47, 0.0 }
 0x42a   : > { %1200 = vadd.xlane.f32.xlu1 %v1199_v48  ;;  %v1196_v32 = vsel %vm581_vm1, %v2018_v36, 0.0 }
 0x42b   : > { %1197 = vadd.xlane.f32.xlu0 %v1196_v32 }
 0x461   : > { %v1159_v49 = vpop.xlane.xlu1 %1158 }
 0x462   : > { %v1175_v50 = vsub.f32 %v1143_v6, %v1159_v49  ;;  %v1156_v39 = vpop.xlane.xlu0 %1155 }
 0x463   : > { %v1174_v51 = vsub.f32 %v1142_v8, %v1156_v39 }
 0x464   : > { %v1186_v22 = vmul.f32 1.442695, %v1175_v50 }
 0x465   : > { %v1184_v23 = vmul.f32 1.442695, %v1174_v51  ;;  %v1165_v25 = vpop.xlane.xlu1 %1164 }
 0x466   : > { %2019 = vpow2.f32 %v1186_v22  ;;  %v1177_v52 = vsub.f32 %v1145_v21, %v1165_v25  ;;  %v1162_v53 = vpop.xlane.xlu0 %1161 }
 0x467   : > { %2021 = vpow2.f32 %v1184_v23  ;;  %v1176_v54 = vsub.f32 %v1144_v27, %v1162_v53  ;;  %v1978_v53 = vld [vmem:[%s2469_s3] sm:$0xff]  }
 0x468   : > { %v1190_v55 = vmul.f32 1.442695, %v1177_v52 }
 0x469   : > { %v1188_v56 = vmul.f32 1.442695, %v1176_v54  ;;  %v1171_v57 = vpop.xlane.xlu1 %1170 }
 0x46a   : > { %2023 = vpow2.f32 %v1190_v55  ;;  %v1179_v58 = vsub.f32 %v1147_v35, %v1171_v57  ;;  %v1168_v59 = vpop.xlane.xlu0 %1167 }
 0x46b   : > { %2025 = vpow2.f32 %v1188_v56  ;;  %v1178_v60 = vsub.f32 %v1146_v37, %v1168_v59  ;;  %v1980_v59 = vld [vmem:[%s2469_s3 + $0x10] sm:$0xff]  }
 0x46c   : > { %v1194_v18 = vmul.f32 1.442695, %v1179_v58  ;;  %v1979_v58 = vld [vmem:[%s2469_s3 + $0x8] sm:$0xff]  }
 0x46d   : > { %v1192_v61 = vmul.f32 1.442695, %v1178_v60 }
 0x46e   : > { %2027 = vpow2.f32 %v1194_v18 }
 0x46f   : > { %2029 = vpow2.f32 %v1192_v61  ;;  %v1981_v61 = vld [vmem:[%s2469_s3 + $0x18] sm:$0xff]  }
 0x470   : > { %v2020_v62 = vpop.eup %2019 }
 0x471   : > { %v2022_v63 = vpop.eup %2021  ;;  %v1205_v0 = vsel %vm581_vm1, %v2020_v62, 0.0 }
 0x472   : > { %1206 = vadd.xlane.f32.xlu1 %v1205_v0  ;;  %v1202_v1 = vsel %vm581_vm1, %v2022_v63, 0.0 }
 0x473   : > { %1203 = vadd.xlane.f32.xlu0 %v1202_v1 }
 0x474   : > { %v2024_v2 = vpop.eup %2023 }
 0x475   : > { %v2026_v3 = vpop.eup %2025  ;;  %v1211_v4 = vsel %vm581_vm1, %v2024_v2, 0.0 }
 0x476   : > { %1212 = vadd.xlane.f32.xlu1 %v1211_v4  ;;  %v1208_v29 = vsel %vm581_vm1, %v2026_v3, 0.0 }
 0x477   : > { %1209 = vadd.xlane.f32.xlu0 %v1208_v29 }
 0x478   : > { %v2391_v5 = vpop.eup %2027 }
 0x479   : > { %v2393_v6 = vpop.eup %2029  ;;  %v1217_v7 = vsel %vm581_vm1, %v2391_v5, 0.0 }
 0x47a   : > { %1218 = vadd.xlane.f32.xlu1 %v1217_v7  ;;  %v1214_v8 = vsel %vm581_vm1, %v2393_v6, 0.0 }
 0x47b   : > { %1215 = vadd.xlane.f32.xlu0 %v1214_v8 }
 0x48b   : > { %1941 = vrot.lane.b32.xlu1 %v2213_v26, %s2076_s23 }
 0x48f   : > { %1946 = vrot.lane.b32.xlu1 %v2213_v26, %s2078_s25 }
 0x491   : > { %1936 = vrot.lane.b32.xlu0 %v2213_v26, %s2077_s24 }
 0x4b7   : > { %v1201_v10 = vpop.xlane.xlu1 %1200 }
 0x4b8   : > { %2031 = vrcp.f32 %v1201_v10  ;;  %v1198_v11 = vpop.xlane.xlu0 %1197 }
 0x4b9   : > { %2033 = vrcp.f32 %v1198_v11 }
 0x4c2   : > { %v2032_v12 = vpop.eup %2031 }
 0x4c3   : > { %v2034_v13 = vpop.eup %2033  ;;  %v1229_v14 = vmul.f32 %v2032_v12, %v2016_v47 }
 0x4c4   : > { %v1228_v15 = vmul.f32 %v2034_v13, %v2018_v36 }
 0x4c6   : > { %v1236_v16 = vpack.c.bf16 %v1229_v14, %v1228_v15 }
 0x4c8   : > { %1822 = vmatmul.mubr.msk.bf16.vlgmr.msra.gmra.mrb[8].mxu1 %vm581_vm1, %v1236_v16 }
 0x4c9   : > { %1827 = vmatprep.mubr.msk.bf16.mxu1 %vm2081_vm3, %v2080_v43 }
 0x4ff   : > { %v1207_v17 = vpop.xlane.xlu1 %1206 }
 0x500   : > { %2035 = vrcp.f32 %v1207_v17  ;;  %v1204_v19 = vpop.xlane.xlu0 %1203 }
 0x501   : > { %2037 = vrcp.f32 %v1204_v19 }
 0x503   : > { %v1213_v20 = vpop.xlane.xlu1 %1212 }
 0x504   : > { %2039 = vrcp.f32 %v1213_v20  ;;  %v1210_v26 = vpop.xlane.xlu0 %1209 }
 0x505   : > { %2041 = vrcp.f32 %v1210_v26 }
 0x507   : > { %v1219_v21 = vpop.xlane.xlu1 %1218 }
 0x508   : > { %2043 = vrcp.f32 %v1219_v21  ;;  %v1216_v24 = vpop.xlane.xlu0 %1215 }
 0x509   : > { %2045 = vrcp.f32 %v1216_v24 }
 0x50a   : > { %v2036_v27 = vpop.eup %2035 }
 0x50b   : > { %v2038_v30 = vpop.eup %2037  ;;  %v1942_v28 = vpop.permute.xlu1 %1941  ;;  %v1231_v41 = vmul.f32 %v2036_v27, %v2020_v62 }
 0x50c   : > { %v1944_v31 = vunpack.i.h.bf16 %v1942_v28  ;;  %v1943_v34 = vunpack.i.l.bf16 %v1942_v28  ;;  %v1937_v35 = vpop.permute.xlu0 %1936  ;;  %v1230_v42 = vmul.f32 %v2038_v30, %v2022_v63 }
 0x50d   : > { %v1939_v37 = vunpack.i.h.bf16 %v1937_v35  ;;  %v1938_v38 = vunpack.i.l.bf16 %v1937_v35 }
 0x50e   : > { %v2040_v40 = vpop.eup %2039  ;;  %v1242_v44 = vpack.c.bf16 %v1944_v31, %v1943_v34  ;;  %v1237_v39 = vpack.c.bf16 %v1231_v41, %v1230_v42  ;;  %v1746_v31 = vld [vmem:[%s2470_s4] ss:$0 sm:$0xff] }
 0x50f   : > { %v2042_v45 = vpop.eup %2041  ;;  %v1233_v46 = vmul.f32 %v2040_v40, %v2024_v2  ;;  %v1241_v33 = vpack.c.bf16 %v1939_v37, %v1938_v38  ;;  %v1947_v47 = vpop.permute.xlu1 %1946 }
 0x510   : > { %v1232_v36 = vmul.f32 %v2042_v45, %v2026_v3  ;;  %v1949_v48 = vunpack.i.h.bf16 %v1947_v47  ;;  %v1948_v32 = vunpack.i.l.bf16 %v1947_v47  ;;  %1832 = vmatpush3.bf16.msra.mxu0 %v1242_v44 }
 0x511   : > { %1826 = vmatpush3.bf16.msra.mxu1 %v1241_v33  ;;  %1843 = vmatprep.subr.bf16.mxu0 %v2080_v43 }
 0x512   : > { %v2044_v49 = vpop.eup %2043  ;;  %v1243_v50 = vpack.c.bf16 %v1949_v48, %v1948_v32  ;;  %v1238_v51 = vpack.c.bf16 %v1233_v46, %v1232_v36  ;;  %1837 = vmatprep.subr.bf16.mxu1 %v2080_v43 }
 0x513   : > { %v2046_v22 = vpop.eup %2045  ;;  %v1235_v23 = vmul.f32 %v2044_v49, %v2391_v5 }
 0x514   : > { %1828 = vmatmul.mubr.msk.bf16.vlgmr.msra.gmra.mrb[12].mxu1 %vm581_vm1, %v1237_v39  ;;  %1834 = vmatmul.mubr.msk.bf16.vlgmr.msra.gmra.mrb[8].mxu0 %vm581_vm1, %v1238_v51  ;;  %v1234_v25 = vmul.f32 %v2046_v22, %v2393_v6 }
 0x515   : > { %1838 = vmatpush3.bf16.msra.mxu1 %v1243_v50  ;;  %1839 = vmatprep.mubr.msk.bf16.mxu1 %vm2081_vm3, %v2080_v43 }
 0x516   : > { %1851 = vmatprep.mubr.msk.bf16.mxu0 %vm2081_vm3, %v2080_v43  ;;  %v1239_v52 = vpack.c.bf16 %v1235_v23, %v1234_v25  ;;  %1844 = vmatpush3.bf16.msra.mxu0 %v1978_v53 }
 0x517   : > { %1845 = vmatprep.subr.bf16.mxu0 %v2080_v43 }
 0x51a   : > { %1846 = vmatpush3.bf16.msra.mxu0 %v1979_v58  ;;  %v1753_v58 = vld [vmem:[%s2474_s8] ss:$0 sm:$0xff] }
 0x51b   : > { %1847 = vmatprep.subr.bf16.mxu0 %v2080_v43 }
 0x51c   : > { %1840 = vmatmul.mubr.msk.bf16.vlgmr.msra.gmra.mrb[16].mxu1 %vm581_vm1, %v1239_v52 }
 0x51e   : > { %1848 = vmatpush3.bf16.msra.mxu0 %v1980_v59  ;;  %v419_v59 = vunpack.c.l.bf16 %v2190_v9 }
 0x51f   : > { %1849 = vmatprep.subr.bf16.mxu0 %v2080_v43 }
 0x522   : > { %1850 = vmatpush3.bf16.msra.mxu0 %v1981_v61  ;;  %v420_v61 = vunpack.c.h.bf16 %v2190_v9 }
 0x59b   : > { %v1281_v54 = vpop.f32.mrb[8].mxu1 }
 0x59c   : > { %v1823_v55 = vpop.f32.mrb[9].mxu1 }
 0x59d   : > { %v1284_v56 = vpop.f32.mrb[10].mxu1  ;;  %v1752_v55 = vld [vmem:[%s2473_s7] ss:$0 sm:$0xff] }
 0x59e   : > { %v1824_v57 = vpop.f32.mrb[11].mxu1 }
 0x5e7   : > { %v1325_v60 = vpop.f32.mrb[12].mxu1  ;;  %v1369_v18 = vpop.f32.mrb[8].mxu0 }
 0x5e8   : > { %v1829_v62 = vpop.f32.mrb[13].mxu1  ;;  %v1835_v63 = vpop.f32.mrb[9].mxu0 }
 0x5e9   : > { %v1328_v0 = vpop.f32.mrb[14].mxu1  ;;  %v1372_v1 = vpop.f32.mrb[10].mxu0 }
 0x5ea   : > { %v1950_v2 = vpack.i.bf16 %v1328_v0, %v1325_v60  ;;  %v1955_v3 = vpack.i.bf16 %v1372_v1, %v1369_v18  ;;  %v1830_v4 = vpop.f32.mrb[15].mxu1  ;;  %v1836_v29 = vpop.f32.mrb[11].mxu0 }
 0x5ec   : > { %1956 = vrot.lane.b32.xlu1 %v1955_v3, %s2082_s21  ;;  %1951 = vrot.lane.b32.xlu0 %v1950_v2, %s2083_s22 }
 0x5ef   : > { %v1413_v43 = vpop.f32.mrb[16].mxu1 }
 0x5f0   : > { %v1841_v5 = vpop.f32.mrb[17].mxu1 }
 0x5f1   : > { %v1416_v6 = vpop.f32.mrb[18].mxu1 }
 0x5f2   : > { %v1960_v7 = vpack.i.bf16 %v1416_v6, %v1413_v43  ;;  %v1842_v8 = vpop.f32.mrb[19].mxu1 }
 0x5f4   : > { %1961 = vrot.lane.b32.xlu0 %v1960_v7, %s2084_s26 }
 0x65e   : > { %v1952_v10 = vpop.permute.xlu0 %1951  ;;  %v1957_v11 = vpop.permute.xlu1 %1956 }
 0x65f   : > { %v1954_v12 = vunpack.i.h.bf16 %v1952_v10  ;;  %v1953_v13 = vunpack.i.l.bf16 %v1952_v10  ;;  %v1959_v14 = vunpack.i.h.bf16 %v1957_v11  ;;  %v1958_v15 = vunpack.i.l.bf16 %v1957_v11 }
 0x661   : > { %v1445_v16 = vsel %vm581_vm1, %v1284_v56, %v1954_v12  ;;  %v1444_v17 = vsel %vm581_vm1, %v1281_v54, %v1953_v13 }
 0x662   : > { %v1447_v21 = vsel %vm1446_vm4, %v1444_v17, %v1958_v15  ;;  %v1448_v24 = vsel %vm1446_vm4, %v1445_v16, %v1959_v14 }
 0x666   : > { %v1962_v19 = vpop.permute.xlu0 %1961 }
 0x667   : > { %v1964_v20 = vunpack.i.h.bf16 %v1962_v19  ;;  %v1963_v26 = vunpack.i.l.bf16 %v1962_v19 }
 0x669   : > { %v1451_v27 = vsel %vm1449_vm5, %v1448_v24, %v1964_v20  ;;  %v1450_v30 = vsel %vm1449_vm5, %v1447_v21, %v1963_v26 }
 0x66a   : > { %v1452_v28 = vpack.c.bf16 %v1451_v27, %v1450_v30 }
 0x66c   : > { %1852 = vmatmul.mubr.msk.bf16.vlgmr.msra.gmra.mrb[12].mxu0 %vm486_vm0, %v1452_v28 }
 0x73f   : > { %v1529_v34 = vpop.f32.mrb[12].mxu0 }
 0x740   : > { %v1530_v35 = vadd.f32 %v1746_v31, %v1529_v34  ;;  %v1853_v37 = vpop.f32.mrb[13].mxu0 }
 0x741   : > { %v1532_v38 = vpop.f32.mrb[14].mxu0 }
 0x742   : > { %v1533_v40 = vadd.f32 %v1746_v31, %v1532_v38  ;;  %v1854_v41 = vpop.f32.mrb[15].mxu0  ;;  %v1536_v42 = vsel %vm486_vm0, %v1530_v35, 0.0 }
 0x743   : > { %1537 = vadd.xlane.f32.xlu1 %v1536_v42 }
 0x744   : > { %v1539_v44 = vsel %vm486_vm0, %v1533_v40, 0.0 }
 0x745   : > { %1540 = vadd.xlane.f32.xlu0 %v1539_v44 }
 0x7d0   : > { %v1538_v45 = vpop.xlane.xlu1 %1537 }
 0x7d1   : > { %v1543_v46 = vmul.f32 0.015625, %v1538_v45 }
 0x7d2   : > { %v1541_v33 = vpop.xlane.xlu0 %1540 }
 0x7d3   : > { %v1545_v47 = vsub.f32 %v1530_v35, %v1543_v46  ;;  %v1544_v36 = vmul.f32 0.015625, %v1541_v33 }
 0x7d5   : > { %v1546_v48 = vsub.f32 %v1533_v40, %v1544_v36  ;;  %v1547_v32 = vmul.f32 %v1545_v47, %v1545_v47 }
 0x7d7   : > { %v1549_v49 = vsel %vm486_vm0, %v1547_v32, 0.0  ;;  %v1548_v50 = vmul.f32 %v1546_v48, %v1546_v48 }
 0x7d8   : > { %1550 = vadd.xlane.f32.xlu0 %v1549_v49 }
 0x7d9   : > { %v1552_v39 = vsel %vm486_vm0, %v1548_v50, 0.0 }
 0x7da   : > { %1553 = vadd.xlane.f32.xlu1 %v1552_v39 }
 0x865   : > { %v1551_v51 = vpop.xlane.xlu0 %1550 }
 0x866   : > { %v1555_v22 = vmul.f32 0.015625, %v1551_v51 }
 0x867   : > { %v1554_v23 = vpop.xlane.xlu1 %1553 }
 0x868   : > { %v1557_v25 = vadd.f32 1e-05, %v1555_v22  ;;  %v1556_v52 = vmul.f32 0.015625, %v1554_v23 }
 0x86a   : > { %2047 = vrsqrt.f32 %v1557_v25  ;;  %v1558_v53 = vadd.f32 1e-05, %v1556_v52 }
 0x86c   : > { %2049 = vrsqrt.f32 %v1558_v53 }
 0x874   : > { %v2048_v54 = vpop.eup %2047 }
 0x875   : > { %v1561_v56 = vmul.f32 %v2048_v54, %v1545_v47 }
 0x876   : > { %v2050_v57 = vpop.eup %2049 }
 0x877   : > { %v1570_v60 = vmul.f32 %v1752_v55, %v1561_v56  ;;  %v1562_v18 = vmul.f32 %v2050_v57, %v1546_v48 }
 0x879   : > { %v1579_v62 = vadd.f32 %v1753_v58, %v1570_v60  ;;  %v1571_v63 = vmul.f32 %v1752_v55, %v1562_v18 }
 0x87b   : > { %v1581_v0 = vadd.f32 %v1579_v62, %v419_v59  ;;  %v1580_v1 = vadd.f32 %v1753_v58, %v1571_v63 }
 0x87d   : > { %v1760_v2 = vpack.c.bf16 %v1581_v0, %v1581_v0  ;;  %v1582_v3 = vadd.f32 %v1580_v1, %v420_v61 }
 0x87f   : > { %1592 = vst.msk [vmem:[%s415_s17] sm:$0xf] %vm1591_vm6, %v1760_v2  ;;  %v1761_v4 = vpack.c.bf16 %v1582_v3, %v1582_v3 }
 0x881   : > { %1593 = vst.msk [vmem:[%s415_s17 + $0x4] sm:$0xf] %vm1591_vm6, %v1761_v4 }
 0x882 PF: > { %s20_s15 = sadd.s32 1, %s2073_s15   ;;  %s2479_s13 = smov %s2069_s14 }
 0x883   : > { %p17_p5 = scmp.ge.s32.totalorder %s20_s15, 4   ;;  %s2480_s14 = smov %s2482_s16 }
 0x885   :  { %19 = sbr.rel (!%p17_p5) target bundleno = 2 (0x2), region = 93 }

</bundles_post_ra>
